<compile_context>
chip_gen: v5e
topology: v5e:2x2
jax: 0.10.0
libtpu: 0.0.40
codegen_flags: <defaults>
</compile_context>

<pallas_src>
import numpy as np
import jax
import jax.numpy as jnp
from jax.experimental import pallas as pl
from jax.experimental.pallas import tpu as pltpu

RADIUS = 2
DILATION = 2
KS = 2 * RADIUS + 1          # 5 (avg-pool kernel size)
NUM_CH = 12                  # number of MIND-SSC channels

VMEM_LIMIT = 32 * 1024 * 1024        # raised scoped limit (safe on v5e/v6e/v7x)
VMEM_BUDGET = 14 * 1024 * 1024       # target per-call working set (<= ~half limit)


def _mind_pairs():
    """Reproduce the PyTorch idx_shift1/idx_shift2 construction statically.

    Returns the 6 neighbourhood shift vectors and the 12 (i, j) index pairs
    into them (both idx_shift arrays are rows of the same 6-neighbourhood, so
    only 6 shifted image copies are ever needed)."""
    six = np.array([[0, 1, 1], [1, 1, 0], [1, 0, 1],
                    [1, 1, 2], [2, 1, 1], [1, 2, 1]], dtype=np.int64)
    dist = ((six[:, None, :] - six[None, :, :]) ** 2).sum(-1)
    ii, jj = np.meshgrid(np.arange(6), np.arange(6), indexing="ij")
    mask = (ii > jj) & (dist == 2)
    return six, list(zip(ii[mask].tolist(), jj[mask].tolist()))


_SIX, _PAIRS = _mind_pairs()
assert len(_PAIRS) == NUM_CH


def _band_matrix(n, radius):
    """(n, n) ones-band matrix: B[p, j] = #{k in [-r, r] : clamp(j+k, 0, n-1) == p}.

    Right-multiplying by B performs the 5-tap box sum along the lane axis with
    replication ("edge") boundary handling, entirely on the MXU."""
    m = np.zeros((n, n), dtype=np.float32)
    for j in range(n):
        for k in range(-radius, radius + 1):
            p = min(max(j + k, 0), n - 1)
            m[p, j] += 1.0
    return m


def _divisors(n):
    ds = set()
    i = 1
    while i * i <= n:
        if n % i == 0:
            ds.add(i)
            ds.add(n // i)
        i += 1
    return sorted(ds)


# ----------------------------------------------------------------------------
# Tile size selection (VMEM-budget aware, generation-conservative)
# ----------------------------------------------------------------------------
def _k1_bytes(td, H, W):
    slab = 2 * (td + 8) * (H + 4) * (W + 4) * 4       # double-buffered input slab
    outs = 2 * (NUM_CH + 1) * td * H * W * 4          # double-buffered outputs
    temps = 12 * (td + 4) * H * W * 4                 # 6 shifted vols + temporaries
    return slab + outs + temps


def _k2_bytes(chunk):
    # pred + true descriptors, (12 + 1) channels, double-buffered
    return 2 * 2 * (NUM_CH + 1) * chunk * 4


def _pick_d_tile(D, H, W, budget=VMEM_BUDGET):
    if D == 1:
        return 1
    # td >= RADIUS keeps the in-kernel D-border replication exact for every
    # tile (only the first / last tile can touch the D border when td >= 2).
    cands = [t for t in _divisors(D) if t >= 2]
    fitting = [t for t in cands if _k1_bytes(t, H, W) <= budget]
    pool = fitting if fitting else [min(cands)]
    # prefer >= 2 D-tiles when possible: gives the parallel grid more work.
    multi = [t for t in pool if t <= D // 2]
    return max(multi) if multi else max(pool)


def _pick_chunk(total, budget=VMEM_BUDGET):
    # lane-dense chunks: must be a multiple of 128 (or the full extent).
    cands = [c for c in _divisors(total) if c % 128 == 0 and c < total]
    if not cands:
        return total
    fitting = [c for c in cands if _k2_bytes(c) <= budget]
    return max(fitting) if fitting else min(cands)


# ----------------------------------------------------------------------------
# Kernel 1: shifted squared diffs + 5x5x5 box filter + channel min / mean
# ----------------------------------------------------------------------------
def _make_mind_kernel(D, H, W, td, use_mxu_w):
    dext = td + 4                      # D extent of the diff rows needed (halo = radius)
    inv_pool = 1.0 / float(KS ** 3)
    inv_ch = 1.0 / float(NUM_CH)
    shifts = [tuple(int(v) for v in s) for s in _SIX]

    def kernel(slab_ref, bw_ref, mind_ref, var_ref, vsum_ref):
        t = pl.program_id(1)
        d0 = t * td

        # Depth coordinates (un-padded volume) of the dext difference rows this
        # tile needs; rows outside [0, D-1] must replicate the border difference
        # (ReplicationPad3d(radius) is applied to the diff volume, not the image).
        ze = (d0 - RADIUS) + jax.lax.broadcasted_iota(jnp.int32, (dext, H, W), 0)
        low = ze < 0
        high = ze > (D - 1)

        # 6 shifted copies of the image (one-hot dilated conv3d == shifted copy).
        # Replicating rows of each shifted copy is equivalent to replicating the
        # pointwise difference, so the D-border fix-up is applied once per
        # neighbour instead of once per channel pair.
        vols = []
        for (s0, s1, s2) in shifts:
            v = slab_ref[2 * s0:2 * s0 + dext, 2 * s1:2 * s1 + H, 2 * s2:2 * s2 + W]
            v = jnp.where(low, v[RADIUS:RADIUS + 1], v)      # diff rows z<0   -> z=0
            v = jnp.where(high, v[td + 1:td + 2], v)         # diff rows z>D-1 -> z=D-1
            vols.append(v)

        mn = None
        sm = None
        for c, (i, j) in enumerate(_PAIRS):
            de = (vols[i] - vols[j]) ** 2                    # (dext, H, W)

            # Separable 5-tap box sums.
            # D axis: leading-axis shifted adds (pure VPU, no lane shuffles).
            u = de[0:td] + de[1:td + 1] + de[2:td + 2] + de[3:td + 3] + de[4:td + 4]

            # W (lane) axis: banded ones-matrix matmul on the idle MXU; the band
            # matrix also encodes the replication clamp at the W border.
            if use_mxu_w:
                u = jnp.dot(u.reshape(td * H, W), bw_ref[...],
                            preferred_element_type=jnp.float32).reshape(td, H, W)
            else:
                uw = jnp.concatenate(
                    [u[:, :, :1], u[:, :, :1], u, u[:, :, W - 1:], u[:, :, W - 1:]],
                    axis=2)
                u = (uw[:, :, 0:W] + uw[:, :, 1:W + 1] + uw[:, :, 2:W + 2]
                     + uw[:, :, 3:W + 3] + uw[:, :, 4:W + 4])

            # H (sublane) axis: replication pad + shifted adds.
            uh = jnp.concatenate(
                [u[:, :1], u[:, :1], u, u[:, H - 1:], u[:, H - 1:]], axis=1)
            ssd_c = (uh[:, 0:H] + uh[:, 1:H + 1] + uh[:, 2:H + 2]
                     + uh[:, 3:H + 3] + uh[:, 4:H + 4]) * inv_pool

            mind_ref[c] = ssd_c        # store immediately -> bounds the live range
            mn = ssd_c if mn is None else jnp.minimum(mn, ssd_c)
            sm = ssd_c if sm is None else sm + ssd_c

        var = sm * inv_ch - mn                         # mean(ssd - min) over channels
        mind_ref[...] = mind_ref[...] - mn[None]
        var_ref[0] = var
        # per-(batch, tile) partial sum of var -> g = mean(var) without another
        # full HBM pass over the var volume in XLA.
        vsum_ref[...] = jnp.broadcast_to(jnp.sum(var), (1, 128))

    return kernel


def _compute_mind_parts(img, td):
    """img: (B, 1, D, H, W) f32 -> mind (B,12,D,H,W), var (B,1,D,H,W), vsum (B,nD,1,128)."""
    B, C, D, H, W = img.shape
    assert C == 1
    nD = D // td
    d, r = DILATION, RADIUS

    # Single-channel image, edge-padded: D by (dilation + radius) so every
    # D-tile sees its halo; H/W by dilation only (the radius-padding of the
    # difference volume is reproduced exactly inside the kernel).
    imgp = jnp.pad(img[:, 0],
                   ((0, 0), (d + r, d + r), (d, d), (d, d)), mode="edge")

    # Pre-slice overlapping D-slabs so a plain BlockSpec can express the haloed
    # input: the slab DMA is then double-buffered and overlapped with compute.
    # The extra HBM traffic is on the 1-channel image only (~1/13 of the
    # kernel's output-side traffic).
    slabs = jnp.stack([imgp[:, t * td:t * td + td + 8] for t in range(nD)], axis=1)

    use_mxu_w = (H % 8 == 0)           # reshape (td,H,W)->(td*H,W) is layout-free
    bw = jnp.asarray(_band_matrix(W, r))

    kernel = _make_mind_kernel(D, H, W, td, use_mxu_w)
    mind, var, vsum = pl.pallas_call(
        kernel,
        out_shape=(
            jax.ShapeDtypeStruct((B, NUM_CH, D, H, W), jnp.float32),
            jax.ShapeDtypeStruct((B, 1, D, H, W), jnp.float32),
            jax.ShapeDtypeStruct((B, nD, 1, 128), jnp.float32),
        ),
        grid=(B, nD),
        in_specs=[
            pl.BlockSpec((None, None, td + 8, H + 4, W + 4),
                         lambda b, t: (b, t, 0, 0, 0)),                 # haloed slab
            pl.BlockSpec((W, W), lambda b, t: (0, 0)),                  # band matrix
        ],
        out_specs=(
            pl.BlockSpec((None, NUM_CH, td, H, W), lambda b, t: (b, 0, t, 0, 0)),
            pl.BlockSpec((None, 1, td, H, W), lambda b, t: (b, 0, t, 0, 0)),
            pl.BlockSpec((None, None, 1, 128), lambda b, t: (b, t, 0, 0)),
        ),
        compiler_params=pltpu.CompilerParams(
            dimension_semantics=("parallel", "parallel"),
            vmem_limit_bytes=VMEM_LIMIT),
    )(slabs, bw)
    return mind, var, vsum


# ----------------------------------------------------------------------------
# Kernel 2: clamp(var) -> exp(-mind/var) for both descriptors -> partial SSD
# ----------------------------------------------------------------------------
def _loss_kernel(gp_ref, gt_ref, mp_ref, vp_ref, mt_ref, vt_ref, out_ref):
    gp = gp_ref[0, 0]
    gt = gt_ref[0, 0]
    vp = jnp.clip(vp_ref[...], gp * 0.001, gp * 1000.0)          # (1, chunk)
    vt = jnp.clip(vt_ref[...], gt * 0.001, gt * 1000.0)
    # one divide per var voxel instead of 12 (EUP relief); broadcast muls on VPU
    dp = jnp.exp(-(mp_ref[...] * (1.0 / vp)))                    # (12, chunk)
    dt = jnp.exp(-(mt_ref[...] * (1.0 / vt)))
    d = dp - dt
    out_ref[...] = jnp.broadcast_to(jnp.sum(d * d), (1, 128))


def _loss_partials(mp, vp, gp, mt, vt, gt, chunk):
    B, C, D, H, W = mp.shape
    tot = D * H * W
    nC = tot // chunk
    # free (contiguous) reshapes -> lane-dense blocks for the elementwise pass
    mp2 = mp.reshape(B, C, tot)
    vp2 = vp.reshape(B, 1, tot)
    mt2 = mt.reshape(B, C, tot)
    vt2 = vt.reshape(B, 1, tot)
    smem = pl.BlockSpec(memory_space=pltpu.MemorySpace.SMEM)
    out = pl.pallas_call(
        _loss_kernel,
        out_shape=jax.ShapeDtypeStruct((B, nC, 1, 128), jnp.float32),
        grid=(B, nC),
        in_specs=[
            smem, smem,
            pl.BlockSpec((None, C, chunk), lambda b, j: (b, 0, j)),
            pl.BlockSpec((None, 1, chunk), lambda b, j: (b, 0, j)),
            pl.BlockSpec((None, C, chunk), lambda b, j: (b, 0, j)),
            pl.BlockSpec((None, 1, chunk), lambda b, j: (b, 0, j)),
        ],
        out_specs=pl.BlockSpec((None, None, 1, 128), lambda b, j: (b, j, 0, 0)),
        compiler_params=pltpu.CompilerParams(
            dimension_semantics=("parallel", "parallel"),
            vmem_limit_bytes=VMEM_LIMIT),
    )(gp, gt, mp2, vp2, mt2, vt2)
    return jnp.sum(out[:, :, 0, 0])


# ----------------------------------------------------------------------------
# MINDSSC + loss
# ----------------------------------------------------------------------------
def _mindssc_parts(img, td):
    mind, var, vsum = _compute_mind_parts(img, td)
    B, _, D, H, W = mind.shape
    g = (jnp.sum(vsum[:, :, 0, 0]) / float(B * D * H * W)).reshape(1, 1)
    # NOTE: the channel permutation of the original module is intentionally not
    # applied: it is identical for both descriptors and therefore a no-op for
    # the scalar MSE loss (saves two full-volume HBM rewrites).
    return mind, var, g.astype(jnp.float32)


@jax.jit
def mind_loss(y_pred, y_true):
    y_pred = y_pred.astype(jnp.float32)
    y_true = y_true.astype(jnp.float32)
    B, C, D, H, W = y_pred.shape
    td = _pick_d_tile(D, H, W)
    chunk = _pick_chunk(D * H * W)
    mp, vp, gp = _mindssc_parts(y_pred, td)
    mt, vt, gt = _mindssc_parts(y_true, td)
    total = _loss_partials(mp, vp, gp, mt, vt, gt, chunk)
    return total / float(B * NUM_CH * D * H * W)


if __name__ == "__main__":
    key = jax.random.PRNGKey(0)
    k1, k2 = jax.random.split(key)
    B, D, H, W = 2, 8, 8, 8
    y_pred = jax.random.normal(k1, (B, 1, D, H, W), dtype=jnp.float32)
    y_true = jax.random.normal(k2, (B, 1, D, H, W), dtype=jnp.float32)

    loss = mind_loss(y_pred, y_true)
    jax.block_until_ready(loss)
    print("KERNEL_OK")
</pallas_src>

<mosaic_0001>
module attributes {stable_mosaic.version = 11 : i64} {
  func.func @kernel(%arg0: i32, %arg1: i32, %arg2: memref<1x1x12x12x12xf32, #tpu.memory_space<vmem>>, %arg3: memref<8x8xf32, #tpu.memory_space<vmem>>, %arg4: memref<1x12x4x8x8xf32, #tpu.memory_space<vmem>>, %arg5: memref<1x1x4x8x8xf32, #tpu.memory_space<vmem>>, %arg6: memref<1x1x1x128xf32, #tpu.memory_space<vmem>>) attributes {dimension_semantics = [#tpu.dimension_semantics<parallel>, #tpu.dimension_semantics<parallel>], iteration_bounds = array<i64: 2, 2>, scalar_prefetch = 0 : i64, scratch_operands = 0 : i64, tpu.core_type = #tpu.core_type<tc>, window_params = [{transform_indices = @transform_0, window_bounds = array<i64: 1, 1, 12, 12, 12>}, {pipeline_mode = #tpu.pipeline_mode<synchronous>, transform_indices = @transform_1, window_bounds = array<i64: 8, 8>}, {transform_indices = @transform_2, window_bounds = array<i64: 1, 12, 4, 8, 8>}, {transform_indices = @transform_3, window_bounds = array<i64: 1, 1, 4, 8, 8>}, {transform_indices = @transform_4, window_bounds = array<i64: 1, 1, 1, 128>}]} {
    %c4_i32 = arith.constant 4 : i32
    %0 = arith.muli %arg1, %c4_i32 : i32
    %c2_i32 = arith.constant 2 : i32
    %1 = arith.subi %0, %c2_i32 : i32
    %2 = tpu.iota {dimensions = array<i32: 0>} : vector<8x8x8xi32>
    %3 = vector.broadcast %1 : i32 to vector<8x8x8xi32>
    %4 = arith.addi %3, %2 : vector<8x8x8xi32>
    %c0_i32 = arith.constant 0 : i32
    %5 = vector.broadcast %c0_i32 : i32 to vector<8x8x8xi32>
    %6 = arith.cmpi slt, %4, %5 : vector<8x8x8xi32>
    %c7_i32 = arith.constant 7 : i32
    %7 = vector.broadcast %c7_i32 : i32 to vector<8x8x8xi32>
    %8 = arith.cmpi sgt, %4, %7 : vector<8x8x8xi32>
    %c0 = arith.constant 0 : index
    %c0_0 = arith.constant 0 : index
    %c0_1 = arith.constant 0 : index
    %c2 = arith.constant 2 : index
    %c2_2 = arith.constant 2 : index
    %9 = vector.load %arg2[%c0, %c0_0, %c0_1, %c2, %c2_2] : memref<1x1x12x12x12xf32, #tpu.memory_space<vmem>>, vector<1x1x8x8x8xf32>
    %10 = vector.shape_cast %9 : vector<1x1x8x8x8xf32> to vector<8x8x8xf32>
    %11 = vector.extract_strided_slice %10 {offsets = [2, 0, 0], sizes = [1, 8, 8], strides = [1, 1, 1]} : vector<8x8x8xf32> to vector<1x8x8xf32>
    %12 = vector.shape_cast %11 : vector<1x8x8xf32> to vector<1x8x8xf32>
    %13 = vector.broadcast %12 : vector<1x8x8xf32> to vector<8x8x8xf32>
    %14 = arith.select %6, %13, %10 : vector<8x8x8xi1>, vector<8x8x8xf32>
    %15 = vector.extract_strided_slice %14 {offsets = [5, 0, 0], sizes = [1, 8, 8], strides = [1, 1, 1]} : vector<8x8x8xf32> to vector<1x8x8xf32>
    %16 = vector.shape_cast %15 : vector<1x8x8xf32> to vector<1x8x8xf32>
    %17 = vector.broadcast %16 : vector<1x8x8xf32> to vector<8x8x8xf32>
    %18 = arith.select %8, %17, %14 : vector<8x8x8xi1>, vector<8x8x8xf32>
    %c0_3 = arith.constant 0 : index
    %c0_4 = arith.constant 0 : index
    %c2_5 = arith.constant 2 : index
    %c2_6 = arith.constant 2 : index
    %c0_7 = arith.constant 0 : index
    %19 = vector.load %arg2[%c0_3, %c0_4, %c2_5, %c2_6, %c0_7] : memref<1x1x12x12x12xf32, #tpu.memory_space<vmem>>, vector<1x1x8x8x8xf32>
    %20 = vector.shape_cast %19 : vector<1x1x8x8x8xf32> to vector<8x8x8xf32>
    %21 = vector.extract_strided_slice %20 {offsets = [2, 0, 0], sizes = [1, 8, 8], strides = [1, 1, 1]} : vector<8x8x8xf32> to vector<1x8x8xf32>
    %22 = vector.shape_cast %21 : vector<1x8x8xf32> to vector<1x8x8xf32>
    %23 = vector.broadcast %22 : vector<1x8x8xf32> to vector<8x8x8xf32>
    %24 = arith.select %6, %23, %20 : vector<8x8x8xi1>, vector<8x8x8xf32>
    %25 = vector.extract_strided_slice %24 {offsets = [5, 0, 0], sizes = [1, 8, 8], strides = [1, 1, 1]} : vector<8x8x8xf32> to vector<1x8x8xf32>
    %26 = vector.shape_cast %25 : vector<1x8x8xf32> to vector<1x8x8xf32>
    %27 = vector.broadcast %26 : vector<1x8x8xf32> to vector<8x8x8xf32>
    %28 = arith.select %8, %27, %24 : vector<8x8x8xi1>, vector<8x8x8xf32>
    %c0_8 = arith.constant 0 : index
    %c0_9 = arith.constant 0 : index
    %c2_10 = arith.constant 2 : index
    %c0_11 = arith.constant 0 : index
    %c2_12 = arith.constant 2 : index
    %29 = vector.load %arg2[%c0_8, %c0_9, %c2_10, %c0_11, %c2_12] : memref<1x1x12x12x12xf32, #tpu.memory_space<vmem>>, vector<1x1x8x8x8xf32>
    %30 = vector.shape_cast %29 : vector<1x1x8x8x8xf32> to vector<8x8x8xf32>
    %31 = vector.extract_strided_slice %30 {offsets = [2, 0, 0], sizes = [1, 8, 8], strides = [1, 1, 1]} : vector<8x8x8xf32> to vector<1x8x8xf32>
    %32 = vector.shape_cast %31 : vector<1x8x8xf32> to vector<1x8x8xf32>
    %33 = vector.broadcast %32 : vector<1x8x8xf32> to vector<8x8x8xf32>
    %34 = arith.select %6, %33, %30 : vector<8x8x8xi1>, vector<8x8x8xf32>
    %35 = vector.extract_strided_slice %34 {offsets = [5, 0, 0], sizes = [1, 8, 8], strides = [1, 1, 1]} : vector<8x8x8xf32> to vector<1x8x8xf32>
    %36 = vector.shape_cast %35 : vector<1x8x8xf32> to vector<1x8x8xf32>
    %37 = vector.broadcast %36 : vector<1x8x8xf32> to vector<8x8x8xf32>
    %38 = arith.select %8, %37, %34 : vector<8x8x8xi1>, vector<8x8x8xf32>
    %c0_13 = arith.constant 0 : index
    %c0_14 = arith.constant 0 : index
    %c2_15 = arith.constant 2 : index
    %c2_16 = arith.constant 2 : index
    %c4 = arith.constant 4 : index
    %39 = vector.load %arg2[%c0_13, %c0_14, %c2_15, %c2_16, %c4] : memref<1x1x12x12x12xf32, #tpu.memory_space<vmem>>, vector<1x1x8x8x8xf32>
    %40 = vector.shape_cast %39 : vector<1x1x8x8x8xf32> to vector<8x8x8xf32>
    %41 = vector.extract_strided_slice %40 {offsets = [2, 0, 0], sizes = [1, 8, 8], strides = [1, 1, 1]} : vector<8x8x8xf32> to vector<1x8x8xf32>
    %42 = vector.shape_cast %41 : vector<1x8x8xf32> to vector<1x8x8xf32>
    %43 = vector.broadcast %42 : vector<1x8x8xf32> to vector<8x8x8xf32>
    %44 = arith.select %6, %43, %40 : vector<8x8x8xi1>, vector<8x8x8xf32>
    %45 = vector.extract_strided_slice %44 {offsets = [5, 0, 0], sizes = [1, 8, 8], strides = [1, 1, 1]} : vector<8x8x8xf32> to vector<1x8x8xf32>
    %46 = vector.shape_cast %45 : vector<1x8x8xf32> to vector<1x8x8xf32>
    %47 = vector.broadcast %46 : vector<1x8x8xf32> to vector<8x8x8xf32>
    %48 = arith.select %8, %47, %44 : vector<8x8x8xi1>, vector<8x8x8xf32>
    %c0_17 = arith.constant 0 : index
    %c0_18 = arith.constant 0 : index
    %c4_19 = arith.constant 4 : index
    %c2_20 = arith.constant 2 : index
    %c2_21 = arith.constant 2 : index
    %49 = vector.load %arg2[%c0_17, %c0_18, %c4_19, %c2_20, %c2_21] : memref<1x1x12x12x12xf32, #tpu.memory_space<vmem>>, vector<1x1x8x8x8xf32>
    %50 = vector.shape_cast %49 : vector<1x1x8x8x8xf32> to vector<8x8x8xf32>
    %51 = vector.extract_strided_slice %50 {offsets = [2, 0, 0], sizes = [1, 8, 8], strides = [1, 1, 1]} : vector<8x8x8xf32> to vector<1x8x8xf32>
    %52 = vector.shape_cast %51 : vector<1x8x8xf32> to vector<1x8x8xf32>
    %53 = vector.broadcast %52 : vector<1x8x8xf32> to vector<8x8x8xf32>
    %54 = arith.select %6, %53, %50 : vector<8x8x8xi1>, vector<8x8x8xf32>
    %55 = vector.extract_strided_slice %54 {offsets = [5, 0, 0], sizes = [1, 8, 8], strides = [1, 1, 1]} : vector<8x8x8xf32> to vector<1x8x8xf32>
    %56 = vector.shape_cast %55 : vector<1x8x8xf32> to vector<1x8x8xf32>
    %57 = vector.broadcast %56 : vector<1x8x8xf32> to vector<8x8x8xf32>
    %58 = arith.select %8, %57, %54 : vector<8x8x8xi1>, vector<8x8x8xf32>
    %c0_22 = arith.constant 0 : index
    %c0_23 = arith.constant 0 : index
    %c2_24 = arith.constant 2 : index
    %c4_25 = arith.constant 4 : index
    %c2_26 = arith.constant 2 : index
    %59 = vector.load %arg2[%c0_22, %c0_23, %c2_24, %c4_25, %c2_26] : memref<1x1x12x12x12xf32, #tpu.memory_space<vmem>>, vector<1x1x8x8x8xf32>
    %60 = vector.shape_cast %59 : vector<1x1x8x8x8xf32> to vector<8x8x8xf32>
    %61 = vector.extract_strided_slice %60 {offsets = [2, 0, 0], sizes = [1, 8, 8], strides = [1, 1, 1]} : vector<8x8x8xf32> to vector<1x8x8xf32>
    %62 = vector.shape_cast %61 : vector<1x8x8xf32> to vector<1x8x8xf32>
    %63 = vector.broadcast %62 : vector<1x8x8xf32> to vector<8x8x8xf32>
    %64 = arith.select %6, %63, %60 : vector<8x8x8xi1>, vector<8x8x8xf32>
    %65 = vector.extract_strided_slice %64 {offsets = [5, 0, 0], sizes = [1, 8, 8], strides = [1, 1, 1]} : vector<8x8x8xf32> to vector<1x8x8xf32>
    %66 = vector.shape_cast %65 : vector<1x8x8xf32> to vector<1x8x8xf32>
    %67 = vector.broadcast %66 : vector<1x8x8xf32> to vector<8x8x8xf32>
    %68 = arith.select %8, %67, %64 : vector<8x8x8xi1>, vector<8x8x8xf32>
    %69 = arith.subf %28, %18 : vector<8x8x8xf32>
    %70 = arith.mulf %69, %69 : vector<8x8x8xf32>
    %71 = vector.extract_strided_slice %70 {offsets = [0, 0, 0], sizes = [4, 8, 8], strides = [1, 1, 1]} : vector<8x8x8xf32> to vector<4x8x8xf32>
    %72 = vector.extract_strided_slice %70 {offsets = [1, 0, 0], sizes = [4, 8, 8], strides = [1, 1, 1]} : vector<8x8x8xf32> to vector<4x8x8xf32>
    %73 = arith.addf %71, %72 : vector<4x8x8xf32>
    %74 = vector.extract_strided_slice %70 {offsets = [2, 0, 0], sizes = [4, 8, 8], strides = [1, 1, 1]} : vector<8x8x8xf32> to vector<4x8x8xf32>
    %75 = arith.addf %73, %74 : vector<4x8x8xf32>
    %76 = vector.extract_strided_slice %70 {offsets = [3, 0, 0], sizes = [4, 8, 8], strides = [1, 1, 1]} : vector<8x8x8xf32> to vector<4x8x8xf32>
    %77 = arith.addf %75, %76 : vector<4x8x8xf32>
    %78 = vector.extract_strided_slice %70 {offsets = [4, 0, 0], sizes = [4, 8, 8], strides = [1, 1, 1]} : vector<8x8x8xf32> to vector<4x8x8xf32>
    %79 = arith.addf %77, %78 : vector<4x8x8xf32>
    %80 = vector.shape_cast %79 : vector<4x8x8xf32> to vector<32x8xf32>
    %c0_27 = arith.constant 0 : index
    %c0_28 = arith.constant 0 : index
    %81 = vector.load %arg3[%c0_27, %c0_28] : memref<8x8xf32, #tpu.memory_space<vmem>>, vector<8x8xf32>
    %cst = arith.constant dense<0.000000e+00> : vector<32x8xf32>
    %82 = tpu.matmul %80, %81, %cst {dimension_numbers = #tpu.dot_dimension_numbers<[1], [0], [0], [1], [0, 0, 1, 1], [], []>} : vector<32x8xf32>, vector<8x8xf32>, vector<32x8xf32> -> vector<32x8xf32>
    %83 = vector.shape_cast %82 : vector<32x8xf32> to vector<4x8x8xf32>
    %84 = vector.extract_strided_slice %83 {offsets = [0, 0, 0], sizes = [4, 1, 8], strides = [1, 1, 1]} : vector<4x8x8xf32> to vector<4x1x8xf32>
    %85 = vector.extract_strided_slice %83 {offsets = [0, 0, 0], sizes = [4, 1, 8], strides = [1, 1, 1]} : vector<4x8x8xf32> to vector<4x1x8xf32>
    %86 = vector.extract_strided_slice %83 {offsets = [0, 7, 0], sizes = [4, 1, 8], strides = [1, 1, 1]} : vector<4x8x8xf32> to vector<4x1x8xf32>
    %87 = vector.extract_strided_slice %83 {offsets = [0, 7, 0], sizes = [4, 1, 8], strides = [1, 1, 1]} : vector<4x8x8xf32> to vector<4x1x8xf32>
    %88 = tpu.concatenate %84, %85, %83, %86, %87 in 1 : vector<4x1x8xf32>, vector<4x1x8xf32>, vector<4x8x8xf32>, vector<4x1x8xf32>, vector<4x1x8xf32> -> vector<4x12x8xf32>
    %89 = vector.extract_strided_slice %88 {offsets = [0, 0, 0], sizes = [4, 8, 8], strides = [1, 1, 1]} : vector<4x12x8xf32> to vector<4x8x8xf32>
    %90 = vector.extract_strided_slice %88 {offsets = [0, 1, 0], sizes = [4, 8, 8], strides = [1, 1, 1]} : vector<4x12x8xf32> to vector<4x8x8xf32>
    %91 = arith.addf %89, %90 : vector<4x8x8xf32>
    %92 = vector.extract_strided_slice %88 {offsets = [0, 2, 0], sizes = [4, 8, 8], strides = [1, 1, 1]} : vector<4x12x8xf32> to vector<4x8x8xf32>
    %93 = arith.addf %91, %92 : vector<4x8x8xf32>
    %94 = vector.extract_strided_slice %88 {offsets = [0, 3, 0], sizes = [4, 8, 8], strides = [1, 1, 1]} : vector<4x12x8xf32> to vector<4x8x8xf32>
    %95 = arith.addf %93, %94 : vector<4x8x8xf32>
    %96 = vector.extract_strided_slice %88 {offsets = [0, 4, 0], sizes = [4, 8, 8], strides = [1, 1, 1]} : vector<4x12x8xf32> to vector<4x8x8xf32>
    %97 = arith.addf %95, %96 : vector<4x8x8xf32>
    %cst_29 = arith.constant 8.000000e-03 : f32
    %98 = vector.broadcast %cst_29 : f32 to vector<4x8x8xf32>
    %99 = arith.mulf %97, %98 : vector<4x8x8xf32>
    %c0_30 = arith.constant 0 : index
    %c0_31 = arith.constant 0 : index
    %c0_32 = arith.constant 0 : index
    %c0_33 = arith.constant 0 : index
    %c0_34 = arith.constant 0 : index
    %100 = vector.load %arg4[%c0_30, %c0_31, %c0_32, %c0_33, %c0_34] : memref<1x12x4x8x8xf32, #tpu.memory_space<vmem>>, vector<1x1x4x8x8xf32>
    %101 = vector.shape_cast %100 : vector<1x1x4x8x8xf32> to vector<4x8x8xf32>
    %102 = vector.shape_cast %99 : vector<4x8x8xf32> to vector<1x1x4x8x8xf32>
    tpu.vector_store %arg4[%c0_30, %c0_31, %c0_32, %c0_33, %c0_34], %102 {strides = array<i32>} : memref<1x12x4x8x8xf32, #tpu.memory_space<vmem>>, vector<1x1x4x8x8xf32>,
    %103 = arith.subf %38, %18 : vector<8x8x8xf32>
    %104 = arith.mulf %103, %103 : vector<8x8x8xf32>
    %105 = vector.extract_strided_slice %104 {offsets = [0, 0, 0], sizes = [4, 8, 8], strides = [1, 1, 1]} : vector<8x8x8xf32> to vector<4x8x8xf32>
    %106 = vector.extract_strided_slice %104 {offsets = [1, 0, 0], sizes = [4, 8, 8], strides = [1, 1, 1]} : vector<8x8x8xf32> to vector<4x8x8xf32>
    %107 = arith.addf %105, %106 : vector<4x8x8xf32>
    %108 = vector.extract_strided_slice %104 {offsets = [2, 0, 0], sizes = [4, 8, 8], strides = [1, 1, 1]} : vector<8x8x8xf32> to vector<4x8x8xf32>
    %109 = arith.addf %107, %108 : vector<4x8x8xf32>
    %110 = vector.extract_strided_slice %104 {offsets = [3, 0, 0], sizes = [4, 8, 8], strides = [1, 1, 1]} : vector<8x8x8xf32> to vector<4x8x8xf32>
    %111 = arith.addf %109, %110 : vector<4x8x8xf32>
    %112 = vector.extract_strided_slice %104 {offsets = [4, 0, 0], sizes = [4, 8, 8], strides = [1, 1, 1]} : vector<8x8x8xf32> to vector<4x8x8xf32>
    %113 = arith.addf %111, %112 : vector<4x8x8xf32>
    %114 = vector.shape_cast %113 : vector<4x8x8xf32> to vector<32x8xf32>
    %c0_35 = arith.constant 0 : index
    %c0_36 = arith.constant 0 : index
    %115 = vector.load %arg3[%c0_35, %c0_36] : memref<8x8xf32, #tpu.memory_space<vmem>>, vector<8x8xf32>
    %cst_37 = arith.constant dense<0.000000e+00> : vector<32x8xf32>
    %116 = tpu.matmul %114, %115, %cst_37 {dimension_numbers = #tpu.dot_dimension_numbers<[1], [0], [0], [1], [0, 0, 1, 1], [], []>} : vector<32x8xf32>, vector<8x8xf32>, vector<32x8xf32> -> vector<32x8xf32>
    %117 = vector.shape_cast %116 : vector<32x8xf32> to vector<4x8x8xf32>
    %118 = vector.extract_strided_slice %117 {offsets = [0, 0, 0], sizes = [4, 1, 8], strides = [1, 1, 1]} : vector<4x8x8xf32> to vector<4x1x8xf32>
    %119 = vector.extract_strided_slice %117 {offsets = [0, 0, 0], sizes = [4, 1, 8], strides = [1, 1, 1]} : vector<4x8x8xf32> to vector<4x1x8xf32>
    %120 = vector.extract_strided_slice %117 {offsets = [0, 7, 0], sizes = [4, 1, 8], strides = [1, 1, 1]} : vector<4x8x8xf32> to vector<4x1x8xf32>
    %121 = vector.extract_strided_slice %117 {offsets = [0, 7, 0], sizes = [4, 1, 8], strides = [1, 1, 1]} : vector<4x8x8xf32> to vector<4x1x8xf32>
    %122 = tpu.concatenate %118, %119, %117, %120, %121 in 1 : vector<4x1x8xf32>, vector<4x1x8xf32>, vector<4x8x8xf32>, vector<4x1x8xf32>, vector<4x1x8xf32> -> vector<4x12x8xf32>
    %123 = vector.extract_strided_slice %122 {offsets = [0, 0, 0], sizes = [4, 8, 8], strides = [1, 1, 1]} : vector<4x12x8xf32> to vector<4x8x8xf32>
    %124 = vector.extract_strided_slice %122 {offsets = [0, 1, 0], sizes = [4, 8, 8], strides = [1, 1, 1]} : vector<4x12x8xf32> to vector<4x8x8xf32>
    %125 = arith.addf %123, %124 : vector<4x8x8xf32>
    %126 = vector.extract_strided_slice %122 {offsets = [0, 2, 0], sizes = [4, 8, 8], strides = [1, 1, 1]} : vector<4x12x8xf32> to vector<4x8x8xf32>
    %127 = arith.addf %125, %126 : vector<4x8x8xf32>
    %128 = vector.extract_strided_slice %122 {offsets = [0, 3, 0], sizes = [4, 8, 8], strides = [1, 1, 1]} : vector<4x12x8xf32> to vector<4x8x8xf32>
    %129 = arith.addf %127, %128 : vector<4x8x8xf32>
    %130 = vector.extract_strided_slice %122 {offsets = [0, 4, 0], sizes = [4, 8, 8], strides = [1, 1, 1]} : vector<4x12x8xf32> to vector<4x8x8xf32>
    %131 = arith.addf %129, %130 : vector<4x8x8xf32>
    %cst_38 = arith.constant 8.000000e-03 : f32
    %132 = vector.broadcast %cst_38 : f32 to vector<4x8x8xf32>
    %133 = arith.mulf %131, %132 : vector<4x8x8xf32>
    %c0_39 = arith.constant 0 : index
    %c1 = arith.constant 1 : index
    %c0_40 = arith.constant 0 : index
    %c0_41 = arith.constant 0 : index
    %c0_42 = arith.constant 0 : index
    %134 = vector.load %arg4[%c0_39, %c1, %c0_40, %c0_41, %c0_42] : memref<1x12x4x8x8xf32, #tpu.memory_space<vmem>>, vector<1x1x4x8x8xf32>
    %135 = vector.shape_cast %134 : vector<1x1x4x8x8xf32> to vector<4x8x8xf32>
    %136 = vector.shape_cast %133 : vector<4x8x8xf32> to vector<1x1x4x8x8xf32>
    tpu.vector_store %arg4[%c0_39, %c1, %c0_40, %c0_41, %c0_42], %136 {strides = array<i32>} : memref<1x12x4x8x8xf32, #tpu.memory_space<vmem>>, vector<1x1x4x8x8xf32>,
    %137 = arith.minimumf %99, %133 : vector<4x8x8xf32>
    %138 = arith.addf %99, %133 : vector<4x8x8xf32>
    %139 = arith.subf %38, %28 : vector<8x8x8xf32>
    %140 = arith.mulf %139, %139 : vector<8x8x8xf32>
    %141 = vector.extract_strided_slice %140 {offsets = [0, 0, 0], sizes = [4, 8, 8], strides = [1, 1, 1]} : vector<8x8x8xf32> to vector<4x8x8xf32>
    %142 = vector.extract_strided_slice %140 {offsets = [1, 0, 0], sizes = [4, 8, 8], strides = [1, 1, 1]} : vector<8x8x8xf32> to vector<4x8x8xf32>
    %143 = arith.addf %141, %142 : vector<4x8x8xf32>
    %144 = vector.extract_strided_slice %140 {offsets = [2, 0, 0], sizes = [4, 8, 8], strides = [1, 1, 1]} : vector<8x8x8xf32> to vector<4x8x8xf32>
    %145 = arith.addf %143, %144 : vector<4x8x8xf32>
    %146 = vector.extract_strided_slice %140 {offsets = [3, 0, 0], sizes = [4, 8, 8], strides = [1, 1, 1]} : vector<8x8x8xf32> to vector<4x8x8xf32>
    %147 = arith.addf %145, %146 : vector<4x8x8xf32>
    %148 = vector.extract_strided_slice %140 {offsets = [4, 0, 0], sizes = [4, 8, 8], strides = [1, 1, 1]} : vector<8x8x8xf32> to vector<4x8x8xf32>
    %149 = arith.addf %147, %148 : vector<4x8x8xf32>
    %150 = vector.shape_cast %149 : vector<4x8x8xf32> to vector<32x8xf32>
    %c0_43 = arith.constant 0 : index
    %c0_44 = arith.constant 0 : index
    %151 = vector.load %arg3[%c0_43, %c0_44] : memref<8x8xf32, #tpu.memory_space<vmem>>, vector<8x8xf32>
    %cst_45 = arith.constant dense<0.000000e+00> : vector<32x8xf32>
    %152 = tpu.matmul %150, %151, %cst_45 {dimension_numbers = #tpu.dot_dimension_numbers<[1], [0], [0], [1], [0, 0, 1, 1], [], []>} : vector<32x8xf32>, vector<8x8xf32>, vector<32x8xf32> -> vector<32x8xf32>
    %153 = vector.shape_cast %152 : vector<32x8xf32> to vector<4x8x8xf32>
    %154 = vector.extract_strided_slice %153 {offsets = [0, 0, 0], sizes = [4, 1, 8], strides = [1, 1, 1]} : vector<4x8x8xf32> to vector<4x1x8xf32>
    %155 = vector.extract_strided_slice %153 {offsets = [0, 0, 0], sizes = [4, 1, 8], strides = [1, 1, 1]} : vector<4x8x8xf32> to vector<4x1x8xf32>
    %156 = vector.extract_strided_slice %153 {offsets = [0, 7, 0], sizes = [4, 1, 8], strides = [1, 1, 1]} : vector<4x8x8xf32> to vector<4x1x8xf32>
    %157 = vector.extract_strided_slice %153 {offsets = [0, 7, 0], sizes = [4, 1, 8], strides = [1, 1, 1]} : vector<4x8x8xf32> to vector<4x1x8xf32>
    %158 = tpu.concatenate %154, %155, %153, %156, %157 in 1 : vector<4x1x8xf32>, vector<4x1x8xf32>, vector<4x8x8xf32>, vector<4x1x8xf32>, vector<4x1x8xf32> -> vector<4x12x8xf32>
    %159 = vector.extract_strided_slice %158 {offsets = [0, 0, 0], sizes = [4, 8, 8], strides = [1, 1, 1]} : vector<4x12x8xf32> to vector<4x8x8xf32>
    %160 = vector.extract_strided_slice %158 {offsets = [0, 1, 0], sizes = [4, 8, 8], strides = [1, 1, 1]} : vector<4x12x8xf32> to vector<4x8x8xf32>
    %161 = arith.addf %159, %160 : vector<4x8x8xf32>
    %162 = vector.extract_strided_slice %158 {offsets = [0, 2, 0], sizes = [4, 8, 8], strides = [1, 1, 1]} : vector<4x12x8xf32> to vector<4x8x8xf32>
    %163 = arith.addf %161, %162 : vector<4x8x8xf32>
    %164 = vector.extract_strided_slice %158 {offsets = [0, 3, 0], sizes = [4, 8, 8], strides = [1, 1, 1]} : vector<4x12x8xf32> to vector<4x8x8xf32>
    %165 = arith.addf %163, %164 : vector<4x8x8xf32>
    %166 = vector.extract_strided_slice %158 {offsets = [0, 4, 0], sizes = [4, 8, 8], strides = [1, 1, 1]} : vector<4x12x8xf32> to vector<4x8x8xf32>
    %167 = arith.addf %165, %166 : vector<4x8x8xf32>
    %cst_46 = arith.constant 8.000000e-03 : f32
    %168 = vector.broadcast %cst_46 : f32 to vector<4x8x8xf32>
    %169 = arith.mulf %167, %168 : vector<4x8x8xf32>
    %c0_47 = arith.constant 0 : index
    %c2_48 = arith.constant 2 : index
    %c0_49 = arith.constant 0 : index
    %c0_50 = arith.constant 0 : index
    %c0_51 = arith.constant 0 : index
    %170 = vector.load %arg4[%c0_47, %c2_48, %c0_49, %c0_50, %c0_51] : memref<1x12x4x8x8xf32, #tpu.memory_space<vmem>>, vector<1x1x4x8x8xf32>
    %171 = vector.shape_cast %170 : vector<1x1x4x8x8xf32> to vector<4x8x8xf32>
    %172 = vector.shape_cast %169 : vector<4x8x8xf32> to vector<1x1x4x8x8xf32>
    tpu.vector_store %arg4[%c0_47, %c2_48, %c0_49, %c0_50, %c0_51], %172 {strides = array<i32>} : memref<1x12x4x8x8xf32, #tpu.memory_space<vmem>>, vector<1x1x4x8x8xf32>,
    %173 = arith.minimumf %137, %169 : vector<4x8x8xf32>
    %174 = arith.addf %138, %169 : vector<4x8x8xf32>
    %175 = arith.subf %48, %18 : vector<8x8x8xf32>
    %176 = arith.mulf %175, %175 : vector<8x8x8xf32>
    %177 = vector.extract_strided_slice %176 {offsets = [0, 0, 0], sizes = [4, 8, 8], strides = [1, 1, 1]} : vector<8x8x8xf32> to vector<4x8x8xf32>
    %178 = vector.extract_strided_slice %176 {offsets = [1, 0, 0], sizes = [4, 8, 8], strides = [1, 1, 1]} : vector<8x8x8xf32> to vector<4x8x8xf32>
    %179 = arith.addf %177, %178 : vector<4x8x8xf32>
    %180 = vector.extract_strided_slice %176 {offsets = [2, 0, 0], sizes = [4, 8, 8], strides = [1, 1, 1]} : vector<8x8x8xf32> to vector<4x8x8xf32>
    %181 = arith.addf %179, %180 : vector<4x8x8xf32>
    %182 = vector.extract_strided_slice %176 {offsets = [3, 0, 0], sizes = [4, 8, 8], strides = [1, 1, 1]} : vector<8x8x8xf32> to vector<4x8x8xf32>
    %183 = arith.addf %181, %182 : vector<4x8x8xf32>
    %184 = vector.extract_strided_slice %176 {offsets = [4, 0, 0], sizes = [4, 8, 8], strides = [1, 1, 1]} : vector<8x8x8xf32> to vector<4x8x8xf32>
    %185 = arith.addf %183, %184 : vector<4x8x8xf32>
    %186 = vector.shape_cast %185 : vector<4x8x8xf32> to vector<32x8xf32>
    %c0_52 = arith.constant 0 : index
    %c0_53 = arith.constant 0 : index
    %187 = vector.load %arg3[%c0_52, %c0_53] : memref<8x8xf32, #tpu.memory_space<vmem>>, vector<8x8xf32>
    %cst_54 = arith.constant dense<0.000000e+00> : vector<32x8xf32>
    %188 = tpu.matmul %186, %187, %cst_54 {dimension_numbers = #tpu.dot_dimension_numbers<[1], [0], [0], [1], [0, 0, 1, 1], [], []>} : vector<32x8xf32>, vector<8x8xf32>, vector<32x8xf32> -> vector<32x8xf32>
    %189 = vector.shape_cast %188 : vector<32x8xf32> to vector<4x8x8xf32>
    %190 = vector.extract_strided_slice %189 {offsets = [0, 0, 0], sizes = [4, 1, 8], strides = [1, 1, 1]} : vector<4x8x8xf32> to vector<4x1x8xf32>
    %191 = vector.extract_strided_slice %189 {offsets = [0, 0, 0], sizes = [4, 1, 8], strides = [1, 1, 1]} : vector<4x8x8xf32> to vector<4x1x8xf32>
    %192 = vector.extract_strided_slice %189 {offsets = [0, 7, 0], sizes = [4, 1, 8], strides = [1, 1, 1]} : vector<4x8x8xf32> to vector<4x1x8xf32>
    %193 = vector.extract_strided_slice %189 {offsets = [0, 7, 0], sizes = [4, 1, 8], strides = [1, 1, 1]} : vector<4x8x8xf32> to vector<4x1x8xf32>
    %194 = tpu.concatenate %190, %191, %189, %192, %193 in 1 : vector<4x1x8xf32>, vector<4x1x8xf32>, vector<4x8x8xf32>, vector<4x1x8xf32>, vector<4x1x8xf32> -> vector<4x12x8xf32>
    %195 = vector.extract_strided_slice %194 {offsets = [0, 0, 0], sizes = [4, 8, 8], strides = [1, 1, 1]} : vector<4x12x8xf32> to vector<4x8x8xf32>
    %196 = vector.extract_strided_slice %194 {offsets = [0, 1, 0], sizes = [4, 8, 8], strides = [1, 1, 1]} : vector<4x12x8xf32> to vector<4x8x8xf32>
    %197 = arith.addf %195, %196 : vector<4x8x8xf32>
    %198 = vector.extract_strided_slice %194 {offsets = [0, 2, 0], sizes = [4, 8, 8], strides = [1, 1, 1]} : vector<4x12x8xf32> to vector<4x8x8xf32>
    %199 = arith.addf %197, %198 : vector<4x8x8xf32>
    %200 = vector.extract_strided_slice %194 {offsets = [0, 3, 0], sizes = [4, 8, 8], strides = [1, 1, 1]} : vector<4x12x8xf32> to vector<4x8x8xf32>
    %201 = arith.addf %199, %200 : vector<4x8x8xf32>
    %202 = vector.extract_strided_slice %194 {offsets = [0, 4, 0], sizes = [4, 8, 8], strides = [1, 1, 1]} : vector<4x12x8xf32> to vector<4x8x8xf32>
    %203 = arith.addf %201, %202 : vector<4x8x8xf32>
    %cst_55 = arith.constant 8.000000e-03 : f32
    %204 = vector.broadcast %cst_55 : f32 to vector<4x8x8xf32>
    %205 = arith.mulf %203, %204 : vector<4x8x8xf32>
    %c0_56 = arith.constant 0 : index
    %c3 = arith.constant 3 : index
    %c0_57 = arith.constant 0 : index
    %c0_58 = arith.constant 0 : index
    %c0_59 = arith.constant 0 : index
    %206 = vector.load %arg4[%c0_56, %c3, %c0_57, %c0_58, %c0_59] : memref<1x12x4x8x8xf32, #tpu.memory_space<vmem>>, vector<1x1x4x8x8xf32>
    %207 = vector.shape_cast %206 : vector<1x1x4x8x8xf32> to vector<4x8x8xf32>
    %208 = vector.shape_cast %205 : vector<4x8x8xf32> to vector<1x1x4x8x8xf32>
    tpu.vector_store %arg4[%c0_56, %c3, %c0_57, %c0_58, %c0_59], %208 {strides = array<i32>} : memref<1x12x4x8x8xf32, #tpu.memory_space<vmem>>, vector<1x1x4x8x8xf32>,
    %209 = arith.minimumf %173, %205 : vector<4x8x8xf32>
    %210 = arith.addf %174, %205 : vector<4x8x8xf32>
    %211 = arith.subf %48, %38 : vector<8x8x8xf32>
    %212 = arith.mulf %211, %211 : vector<8x8x8xf32>
    %213 = vector.extract_strided_slice %212 {offsets = [0, 0, 0], sizes = [4, 8, 8], strides = [1, 1, 1]} : vector<8x8x8xf32> to vector<4x8x8xf32>
    %214 = vector.extract_strided_slice %212 {offsets = [1, 0, 0], sizes = [4, 8, 8], strides = [1, 1, 1]} : vector<8x8x8xf32> to vector<4x8x8xf32>
    %215 = arith.addf %213, %214 : vector<4x8x8xf32>
    %216 = vector.extract_strided_slice %212 {offsets = [2, 0, 0], sizes = [4, 8, 8], strides = [1, 1, 1]} : vector<8x8x8xf32> to vector<4x8x8xf32>
    %217 = arith.addf %215, %216 : vector<4x8x8xf32>
    %218 = vector.extract_strided_slice %212 {offsets = [3, 0, 0], sizes = [4, 8, 8], strides = [1, 1, 1]} : vector<8x8x8xf32> to vector<4x8x8xf32>
    %219 = arith.addf %217, %218 : vector<4x8x8xf32>
    %220 = vector.extract_strided_slice %212 {offsets = [4, 0, 0], sizes = [4, 8, 8], strides = [1, 1, 1]} : vector<8x8x8xf32> to vector<4x8x8xf32>
    %221 = arith.addf %219, %220 : vector<4x8x8xf32>
    %222 = vector.shape_cast %221 : vector<4x8x8xf32> to vector<32x8xf32>
    %c0_60 = arith.constant 0 : index
    %c0_61 = arith.constant 0 : index
    %223 = vector.load %arg3[%c0_60, %c0_61] : memref<8x8xf32, #tpu.memory_space<vmem>>, vector<8x8xf32>
    %cst_62 = arith.constant dense<0.000000e+00> : vector<32x8xf32>
    %224 = tpu.matmul %222, %223, %cst_62 {dimension_numbers = #tpu.dot_dimension_numbers<[1], [0], [0], [1], [0, 0, 1, 1], [], []>} : vector<32x8xf32>, vector<8x8xf32>, vector<32x8xf32> -> vector<32x8xf32>
    %225 = vector.shape_cast %224 : vector<32x8xf32> to vector<4x8x8xf32>
    %226 = vector.extract_strided_slice %225 {offsets = [0, 0, 0], sizes = [4, 1, 8], strides = [1, 1, 1]} : vector<4x8x8xf32> to vector<4x1x8xf32>
    %227 = vector.extract_strided_slice %225 {offsets = [0, 0, 0], sizes = [4, 1, 8], strides = [1, 1, 1]} : vector<4x8x8xf32> to vector<4x1x8xf32>
    %228 = vector.extract_strided_slice %225 {offsets = [0, 7, 0], sizes = [4, 1, 8], strides = [1, 1, 1]} : vector<4x8x8xf32> to vector<4x1x8xf32>
    %229 = vector.extract_strided_slice %225 {offsets = [0, 7, 0], sizes = [4, 1, 8], strides = [1, 1, 1]} : vector<4x8x8xf32> to vector<4x1x8xf32>
    %230 = tpu.concatenate %226, %227, %225, %228, %229 in 1 : vector<4x1x8xf32>, vector<4x1x8xf32>, vector<4x8x8xf32>, vector<4x1x8xf32>, vector<4x1x8xf32> -> vector<4x12x8xf32>
    %231 = vector.extract_strided_slice %230 {offsets = [0, 0, 0], sizes = [4, 8, 8], strides = [1, 1, 1]} : vector<4x12x8xf32> to vector<4x8x8xf32>
    %232 = vector.extract_strided_slice %230 {offsets = [0, 1, 0], sizes = [4, 8, 8], strides = [1, 1, 1]} : vector<4x12x8xf32> to vector<4x8x8xf32>
    %233 = arith.addf %231, %232 : vector<4x8x8xf32>
    %234 = vector.extract_strided_slice %230 {offsets = [0, 2, 0], sizes = [4, 8, 8], strides = [1, 1, 1]} : vector<4x12x8xf32> to vector<4x8x8xf32>
    %235 = arith.addf %233, %234 : vector<4x8x8xf32>
    %236 = vector.extract_strided_slice %230 {offsets = [0, 3, 0], sizes = [4, 8, 8], strides = [1, 1, 1]} : vector<4x12x8xf32> to vector<4x8x8xf32>
    %237 = arith.addf %235, %236 : vector<4x8x8xf32>
    %238 = vector.extract_strided_slice %230 {offsets = [0, 4, 0], sizes = [4, 8, 8], strides = [1, 1, 1]} : vector<4x12x8xf32> to vector<4x8x8xf32>
    %239 = arith.addf %237, %238 : vector<4x8x8xf32>
    %cst_63 = arith.constant 8.000000e-03 : f32
    %240 = vector.broadcast %cst_63 : f32 to vector<4x8x8xf32>
    %241 = arith.mulf %239, %240 : vector<4x8x8xf32>
    %c0_64 = arith.constant 0 : index
    %c4_65 = arith.constant 4 : index
    %c0_66 = arith.constant 0 : index
    %c0_67 = arith.constant 0 : index
    %c0_68 = arith.constant 0 : index
    %242 = vector.load %arg4[%c0_64, %c4_65, %c0_66, %c0_67, %c0_68] : memref<1x12x4x8x8xf32, #tpu.memory_space<vmem>>, vector<1x1x4x8x8xf32>
    %243 = vector.shape_cast %242 : vector<1x1x4x8x8xf32> to vector<4x8x8xf32>
    %244 = vector.shape_cast %241 : vector<4x8x8xf32> to vector<1x1x4x8x8xf32>
    tpu.vector_store %arg4[%c0_64, %c4_65, %c0_66, %c0_67, %c0_68], %244 {strides = array<i32>} : memref<1x12x4x8x8xf32, #tpu.memory_space<vmem>>, vector<1x1x4x8x8xf32>,
    %245 = arith.minimumf %209, %241 : vector<4x8x8xf32>
    %246 = arith.addf %210, %241 : vector<4x8x8xf32>
    %247 = arith.subf %58, %28 : vector<8x8x8xf32>
    %248 = arith.mulf %247, %247 : vector<8x8x8xf32>
    %249 = vector.extract_strided_slice %248 {offsets = [0, 0, 0], sizes = [4, 8, 8], strides = [1, 1, 1]} : vector<8x8x8xf32> to vector<4x8x8xf32>
    %250 = vector.extract_strided_slice %248 {offsets = [1, 0, 0], sizes = [4, 8, 8], strides = [1, 1, 1]} : vector<8x8x8xf32> to vector<4x8x8xf32>
    %251 = arith.addf %249, %250 : vector<4x8x8xf32>
    %252 = vector.extract_strided_slice %248 {offsets = [2, 0, 0], sizes = [4, 8, 8], strides = [1, 1, 1]} : vector<8x8x8xf32> to vector<4x8x8xf32>
    %253 = arith.addf %251, %252 : vector<4x8x8xf32>
    %254 = vector.extract_strided_slice %248 {offsets = [3, 0, 0], sizes = [4, 8, 8], strides = [1, 1, 1]} : vector<8x8x8xf32> to vector<4x8x8xf32>
    %255 = arith.addf %253, %254 : vector<4x8x8xf32>
    %256 = vector.extract_strided_slice %248 {offsets = [4, 0, 0], sizes = [4, 8, 8], strides = [1, 1, 1]} : vector<8x8x8xf32> to vector<4x8x8xf32>
    %257 = arith.addf %255, %256 : vector<4x8x8xf32>
    %258 = vector.shape_cast %257 : vector<4x8x8xf32> to vector<32x8xf32>
    %c0_69 = arith.constant 0 : index
    %c0_70 = arith.constant 0 : index
    %259 = vector.load %arg3[%c0_69, %c0_70] : memref<8x8xf32, #tpu.memory_space<vmem>>, vector<8x8xf32>
    %cst_71 = arith.constant dense<0.000000e+00> : vector<32x8xf32>
    %260 = tpu.matmul %258, %259, %cst_71 {dimension_numbers = #tpu.dot_dimension_numbers<[1], [0], [0], [1], [0, 0, 1, 1], [], []>} : vector<32x8xf32>, vector<8x8xf32>, vector<32x8xf32> -> vector<32x8xf32>
    %261 = vector.shape_cast %260 : vector<32x8xf32> to vector<4x8x8xf32>
    %262 = vector.extract_strided_slice %261 {offsets = [0, 0, 0], sizes = [4, 1, 8], strides = [1, 1, 1]} : vector<4x8x8xf32> to vector<4x1x8xf32>
    %263 = vector.extract_strided_slice %261 {offsets = [0, 0, 0], sizes = [4, 1, 8], strides = [1, 1, 1]} : vector<4x8x8xf32> to vector<4x1x8xf32>
    %264 = vector.extract_strided_slice %261 {offsets = [0, 7, 0], sizes = [4, 1, 8], strides = [1, 1, 1]} : vector<4x8x8xf32> to vector<4x1x8xf32>
    %265 = vector.extract_strided_slice %261 {offsets = [0, 7, 0], sizes = [4, 1, 8], strides = [1, 1, 1]} : vector<4x8x8xf32> to vector<4x1x8xf32>
    %266 = tpu.concatenate %262, %263, %261, %264, %265 in 1 : vector<4x1x8xf32>, vector<4x1x8xf32>, vector<4x8x8xf32>, vector<4x1x8xf32>, vector<4x1x8xf32> -> vector<4x12x8xf32>
    %267 = vector.extract_strided_slice %266 {offsets = [0, 0, 0], sizes = [4, 8, 8], strides = [1, 1, 1]} : vector<4x12x8xf32> to vector<4x8x8xf32>
    %268 = vector.extract_strided_slice %266 {offsets = [0, 1, 0], sizes = [4, 8, 8], strides = [1, 1, 1]} : vector<4x12x8xf32> to vector<4x8x8xf32>
    %269 = arith.addf %267, %268 : vector<4x8x8xf32>
    %270 = vector.extract_strided_slice %266 {offsets = [0, 2, 0], sizes = [4, 8, 8], strides = [1, 1, 1]} : vector<4x12x8xf32> to vector<4x8x8xf32>
    %271 = arith.addf %269, %270 : vector<4x8x8xf32>
    %272 = vector.extract_strided_slice %266 {offsets = [0, 3, 0], sizes = [4, 8, 8], strides = [1, 1, 1]} : vector<4x12x8xf32> to vector<4x8x8xf32>
    %273 = arith.addf %271, %272 : vector<4x8x8xf32>
    %274 = vector.extract_strided_slice %266 {offsets = [0, 4, 0], sizes = [4, 8, 8], strides = [1, 1, 1]} : vector<4x12x8xf32> to vector<4x8x8xf32>
    %275 = arith.addf %273, %274 : vector<4x8x8xf32>
    %cst_72 = arith.constant 8.000000e-03 : f32
    %276 = vector.broadcast %cst_72 : f32 to vector<4x8x8xf32>
    %277 = arith.mulf %275, %276 : vector<4x8x8xf32>
    %c0_73 = arith.constant 0 : index
    %c5 = arith.constant 5 : index
    %c0_74 = arith.constant 0 : index
    %c0_75 = arith.constant 0 : index
    %c0_76 = arith.constant 0 : index
    %278 = vector.load %arg4[%c0_73, %c5, %c0_74, %c0_75, %c0_76] : memref<1x12x4x8x8xf32, #tpu.memory_space<vmem>>, vector<1x1x4x8x8xf32>
    %279 = vector.shape_cast %278 : vector<1x1x4x8x8xf32> to vector<4x8x8xf32>
    %280 = vector.shape_cast %277 : vector<4x8x8xf32> to vector<1x1x4x8x8xf32>
    tpu.vector_store %arg4[%c0_73, %c5, %c0_74, %c0_75, %c0_76], %280 {strides = array<i32>} : memref<1x12x4x8x8xf32, #tpu.memory_space<vmem>>, vector<1x1x4x8x8xf32>,
    %281 = arith.minimumf %245, %277 : vector<4x8x8xf32>
    %282 = arith.addf %246, %277 : vector<4x8x8xf32>
    %283 = arith.subf %58, %38 : vector<8x8x8xf32>
    %284 = arith.mulf %283, %283 : vector<8x8x8xf32>
    %285 = vector.extract_strided_slice %284 {offsets = [0, 0, 0], sizes = [4, 8, 8], strides = [1, 1, 1]} : vector<8x8x8xf32> to vector<4x8x8xf32>
    %286 = vector.extract_strided_slice %284 {offsets = [1, 0, 0], sizes = [4, 8, 8], strides = [1, 1, 1]} : vector<8x8x8xf32> to vector<4x8x8xf32>
    %287 = arith.addf %285, %286 : vector<4x8x8xf32>
    %288 = vector.extract_strided_slice %284 {offsets = [2, 0, 0], sizes = [4, 8, 8], strides = [1, 1, 1]} : vector<8x8x8xf32> to vector<4x8x8xf32>
    %289 = arith.addf %287, %288 : vector<4x8x8xf32>
    %290 = vector.extract_strided_slice %284 {offsets = [3, 0, 0], sizes = [4, 8, 8], strides = [1, 1, 1]} : vector<8x8x8xf32> to vector<4x8x8xf32>
    %291 = arith.addf %289, %290 : vector<4x8x8xf32>
    %292 = vector.extract_strided_slice %284 {offsets = [4, 0, 0], sizes = [4, 8, 8], strides = [1, 1, 1]} : vector<8x8x8xf32> to vector<4x8x8xf32>
    %293 = arith.addf %291, %292 : vector<4x8x8xf32>
    %294 = vector.shape_cast %293 : vector<4x8x8xf32> to vector<32x8xf32>
    %c0_77 = arith.constant 0 : index
    %c0_78 = arith.constant 0 : index
    %295 = vector.load %arg3[%c0_77, %c0_78] : memref<8x8xf32, #tpu.memory_space<vmem>>, vector<8x8xf32>
    %cst_79 = arith.constant dense<0.000000e+00> : vector<32x8xf32>
    %296 = tpu.matmul %294, %295, %cst_79 {dimension_numbers = #tpu.dot_dimension_numbers<[1], [0], [0], [1], [0, 0, 1, 1], [], []>} : vector<32x8xf32>, vector<8x8xf32>, vector<32x8xf32> -> vector<32x8xf32>
    %297 = vector.shape_cast %296 : vector<32x8xf32> to vector<4x8x8xf32>
    %298 = vector.extract_strided_slice %297 {offsets = [0, 0, 0], sizes = [4, 1, 8], strides = [1, 1, 1]} : vector<4x8x8xf32> to vector<4x1x8xf32>
    %299 = vector.extract_strided_slice %297 {offsets = [0, 0, 0], sizes = [4, 1, 8], strides = [1, 1, 1]} : vector<4x8x8xf32> to vector<4x1x8xf32>
    %300 = vector.extract_strided_slice %297 {offsets = [0, 7, 0], sizes = [4, 1, 8], strides = [1, 1, 1]} : vector<4x8x8xf32> to vector<4x1x8xf32>
    %301 = vector.extract_strided_slice %297 {offsets = [0, 7, 0], sizes = [4, 1, 8], strides = [1, 1, 1]} : vector<4x8x8xf32> to vector<4x1x8xf32>
    %302 = tpu.concatenate %298, %299, %297, %300, %301 in 1 : vector<4x1x8xf32>, vector<4x1x8xf32>, vector<4x8x8xf32>, vector<4x1x8xf32>, vector<4x1x8xf32> -> vector<4x12x8xf32>
    %303 = vector.extract_strided_slice %302 {offsets = [0, 0, 0], sizes = [4, 8, 8], strides = [1, 1, 1]} : vector<4x12x8xf32> to vector<4x8x8xf32>
    %304 = vector.extract_strided_slice %302 {offsets = [0, 1, 0], sizes = [4, 8, 8], strides = [1, 1, 1]} : vector<4x12x8xf32> to vector<4x8x8xf32>
    %305 = arith.addf %303, %304 : vector<4x8x8xf32>
    %306 = vector.extract_strided_slice %302 {offsets = [0, 2, 0], sizes = [4, 8, 8], strides = [1, 1, 1]} : vector<4x12x8xf32> to vector<4x8x8xf32>
    %307 = arith.addf %305, %306 : vector<4x8x8xf32>
    %308 = vector.extract_strided_slice %302 {offsets = [0, 3, 0], sizes = [4, 8, 8], strides = [1, 1, 1]} : vector<4x12x8xf32> to vector<4x8x8xf32>
    %309 = arith.addf %307, %308 : vector<4x8x8xf32>
    %310 = vector.extract_strided_slice %302 {offsets = [0, 4, 0], sizes = [4, 8, 8], strides = [1, 1, 1]} : vector<4x12x8xf32> to vector<4x8x8xf32>
    %311 = arith.addf %309, %310 : vector<4x8x8xf32>
    %cst_80 = arith.constant 8.000000e-03 : f32
    %312 = vector.broadcast %cst_80 : f32 to vector<4x8x8xf32>
    %313 = arith.mulf %311, %312 : vector<4x8x8xf32>
    %c0_81 = arith.constant 0 : index
    %c6 = arith.constant 6 : index
    %c0_82 = arith.constant 0 : index
    %c0_83 = arith.constant 0 : index
    %c0_84 = arith.constant 0 : index
    %314 = vector.load %arg4[%c0_81, %c6, %c0_82, %c0_83, %c0_84] : memref<1x12x4x8x8xf32, #tpu.memory_space<vmem>>, vector<1x1x4x8x8xf32>
    %315 = vector.shape_cast %314 : vector<1x1x4x8x8xf32> to vector<4x8x8xf32>
    %316 = vector.shape_cast %313 : vector<4x8x8xf32> to vector<1x1x4x8x8xf32>
    tpu.vector_store %arg4[%c0_81, %c6, %c0_82, %c0_83, %c0_84], %316 {strides = array<i32>} : memref<1x12x4x8x8xf32, #tpu.memory_space<vmem>>, vector<1x1x4x8x8xf32>,
    %317 = arith.minimumf %281, %313 : vector<4x8x8xf32>
    %318 = arith.addf %282, %313 : vector<4x8x8xf32>
    %319 = arith.subf %58, %48 : vector<8x8x8xf32>
    %320 = arith.mulf %319, %319 : vector<8x8x8xf32>
    %321 = vector.extract_strided_slice %320 {offsets = [0, 0, 0], sizes = [4, 8, 8], strides = [1, 1, 1]} : vector<8x8x8xf32> to vector<4x8x8xf32>
    %322 = vector.extract_strided_slice %320 {offsets = [1, 0, 0], sizes = [4, 8, 8], strides = [1, 1, 1]} : vector<8x8x8xf32> to vector<4x8x8xf32>
    %323 = arith.addf %321, %322 : vector<4x8x8xf32>
    %324 = vector.extract_strided_slice %320 {offsets = [2, 0, 0], sizes = [4, 8, 8], strides = [1, 1, 1]} : vector<8x8x8xf32> to vector<4x8x8xf32>
    %325 = arith.addf %323, %324 : vector<4x8x8xf32>
    %326 = vector.extract_strided_slice %320 {offsets = [3, 0, 0], sizes = [4, 8, 8], strides = [1, 1, 1]} : vector<8x8x8xf32> to vector<4x8x8xf32>
    %327 = arith.addf %325, %326 : vector<4x8x8xf32>
    %328 = vector.extract_strided_slice %320 {offsets = [4, 0, 0], sizes = [4, 8, 8], strides = [1, 1, 1]} : vector<8x8x8xf32> to vector<4x8x8xf32>
    %329 = arith.addf %327, %328 : vector<4x8x8xf32>
    %330 = vector.shape_cast %329 : vector<4x8x8xf32> to vector<32x8xf32>
    %c0_85 = arith.constant 0 : index
    %c0_86 = arith.constant 0 : index
    %331 = vector.load %arg3[%c0_85, %c0_86] : memref<8x8xf32, #tpu.memory_space<vmem>>, vector<8x8xf32>
    %cst_87 = arith.constant dense<0.000000e+00> : vector<32x8xf32>
    %332 = tpu.matmul %330, %331, %cst_87 {dimension_numbers = #tpu.dot_dimension_numbers<[1], [0], [0], [1], [0, 0, 1, 1], [], []>} : vector<32x8xf32>, vector<8x8xf32>, vector<32x8xf32> -> vector<32x8xf32>
    %333 = vector.shape_cast %332 : vector<32x8xf32> to vector<4x8x8xf32>
    %334 = vector.extract_strided_slice %333 {offsets = [0, 0, 0], sizes = [4, 1, 8], strides = [1, 1, 1]} : vector<4x8x8xf32> to vector<4x1x8xf32>
    %335 = vector.extract_strided_slice %333 {offsets = [0, 0, 0], sizes = [4, 1, 8], strides = [1, 1, 1]} : vector<4x8x8xf32> to vector<4x1x8xf32>
    %336 = vector.extract_strided_slice %333 {offsets = [0, 7, 0], sizes = [4, 1, 8], strides = [1, 1, 1]} : vector<4x8x8xf32> to vector<4x1x8xf32>
    %337 = vector.extract_strided_slice %333 {offsets = [0, 7, 0], sizes = [4, 1, 8], strides = [1, 1, 1]} : vector<4x8x8xf32> to vector<4x1x8xf32>
    %338 = tpu.concatenate %334, %335, %333, %336, %337 in 1 : vector<4x1x8xf32>, vector<4x1x8xf32>, vector<4x8x8xf32>, vector<4x1x8xf32>, vector<4x1x8xf32> -> vector<4x12x8xf32>
    %339 = vector.extract_strided_slice %338 {offsets = [0, 0, 0], sizes = [4, 8, 8], strides = [1, 1, 1]} : vector<4x12x8xf32> to vector<4x8x8xf32>
    %340 = vector.extract_strided_slice %338 {offsets = [0, 1, 0], sizes = [4, 8, 8], strides = [1, 1, 1]} : vector<4x12x8xf32> to vector<4x8x8xf32>
    %341 = arith.addf %339, %340 : vector<4x8x8xf32>
    %342 = vector.extract_strided_slice %338 {offsets = [0, 2, 0], sizes = [4, 8, 8], strides = [1, 1, 1]} : vector<4x12x8xf32> to vector<4x8x8xf32>
    %343 = arith.addf %341, %342 : vector<4x8x8xf32>
    %344 = vector.extract_strided_slice %338 {offsets = [0, 3, 0], sizes = [4, 8, 8], strides = [1, 1, 1]} : vector<4x12x8xf32> to vector<4x8x8xf32>
    %345 = arith.addf %343, %344 : vector<4x8x8xf32>
    %346 = vector.extract_strided_slice %338 {offsets = [0, 4, 0], sizes = [4, 8, 8], strides = [1, 1, 1]} : vector<4x12x8xf32> to vector<4x8x8xf32>
    %347 = arith.addf %345, %346 : vector<4x8x8xf32>
    %cst_88 = arith.constant 8.000000e-03 : f32
    %348 = vector.broadcast %cst_88 : f32 to vector<4x8x8xf32>
    %349 = arith.mulf %347, %348 : vector<4x8x8xf32>
    %c0_89 = arith.constant 0 : index
    %c7 = arith.constant 7 : index
    %c0_90 = arith.constant 0 : index
    %c0_91 = arith.constant 0 : index
    %c0_92 = arith.constant 0 : index
    %350 = vector.load %arg4[%c0_89, %c7, %c0_90, %c0_91, %c0_92] : memref<1x12x4x8x8xf32, #tpu.memory_space<vmem>>, vector<1x1x4x8x8xf32>
    %351 = vector.shape_cast %350 : vector<1x1x4x8x8xf32> to vector<4x8x8xf32>
    %352 = vector.shape_cast %349 : vector<4x8x8xf32> to vector<1x1x4x8x8xf32>
    tpu.vector_store %arg4[%c0_89, %c7, %c0_90, %c0_91, %c0_92], %352 {strides = array<i32>} : memref<1x12x4x8x8xf32, #tpu.memory_space<vmem>>, vector<1x1x4x8x8xf32>,
    %353 = arith.minimumf %317, %349 : vector<4x8x8xf32>
    %354 = arith.addf %318, %349 : vector<4x8x8xf32>
    %355 = arith.subf %68, %18 : vector<8x8x8xf32>
    %356 = arith.mulf %355, %355 : vector<8x8x8xf32>
    %357 = vector.extract_strided_slice %356 {offsets = [0, 0, 0], sizes = [4, 8, 8], strides = [1, 1, 1]} : vector<8x8x8xf32> to vector<4x8x8xf32>
    %358 = vector.extract_strided_slice %356 {offsets = [1, 0, 0], sizes = [4, 8, 8], strides = [1, 1, 1]} : vector<8x8x8xf32> to vector<4x8x8xf32>
    %359 = arith.addf %357, %358 : vector<4x8x8xf32>
    %360 = vector.extract_strided_slice %356 {offsets = [2, 0, 0], sizes = [4, 8, 8], strides = [1, 1, 1]} : vector<8x8x8xf32> to vector<4x8x8xf32>
    %361 = arith.addf %359, %360 : vector<4x8x8xf32>
    %362 = vector.extract_strided_slice %356 {offsets = [3, 0, 0], sizes = [4, 8, 8], strides = [1, 1, 1]} : vector<8x8x8xf32> to vector<4x8x8xf32>
    %363 = arith.addf %361, %362 : vector<4x8x8xf32>
    %364 = vector.extract_strided_slice %356 {offsets = [4, 0, 0], sizes = [4, 8, 8], strides = [1, 1, 1]} : vector<8x8x8xf32> to vector<4x8x8xf32>
    %365 = arith.addf %363, %364 : vector<4x8x8xf32>
    %366 = vector.shape_cast %365 : vector<4x8x8xf32> to vector<32x8xf32>
    %c0_93 = arith.constant 0 : index
    %c0_94 = arith.constant 0 : index
    %367 = vector.load %arg3[%c0_93, %c0_94] : memref<8x8xf32, #tpu.memory_space<vmem>>, vector<8x8xf32>
    %cst_95 = arith.constant dense<0.000000e+00> : vector<32x8xf32>
    %368 = tpu.matmul %366, %367, %cst_95 {dimension_numbers = #tpu.dot_dimension_numbers<[1], [0], [0], [1], [0, 0, 1, 1], [], []>} : vector<32x8xf32>, vector<8x8xf32>, vector<32x8xf32> -> vector<32x8xf32>
    %369 = vector.shape_cast %368 : vector<32x8xf32> to vector<4x8x8xf32>
    %370 = vector.extract_strided_slice %369 {offsets = [0, 0, 0], sizes = [4, 1, 8], strides = [1, 1, 1]} : vector<4x8x8xf32> to vector<4x1x8xf32>
    %371 = vector.extract_strided_slice %369 {offsets = [0, 0, 0], sizes = [4, 1, 8], strides = [1, 1, 1]} : vector<4x8x8xf32> to vector<4x1x8xf32>
    %372 = vector.extract_strided_slice %369 {offsets = [0, 7, 0], sizes = [4, 1, 8], strides = [1, 1, 1]} : vector<4x8x8xf32> to vector<4x1x8xf32>
    %373 = vector.extract_strided_slice %369 {offsets = [0, 7, 0], sizes = [4, 1, 8], strides = [1, 1, 1]} : vector<4x8x8xf32> to vector<4x1x8xf32>
    %374 = tpu.concatenate %370, %371, %369, %372, %373 in 1 : vector<4x1x8xf32>, vector<4x1x8xf32>, vector<4x8x8xf32>, vector<4x1x8xf32>, vector<4x1x8xf32> -> vector<4x12x8xf32>
    %375 = vector.extract_strided_slice %374 {offsets = [0, 0, 0], sizes = [4, 8, 8], strides = [1, 1, 1]} : vector<4x12x8xf32> to vector<4x8x8xf32>
    %376 = vector.extract_strided_slice %374 {offsets = [0, 1, 0], sizes = [4, 8, 8], strides = [1, 1, 1]} : vector<4x12x8xf32> to vector<4x8x8xf32>
    %377 = arith.addf %375, %376 : vector<4x8x8xf32>
    %378 = vector.extract_strided_slice %374 {offsets = [0, 2, 0], sizes = [4, 8, 8], strides = [1, 1, 1]} : vector<4x12x8xf32> to vector<4x8x8xf32>
    %379 = arith.addf %377, %378 : vector<4x8x8xf32>
    %380 = vector.extract_strided_slice %374 {offsets = [0, 3, 0], sizes = [4, 8, 8], strides = [1, 1, 1]} : vector<4x12x8xf32> to vector<4x8x8xf32>
    %381 = arith.addf %379, %380 : vector<4x8x8xf32>
    %382 = vector.extract_strided_slice %374 {offsets = [0, 4, 0], sizes = [4, 8, 8], strides = [1, 1, 1]} : vector<4x12x8xf32> to vector<4x8x8xf32>
    %383 = arith.addf %381, %382 : vector<4x8x8xf32>
    %cst_96 = arith.constant 8.000000e-03 : f32
    %384 = vector.broadcast %cst_96 : f32 to vector<4x8x8xf32>
    %385 = arith.mulf %383, %384 : vector<4x8x8xf32>
    %c0_97 = arith.constant 0 : index
    %c8 = arith.constant 8 : index
    %c0_98 = arith.constant 0 : index
    %c0_99 = arith.constant 0 : index
    %c0_100 = arith.constant 0 : index
    %386 = vector.load %arg4[%c0_97, %c8, %c0_98, %c0_99, %c0_100] : memref<1x12x4x8x8xf32, #tpu.memory_space<vmem>>, vector<1x1x4x8x8xf32>
    %387 = vector.shape_cast %386 : vector<1x1x4x8x8xf32> to vector<4x8x8xf32>
    %388 = vector.shape_cast %385 : vector<4x8x8xf32> to vector<1x1x4x8x8xf32>
    tpu.vector_store %arg4[%c0_97, %c8, %c0_98, %c0_99, %c0_100], %388 {strides = array<i32>} : memref<1x12x4x8x8xf32, #tpu.memory_space<vmem>>, vector<1x1x4x8x8xf32>,
    %389 = arith.minimumf %353, %385 : vector<4x8x8xf32>
    %390 = arith.addf %354, %385 : vector<4x8x8xf32>
    %391 = arith.subf %68, %28 : vector<8x8x8xf32>
    %392 = arith.mulf %391, %391 : vector<8x8x8xf32>
    %393 = vector.extract_strided_slice %392 {offsets = [0, 0, 0], sizes = [4, 8, 8], strides = [1, 1, 1]} : vector<8x8x8xf32> to vector<4x8x8xf32>
    %394 = vector.extract_strided_slice %392 {offsets = [1, 0, 0], sizes = [4, 8, 8], strides = [1, 1, 1]} : vector<8x8x8xf32> to vector<4x8x8xf32>
    %395 = arith.addf %393, %394 : vector<4x8x8xf32>
    %396 = vector.extract_strided_slice %392 {offsets = [2, 0, 0], sizes = [4, 8, 8], strides = [1, 1, 1]} : vector<8x8x8xf32> to vector<4x8x8xf32>
    %397 = arith.addf %395, %396 : vector<4x8x8xf32>
    %398 = vector.extract_strided_slice %392 {offsets = [3, 0, 0], sizes = [4, 8, 8], strides = [1, 1, 1]} : vector<8x8x8xf32> to vector<4x8x8xf32>
    %399 = arith.addf %397, %398 : vector<4x8x8xf32>
    %400 = vector.extract_strided_slice %392 {offsets = [4, 0, 0], sizes = [4, 8, 8], strides = [1, 1, 1]} : vector<8x8x8xf32> to vector<4x8x8xf32>
    %401 = arith.addf %399, %400 : vector<4x8x8xf32>
    %402 = vector.shape_cast %401 : vector<4x8x8xf32> to vector<32x8xf32>
    %c0_101 = arith.constant 0 : index
    %c0_102 = arith.constant 0 : index
    %403 = vector.load %arg3[%c0_101, %c0_102] : memref<8x8xf32, #tpu.memory_space<vmem>>, vector<8x8xf32>
    %cst_103 = arith.constant dense<0.000000e+00> : vector<32x8xf32>
    %404 = tpu.matmul %402, %403, %cst_103 {dimension_numbers = #tpu.dot_dimension_numbers<[1], [0], [0], [1], [0, 0, 1, 1], [], []>} : vector<32x8xf32>, vector<8x8xf32>, vector<32x8xf32> -> vector<32x8xf32>
    %405 = vector.shape_cast %404 : vector<32x8xf32> to vector<4x8x8xf32>
    %406 = vector.extract_strided_slice %405 {offsets = [0, 0, 0], sizes = [4, 1, 8], strides = [1, 1, 1]} : vector<4x8x8xf32> to vector<4x1x8xf32>
    %407 = vector.extract_strided_slice %405 {offsets = [0, 0, 0], sizes = [4, 1, 8], strides = [1, 1, 1]} : vector<4x8x8xf32> to vector<4x1x8xf32>
    %408 = vector.extract_strided_slice %405 {offsets = [0, 7, 0], sizes = [4, 1, 8], strides = [1, 1, 1]} : vector<4x8x8xf32> to vector<4x1x8xf32>
    %409 = vector.extract_strided_slice %405 {offsets = [0, 7, 0], sizes = [4, 1, 8], strides = [1, 1, 1]} : vector<4x8x8xf32> to vector<4x1x8xf32>
    %410 = tpu.concatenate %406, %407, %405, %408, %409 in 1 : vector<4x1x8xf32>, vector<4x1x8xf32>, vector<4x8x8xf32>, vector<4x1x8xf32>, vector<4x1x8xf32> -> vector<4x12x8xf32>
    %411 = vector.extract_strided_slice %410 {offsets = [0, 0, 0], sizes = [4, 8, 8], strides = [1, 1, 1]} : vector<4x12x8xf32> to vector<4x8x8xf32>
    %412 = vector.extract_strided_slice %410 {offsets = [0, 1, 0], sizes = [4, 8, 8], strides = [1, 1, 1]} : vector<4x12x8xf32> to vector<4x8x8xf32>
    %413 = arith.addf %411, %412 : vector<4x8x8xf32>
    %414 = vector.extract_strided_slice %410 {offsets = [0, 2, 0], sizes = [4, 8, 8], strides = [1, 1, 1]} : vector<4x12x8xf32> to vector<4x8x8xf32>
    %415 = arith.addf %413, %414 : vector<4x8x8xf32>
    %416 = vector.extract_strided_slice %410 {offsets = [0, 3, 0], sizes = [4, 8, 8], strides = [1, 1, 1]} : vector<4x12x8xf32> to vector<4x8x8xf32>
    %417 = arith.addf %415, %416 : vector<4x8x8xf32>
    %418 = vector.extract_strided_slice %410 {offsets = [0, 4, 0], sizes = [4, 8, 8], strides = [1, 1, 1]} : vector<4x12x8xf32> to vector<4x8x8xf32>
    %419 = arith.addf %417, %418 : vector<4x8x8xf32>
    %cst_104 = arith.constant 8.000000e-03 : f32
    %420 = vector.broadcast %cst_104 : f32 to vector<4x8x8xf32>
    %421 = arith.mulf %419, %420 : vector<4x8x8xf32>
    %c0_105 = arith.constant 0 : index
    %c9 = arith.constant 9 : index
    %c0_106 = arith.constant 0 : index
    %c0_107 = arith.constant 0 : index
    %c0_108 = arith.constant 0 : index
    %422 = vector.load %arg4[%c0_105, %c9, %c0_106, %c0_107, %c0_108] : memref<1x12x4x8x8xf32, #tpu.memory_space<vmem>>, vector<1x1x4x8x8xf32>
    %423 = vector.shape_cast %422 : vector<1x1x4x8x8xf32> to vector<4x8x8xf32>
    %424 = vector.shape_cast %421 : vector<4x8x8xf32> to vector<1x1x4x8x8xf32>
    tpu.vector_store %arg4[%c0_105, %c9, %c0_106, %c0_107, %c0_108], %424 {strides = array<i32>} : memref<1x12x4x8x8xf32, #tpu.memory_space<vmem>>, vector<1x1x4x8x8xf32>,
    %425 = arith.minimumf %389, %421 : vector<4x8x8xf32>
    %426 = arith.addf %390, %421 : vector<4x8x8xf32>
    %427 = arith.subf %68, %48 : vector<8x8x8xf32>
    %428 = arith.mulf %427, %427 : vector<8x8x8xf32>
    %429 = vector.extract_strided_slice %428 {offsets = [0, 0, 0], sizes = [4, 8, 8], strides = [1, 1, 1]} : vector<8x8x8xf32> to vector<4x8x8xf32>
    %430 = vector.extract_strided_slice %428 {offsets = [1, 0, 0], sizes = [4, 8, 8], strides = [1, 1, 1]} : vector<8x8x8xf32> to vector<4x8x8xf32>
    %431 = arith.addf %429, %430 : vector<4x8x8xf32>
    %432 = vector.extract_strided_slice %428 {offsets = [2, 0, 0], sizes = [4, 8, 8], strides = [1, 1, 1]} : vector<8x8x8xf32> to vector<4x8x8xf32>
    %433 = arith.addf %431, %432 : vector<4x8x8xf32>
    %434 = vector.extract_strided_slice %428 {offsets = [3, 0, 0], sizes = [4, 8, 8], strides = [1, 1, 1]} : vector<8x8x8xf32> to vector<4x8x8xf32>
    %435 = arith.addf %433, %434 : vector<4x8x8xf32>
    %436 = vector.extract_strided_slice %428 {offsets = [4, 0, 0], sizes = [4, 8, 8], strides = [1, 1, 1]} : vector<8x8x8xf32> to vector<4x8x8xf32>
    %437 = arith.addf %435, %436 : vector<4x8x8xf32>
    %438 = vector.shape_cast %437 : vector<4x8x8xf32> to vector<32x8xf32>
    %c0_109 = arith.constant 0 : index
    %c0_110 = arith.constant 0 : index
    %439 = vector.load %arg3[%c0_109, %c0_110] : memref<8x8xf32, #tpu.memory_space<vmem>>, vector<8x8xf32>
    %cst_111 = arith.constant dense<0.000000e+00> : vector<32x8xf32>
    %440 = tpu.matmul %438, %439, %cst_111 {dimension_numbers = #tpu.dot_dimension_numbers<[1], [0], [0], [1], [0, 0, 1, 1], [], []>} : vector<32x8xf32>, vector<8x8xf32>, vector<32x8xf32> -> vector<32x8xf32>
    %441 = vector.shape_cast %440 : vector<32x8xf32> to vector<4x8x8xf32>
    %442 = vector.extract_strided_slice %441 {offsets = [0, 0, 0], sizes = [4, 1, 8], strides = [1, 1, 1]} : vector<4x8x8xf32> to vector<4x1x8xf32>
    %443 = vector.extract_strided_slice %441 {offsets = [0, 0, 0], sizes = [4, 1, 8], strides = [1, 1, 1]} : vector<4x8x8xf32> to vector<4x1x8xf32>
    %444 = vector.extract_strided_slice %441 {offsets = [0, 7, 0], sizes = [4, 1, 8], strides = [1, 1, 1]} : vector<4x8x8xf32> to vector<4x1x8xf32>
    %445 = vector.extract_strided_slice %441 {offsets = [0, 7, 0], sizes = [4, 1, 8], strides = [1, 1, 1]} : vector<4x8x8xf32> to vector<4x1x8xf32>
    %446 = tpu.concatenate %442, %443, %441, %444, %445 in 1 : vector<4x1x8xf32>, vector<4x1x8xf32>, vector<4x8x8xf32>, vector<4x1x8xf32>, vector<4x1x8xf32> -> vector<4x12x8xf32>
    %447 = vector.extract_strided_slice %446 {offsets = [0, 0, 0], sizes = [4, 8, 8], strides = [1, 1, 1]} : vector<4x12x8xf32> to vector<4x8x8xf32>
    %448 = vector.extract_strided_slice %446 {offsets = [0, 1, 0], sizes = [4, 8, 8], strides = [1, 1, 1]} : vector<4x12x8xf32> to vector<4x8x8xf32>
    %449 = arith.addf %447, %448 : vector<4x8x8xf32>
    %450 = vector.extract_strided_slice %446 {offsets = [0, 2, 0], sizes = [4, 8, 8], strides = [1, 1, 1]} : vector<4x12x8xf32> to vector<4x8x8xf32>
    %451 = arith.addf %449, %450 : vector<4x8x8xf32>
    %452 = vector.extract_strided_slice %446 {offsets = [0, 3, 0], sizes = [4, 8, 8], strides = [1, 1, 1]} : vector<4x12x8xf32> to vector<4x8x8xf32>
    %453 = arith.addf %451, %452 : vector<4x8x8xf32>
    %454 = vector.extract_strided_slice %446 {offsets = [0, 4, 0], sizes = [4, 8, 8], strides = [1, 1, 1]} : vector<4x12x8xf32> to vector<4x8x8xf32>
    %455 = arith.addf %453, %454 : vector<4x8x8xf32>
    %cst_112 = arith.constant 8.000000e-03 : f32
    %456 = vector.broadcast %cst_112 : f32 to vector<4x8x8xf32>
    %457 = arith.mulf %455, %456 : vector<4x8x8xf32>
    %c0_113 = arith.constant 0 : index
    %c10 = arith.constant 10 : index
    %c0_114 = arith.constant 0 : index
    %c0_115 = arith.constant 0 : index
    %c0_116 = arith.constant 0 : index
    %458 = vector.load %arg4[%c0_113, %c10, %c0_114, %c0_115, %c0_116] : memref<1x12x4x8x8xf32, #tpu.memory_space<vmem>>, vector<1x1x4x8x8xf32>
    %459 = vector.shape_cast %458 : vector<1x1x4x8x8xf32> to vector<4x8x8xf32>
    %460 = vector.shape_cast %457 : vector<4x8x8xf32> to vector<1x1x4x8x8xf32>
    tpu.vector_store %arg4[%c0_113, %c10, %c0_114, %c0_115, %c0_116], %460 {strides = array<i32>} : memref<1x12x4x8x8xf32, #tpu.memory_space<vmem>>, vector<1x1x4x8x8xf32>,
    %461 = arith.minimumf %425, %457 : vector<4x8x8xf32>
    %462 = arith.addf %426, %457 : vector<4x8x8xf32>
    %463 = arith.subf %68, %58 : vector<8x8x8xf32>
    %464 = arith.mulf %463, %463 : vector<8x8x8xf32>
    %465 = vector.extract_strided_slice %464 {offsets = [0, 0, 0], sizes = [4, 8, 8], strides = [1, 1, 1]} : vector<8x8x8xf32> to vector<4x8x8xf32>
    %466 = vector.extract_strided_slice %464 {offsets = [1, 0, 0], sizes = [4, 8, 8], strides = [1, 1, 1]} : vector<8x8x8xf32> to vector<4x8x8xf32>
    %467 = arith.addf %465, %466 : vector<4x8x8xf32>
    %468 = vector.extract_strided_slice %464 {offsets = [2, 0, 0], sizes = [4, 8, 8], strides = [1, 1, 1]} : vector<8x8x8xf32> to vector<4x8x8xf32>
    %469 = arith.addf %467, %468 : vector<4x8x8xf32>
    %470 = vector.extract_strided_slice %464 {offsets = [3, 0, 0], sizes = [4, 8, 8], strides = [1, 1, 1]} : vector<8x8x8xf32> to vector<4x8x8xf32>
    %471 = arith.addf %469, %470 : vector<4x8x8xf32>
    %472 = vector.extract_strided_slice %464 {offsets = [4, 0, 0], sizes = [4, 8, 8], strides = [1, 1, 1]} : vector<8x8x8xf32> to vector<4x8x8xf32>
    %473 = arith.addf %471, %472 : vector<4x8x8xf32>
    %474 = vector.shape_cast %473 : vector<4x8x8xf32> to vector<32x8xf32>
    %c0_117 = arith.constant 0 : index
    %c0_118 = arith.constant 0 : index
    %475 = vector.load %arg3[%c0_117, %c0_118] : memref<8x8xf32, #tpu.memory_space<vmem>>, vector<8x8xf32>
    %cst_119 = arith.constant dense<0.000000e+00> : vector<32x8xf32>
    %476 = tpu.matmul %474, %475, %cst_119 {dimension_numbers = #tpu.dot_dimension_numbers<[1], [0], [0], [1], [0, 0, 1, 1], [], []>} : vector<32x8xf32>, vector<8x8xf32>, vector<32x8xf32> -> vector<32x8xf32>
    %477 = vector.shape_cast %476 : vector<32x8xf32> to vector<4x8x8xf32>
    %478 = vector.extract_strided_slice %477 {offsets = [0, 0, 0], sizes = [4, 1, 8], strides = [1, 1, 1]} : vector<4x8x8xf32> to vector<4x1x8xf32>
    %479 = vector.extract_strided_slice %477 {offsets = [0, 0, 0], sizes = [4, 1, 8], strides = [1, 1, 1]} : vector<4x8x8xf32> to vector<4x1x8xf32>
    %480 = vector.extract_strided_slice %477 {offsets = [0, 7, 0], sizes = [4, 1, 8], strides = [1, 1, 1]} : vector<4x8x8xf32> to vector<4x1x8xf32>
    %481 = vector.extract_strided_slice %477 {offsets = [0, 7, 0], sizes = [4, 1, 8], strides = [1, 1, 1]} : vector<4x8x8xf32> to vector<4x1x8xf32>
    %482 = tpu.concatenate %478, %479, %477, %480, %481 in 1 : vector<4x1x8xf32>, vector<4x1x8xf32>, vector<4x8x8xf32>, vector<4x1x8xf32>, vector<4x1x8xf32> -> vector<4x12x8xf32>
    %483 = vector.extract_strided_slice %482 {offsets = [0, 0, 0], sizes = [4, 8, 8], strides = [1, 1, 1]} : vector<4x12x8xf32> to vector<4x8x8xf32>
    %484 = vector.extract_strided_slice %482 {offsets = [0, 1, 0], sizes = [4, 8, 8], strides = [1, 1, 1]} : vector<4x12x8xf32> to vector<4x8x8xf32>
    %485 = arith.addf %483, %484 : vector<4x8x8xf32>
    %486 = vector.extract_strided_slice %482 {offsets = [0, 2, 0], sizes = [4, 8, 8], strides = [1, 1, 1]} : vector<4x12x8xf32> to vector<4x8x8xf32>
    %487 = arith.addf %485, %486 : vector<4x8x8xf32>
    %488 = vector.extract_strided_slice %482 {offsets = [0, 3, 0], sizes = [4, 8, 8], strides = [1, 1, 1]} : vector<4x12x8xf32> to vector<4x8x8xf32>
    %489 = arith.addf %487, %488 : vector<4x8x8xf32>
    %490 = vector.extract_strided_slice %482 {offsets = [0, 4, 0], sizes = [4, 8, 8], strides = [1, 1, 1]} : vector<4x12x8xf32> to vector<4x8x8xf32>
    %491 = arith.addf %489, %490 : vector<4x8x8xf32>
    %cst_120 = arith.constant 8.000000e-03 : f32
    %492 = vector.broadcast %cst_120 : f32 to vector<4x8x8xf32>
    %493 = arith.mulf %491, %492 : vector<4x8x8xf32>
    %c0_121 = arith.constant 0 : index
    %c11 = arith.constant 11 : index
    %c0_122 = arith.constant 0 : index
    %c0_123 = arith.constant 0 : index
    %c0_124 = arith.constant 0 : index
    %494 = vector.load %arg4[%c0_121, %c11, %c0_122, %c0_123, %c0_124] : memref<1x12x4x8x8xf32, #tpu.memory_space<vmem>>, vector<1x1x4x8x8xf32>
    %495 = vector.shape_cast %494 : vector<1x1x4x8x8xf32> to vector<4x8x8xf32>
    %496 = vector.shape_cast %493 : vector<4x8x8xf32> to vector<1x1x4x8x8xf32>
    tpu.vector_store %arg4[%c0_121, %c11, %c0_122, %c0_123, %c0_124], %496 {strides = array<i32>} : memref<1x12x4x8x8xf32, #tpu.memory_space<vmem>>, vector<1x1x4x8x8xf32>,
    %497 = arith.minimumf %461, %493 : vector<4x8x8xf32>
    %498 = arith.addf %462, %493 : vector<4x8x8xf32>
    %cst_125 = arith.constant 0.0833333358 : f32
    %499 = vector.broadcast %cst_125 : f32 to vector<4x8x8xf32>
    %500 = arith.mulf %498, %499 : vector<4x8x8xf32>
    %501 = arith.subf %500, %497 : vector<4x8x8xf32>
    %c0_126 = arith.constant 0 : index
    %c0_127 = arith.constant 0 : index
    %c0_128 = arith.constant 0 : index
    %c0_129 = arith.constant 0 : index
    %c0_130 = arith.constant 0 : index
    %502 = vector.load %arg4[%c0_126, %c0_127, %c0_128, %c0_129, %c0_130] : memref<1x12x4x8x8xf32, #tpu.memory_space<vmem>>, vector<1x12x4x8x8xf32>
    %503 = vector.shape_cast %502 : vector<1x12x4x8x8xf32> to vector<12x4x8x8xf32>
    %504 = vector.shape_cast %497 : vector<4x8x8xf32> to vector<1x4x8x8xf32>
    %505 = vector.broadcast %504 : vector<1x4x8x8xf32> to vector<12x4x8x8xf32>
    %506 = arith.subf %503, %505 : vector<12x4x8x8xf32>
    %c0_131 = arith.constant 0 : index
    %c0_132 = arith.constant 0 : index
    %c0_133 = arith.constant 0 : index
    %c0_134 = arith.constant 0 : index
    %c0_135 = arith.constant 0 : index
    %507 = vector.load %arg4[%c0_131, %c0_132, %c0_133, %c0_134, %c0_135] : memref<1x12x4x8x8xf32, #tpu.memory_space<vmem>>, vector<1x12x4x8x8xf32>
    %508 = vector.shape_cast %507 : vector<1x12x4x8x8xf32> to vector<12x4x8x8xf32>
    %509 = vector.shape_cast %506 : vector<12x4x8x8xf32> to vector<1x12x4x8x8xf32>
    tpu.vector_store %arg4[%c0_131, %c0_132, %c0_133, %c0_134, %c0_135], %509 {strides = array<i32>} : memref<1x12x4x8x8xf32, #tpu.memory_space<vmem>>, vector<1x12x4x8x8xf32>,
    %c0_136 = arith.constant 0 : index
    %c0_137 = arith.constant 0 : index
    %c0_138 = arith.constant 0 : index
    %c0_139 = arith.constant 0 : index
    %c0_140 = arith.constant 0 : index
    %510 = vector.load %arg5[%c0_136, %c0_137, %c0_138, %c0_139, %c0_140] : memref<1x1x4x8x8xf32, #tpu.memory_space<vmem>>, vector<1x1x4x8x8xf32>
    %511 = vector.shape_cast %510 : vector<1x1x4x8x8xf32> to vector<4x8x8xf32>
    %512 = vector.shape_cast %501 : vector<4x8x8xf32> to vector<1x1x4x8x8xf32>
    tpu.vector_store %arg5[%c0_136, %c0_137, %c0_138, %c0_139, %c0_140], %512 {strides = array<i32>} : memref<1x1x4x8x8xf32, #tpu.memory_space<vmem>>, vector<1x1x4x8x8xf32>,
    %513 = vector.shape_cast %501 : vector<4x8x8xf32> to vector<1x4x8x8xf32>
    %cst_141 = arith.constant dense<0.000000e+00> : vector<1xf32>
    %514 = vector.multi_reduction <add>, %513, %cst_141 [1, 2, 3] : vector<1x4x8x8xf32> to vector<1xf32>
    %515 = vector.shape_cast %514 : vector<1xf32> to vector<1x1x1x1xf32>
    %516 = vector.extract %515[0, 0, 0, 0] : f32 from vector<1x1x1x1xf32>
    %517 = vector.broadcast %516 : f32 to vector<1x128xf32>
    %c0_142 = arith.constant 0 : index
    %c0_143 = arith.constant 0 : index
    %c0_144 = arith.constant 0 : index
    %c0_145 = arith.constant 0 : index
    %518 = vector.load %arg6[%c0_142, %c0_143, %c0_144, %c0_145] : memref<1x1x1x128xf32, #tpu.memory_space<vmem>>, vector<1x1x1x128xf32>
    %519 = vector.shape_cast %518 : vector<1x1x1x128xf32> to vector<1x128xf32>
    %520 = vector.shape_cast %517 : vector<1x128xf32> to vector<1x1x1x128xf32>
    tpu.vector_store %arg6[%c0_142, %c0_143, %c0_144, %c0_145], %520 {strides = array<i32>} : memref<1x1x1x128xf32, #tpu.memory_space<vmem>>, vector<1x1x1x128xf32>,
    return
  }
  func.func @transform_0(%arg0: i32, %arg1: i32) -> (i32, i32, i32, i32, i32) {
    %c0_i32 = arith.constant 0 : i32
    %c0_i32_0 = arith.constant 0 : i32
    %c0_i32_1 = arith.constant 0 : i32
    %c0_i32_2 = arith.constant 0 : i32
    return %arg0, %arg1, %c0_i32, %c0_i32_0, %c0_i32_1 : i32, i32, i32, i32, i32
  }
  func.func @transform_1(%arg0: i32, %arg1: i32) -> (i32, i32) {
    %c0_i32 = arith.constant 0 : i32
    %c0_i32_0 = arith.constant 0 : i32
    %c0_i32_1 = arith.constant 0 : i32
    return %c0_i32, %c0_i32_0 : i32, i32
  }
  func.func @transform_2(%arg0: i32, %arg1: i32) -> (i32, i32, i32, i32, i32) {
    %c0_i32 = arith.constant 0 : i32
    %c0_i32_0 = arith.constant 0 : i32
    %c0_i32_1 = arith.constant 0 : i32
    %c0_i32_2 = arith.constant 0 : i32
    return %arg0, %c0_i32, %arg1, %c0_i32_0, %c0_i32_1 : i32, i32, i32, i32, i32
  }
  func.func @transform_3(%arg0: i32, %arg1: i32) -> (i32, i32, i32, i32, i32) {
    %c0_i32 = arith.constant 0 : i32
    %c0_i32_0 = arith.constant 0 : i32
    %c0_i32_1 = arith.constant 0 : i32
    %c0_i32_2 = arith.constant 0 : i32
    return %arg0, %c0_i32, %arg1, %c0_i32_0, %c0_i32_1 : i32, i32, i32, i32, i32
  }
  func.func @transform_4(%arg0: i32, %arg1: i32) -> (i32, i32, i32, i32) {
    %c0_i32 = arith.constant 0 : i32
    %c0_i32_0 = arith.constant 0 : i32
    %c0_i32_1 = arith.constant 0 : i32
    return %arg0, %arg1, %c0_i32, %c0_i32_0 : i32, i32, i32, i32
  }
}

module attributes {stable_mosaic.version = 11 : i64} {
  func.func @_loss_kernel(%arg0: i32, %arg1: i32, %arg2: memref<1x1xf32, #tpu.memory_space<smem>>, %arg3: memref<1x1xf32, #tpu.memory_space<smem>>, %arg4: memref<1x12x256xf32, #tpu.memory_space<vmem>>, %arg5: memref<1x1x256xf32, #tpu.memory_space<vmem>>, %arg6: memref<1x12x256xf32, #tpu.memory_space<vmem>>, %arg7: memref<1x1x256xf32, #tpu.memory_space<vmem>>, %arg8: memref<1x1x1x128xf32, #tpu.memory_space<vmem>>) attributes {dimension_semantics = [#tpu.dimension_semantics<parallel>, #tpu.dimension_semantics<parallel>], iteration_bounds = array<i64: 2, 2>, scalar_prefetch = 0 : i64, scratch_operands = 0 : i64, tpu.core_type = #tpu.core_type<tc>, window_params = [{transform_indices = @transform_0, window_bounds = array<i64: 1, 1>}, {transform_indices = @transform_1, window_bounds = array<i64: 1, 1>}, {transform_indices = @transform_2, window_bounds = array<i64: 1, 12, 256>}, {transform_indices = @transform_3, window_bounds = array<i64: 1, 1, 256>}, {transform_indices = @transform_4, window_bounds = array<i64: 1, 12, 256>}, {transform_indices = @transform_5, window_bounds = array<i64: 1, 1, 256>}, {transform_indices = @transform_6, window_bounds = array<i64: 1, 1, 1, 128>}]} {
    %c0 = arith.constant 0 : index
    %c0_0 = arith.constant 0 : index
    %0 = memref.load %arg2[%c0, %c0_0] : memref<1x1xf32, #tpu.memory_space<smem>>
    %c0_1 = arith.constant 0 : index
    %c0_2 = arith.constant 0 : index
    %1 = memref.load %arg3[%c0_1, %c0_2] : memref<1x1xf32, #tpu.memory_space<smem>>
    %c0_3 = arith.constant 0 : index
    %c0_4 = arith.constant 0 : index
    %c0_5 = arith.constant 0 : index
    %2 = vector.load %arg5[%c0_3, %c0_4, %c0_5] : memref<1x1x256xf32, #tpu.memory_space<vmem>>, vector<1x1x256xf32>
    %3 = vector.shape_cast %2 : vector<1x1x256xf32> to vector<1x256xf32>
    %cst = arith.constant 1.000000e-03 : f32
    %4 = arith.mulf %0, %cst : f32
    %cst_6 = arith.constant 1.000000e+03 : f32
    %5 = arith.mulf %0, %cst_6 : f32
    %6 = vector.broadcast %4 : f32 to vector<1x256xf32>
    %7 = arith.maximumf %6, %3 : vector<1x256xf32>
    %8 = vector.broadcast %5 : f32 to vector<1x256xf32>
    %9 = arith.minimumf %8, %7 : vector<1x256xf32>
    %c0_7 = arith.constant 0 : index
    %c0_8 = arith.constant 0 : index
    %c0_9 = arith.constant 0 : index
    %10 = vector.load %arg7[%c0_7, %c0_8, %c0_9] : memref<1x1x256xf32, #tpu.memory_space<vmem>>, vector<1x1x256xf32>
    %11 = vector.shape_cast %10 : vector<1x1x256xf32> to vector<1x256xf32>
    %cst_10 = arith.constant 1.000000e-03 : f32
    %12 = arith.mulf %1, %cst_10 : f32
    %cst_11 = arith.constant 1.000000e+03 : f32
    %13 = arith.mulf %1, %cst_11 : f32
    %14 = vector.broadcast %12 : f32 to vector<1x256xf32>
    %15 = arith.maximumf %14, %11 : vector<1x256xf32>
    %16 = vector.broadcast %13 : f32 to vector<1x256xf32>
    %17 = arith.minimumf %16, %15 : vector<1x256xf32>
    %c0_12 = arith.constant 0 : index
    %c0_13 = arith.constant 0 : index
    %c0_14 = arith.constant 0 : index
    %18 = vector.load %arg4[%c0_12, %c0_13, %c0_14] : memref<1x12x256xf32, #tpu.memory_space<vmem>>, vector<1x12x256xf32>
    %19 = vector.shape_cast %18 : vector<1x12x256xf32> to vector<12x256xf32>
    %cst_15 = arith.constant 1.000000e+00 : f32
    %20 = vector.broadcast %cst_15 : f32 to vector<1x256xf32>
    %21 = arith.divf %20, %9 : vector<1x256xf32>
    %22 = vector.broadcast %21 : vector<1x256xf32> to vector<12x256xf32>
    %23 = arith.mulf %19, %22 : vector<12x256xf32>
    %cst_16 = arith.constant 0.000000e+00 : f32
    %24 = vector.broadcast %cst_16 : f32 to vector<12x256xf32>
    %25 = arith.subf %24, %23 : vector<12x256xf32>
    %26 = math.exp %25 : vector<12x256xf32>
    %c0_17 = arith.constant 0 : index
    %c0_18 = arith.constant 0 : index
    %c0_19 = arith.constant 0 : index
    %27 = vector.load %arg6[%c0_17, %c0_18, %c0_19] : memref<1x12x256xf32, #tpu.memory_space<vmem>>, vector<1x12x256xf32>
    %28 = vector.shape_cast %27 : vector<1x12x256xf32> to vector<12x256xf32>
    %cst_20 = arith.constant 1.000000e+00 : f32
    %29 = vector.broadcast %cst_20 : f32 to vector<1x256xf32>
    %30 = arith.divf %29, %17 : vector<1x256xf32>
    %31 = vector.broadcast %30 : vector<1x256xf32> to vector<12x256xf32>
    %32 = arith.mulf %28, %31 : vector<12x256xf32>
    %cst_21 = arith.constant 0.000000e+00 : f32
    %33 = vector.broadcast %cst_21 : f32 to vector<12x256xf32>
    %34 = arith.subf %33, %32 : vector<12x256xf32>
    %35 = math.exp %34 : vector<12x256xf32>
    %36 = arith.subf %26, %35 : vector<12x256xf32>
    %37 = arith.mulf %36, %36 : vector<12x256xf32>
    %38 = vector.shape_cast %37 : vector<12x256xf32> to vector<1x12x256xf32>
    %cst_22 = arith.constant dense<0.000000e+00> : vector<1xf32>
    %39 = vector.multi_reduction <add>, %38, %cst_22 [1, 2] : vector<1x12x256xf32> to vector<1xf32>
    %40 = vector.shape_cast %39 : vector<1xf32> to vector<1x1x1xf32>
    %41 = vector.extract %40[0, 0, 0] : f32 from vector<1x1x1xf32>
    %42 = vector.broadcast %41 : f32 to vector<1x128xf32>
    %c0_23 = arith.constant 0 : index
    %c0_24 = arith.constant 0 : index
    %c0_25 = arith.constant 0 : index
    %c0_26 = arith.constant 0 : index
    %43 = vector.load %arg8[%c0_23, %c0_24, %c0_25, %c0_26] : memref<1x1x1x128xf32, #tpu.memory_space<vmem>>, vector<1x1x1x128xf32>
    %44 = vector.shape_cast %43 : vector<1x1x1x128xf32> to vector<1x128xf32>
    %45 = vector.shape_cast %42 : vector<1x128xf32> to vector<1x1x1x128xf32>
    tpu.vector_store %arg8[%c0_23, %c0_24, %c0_25, %c0_26], %45 {strides = array<i32>} : memref<1x1x1x128xf32, #tpu.memory_space<vmem>>, vector<1x1x1x128xf32>,
    return
  }
  func.func @transform_0(%arg0: i32, %arg1: i32) -> (i32, i32) {
    %c0_i32 = arith.constant 0 : i32
    %c0_i32_0 = arith.constant 0 : i32
    %c0_i32_1 = arith.constant 0 : i32
    return %c0_i32, %c0_i32_0 : i32, i32
  }
  func.func @transform_1(%arg0: i32, %arg1: i32) -> (i32, i32) {
    %c0_i32 = arith.constant 0 : i32
    %c0_i32_0 = arith.constant 0 : i32
    %c0_i32_1 = arith.constant 0 : i32
    return %c0_i32, %c0_i32_0 : i32, i32
  }
  func.func @transform_2(%arg0: i32, %arg1: i32) -> (i32, i32, i32) {
    %c0_i32 = arith.constant 0 : i32
    %c0_i32_0 = arith.constant 0 : i32
    return %arg0, %c0_i32, %arg1 : i32, i32, i32
  }
  func.func @transform_3(%arg0: i32, %arg1: i32) -> (i32, i32, i32) {
    %c0_i32 = arith.constant 0 : i32
    %c0_i32_0 = arith.constant 0 : i32
    return %arg0, %c0_i32, %arg1 : i32, i32, i32
  }
  func.func @transform_4(%arg0: i32, %arg1: i32) -> (i32, i32, i32) {
    %c0_i32 = arith.constant 0 : i32
    %c0_i32_0 = arith.constant 0 : i32
    return %arg0, %c0_i32, %arg1 : i32, i32, i32
  }
  func.func @transform_5(%arg0: i32, %arg1: i32) -> (i32, i32, i32) {
    %c0_i32 = arith.constant 0 : i32
    %c0_i32_0 = arith.constant 0 : i32
    return %arg0, %c0_i32, %arg1 : i32, i32, i32
  }
  func.func @transform_6(%arg0: i32, %arg1: i32) -> (i32, i32, i32, i32) {
    %c0_i32 = arith.constant 0 : i32
    %c0_i32_0 = arith.constant 0 : i32
    %c0_i32_1 = arith.constant 0 : i32
    return %arg0, %arg1, %c0_i32, %c0_i32_0 : i32, i32, i32, i32
  }
}

</mosaic_0001>

<bundles_post_ra>
// kernel: mind_loss.5
= control target key start
LH: loop header
LB: loop body
LE: loop exit
PB: predicated region body
PF: predicated region fallthrough
CT: control target
= control target key end

     0   :  { %s1000_s0 = inlined_call_operand.<no memory space> [shape: f32[1,1], index: 0, kind: input, shape index: {}]   ;;  %s1001_s1 = inlined_call_operand.<no memory space> [shape: f32[1,1], index: 1, kind: input, shape index: {}]   ;;  %s1002_s2 = inlined_call_operand.vmem [shape: f32[2,12,512], index: 2, kind: input, shape index: {}]   ;;  %s1003_s3 = inlined_call_operand.vmem [shape: f32[2,1,512], index: 3, kind: input, shape index: {}]   ;;  %s1004_s4 = inlined_call_operand.vmem [shape: f32[2,12,512], index: 4, kind: input, shape index: {}]   ;;  %s1005_s5 = inlined_call_operand.vmem [shape: f32[2,1,512], index: 5, kind: input, shape index: {}]   ;;  %s1006_s6 = inlined_call_operand.vmem [shape: f32[2,2,1,128], index: 6, kind: output, shape index: {}]  }
   0x1   :  { %11 = sst [smem:[#allocation2]] %s1000_s0 }
   0x2   :  { %12 = sst [smem:[#allocation3]] %s1001_s1 }
   0x3   :  { %s872_s25 = smov 0   ;;  %s874_s26 = smov 0  }
   0x4   :  { %s876_s27 = smov 0   ;;  %s878_s28 = smov 0  }
   0x5   :  { %s880_s29 = smov 0   ;;  %s882_s30 = smov 0  }
   0x6   :  { %s884_s7 = smov 0  }
   0x7 LB: > { %s27_s0 = sadd.s32 1, %s821_s29  ;;  %s30_s1 = sadd.s32 1, %s825_s30  ;;  %s829_s7 = sphi %s884_s7, %s18_s7   ;;  %s825_s30 = sphi %s882_s30, %s1017_s30   ;;  %s821_s29 = sphi %s880_s29, %s1016_s29   ;;  %s817_s28 = sphi %s878_s28, %s1015_s28   ;;  %s813_s27 = sphi %s876_s27, %s1014_s27   ;;  %s809_s26 = sphi %s874_s26, %s1013_s26   ;;  %s805_s25 = sphi %s872_s25, %s1012_s25  }
   0x8   : > { %p28_p0 = scmp.ge.s32.totalorder %s27_s0, 2  ;;  %p88_p1 = scmp.ne.s32.totalorder %s809_s26, %s805_s25 }
   0x9   : > { %p89_p2 = scmp.eq.s32.totalorder %s829_s7, 0  ;;  %s81_s12 = sadd.s32 1, %s809_s26 }
   0xa   : > { %s1019_s0 = smov (%p28_p0, %s27_s0), 0  ;;  %s1021_s1 = smov (!%p28_p0, %s30_s1), %s825_s30 }
   0xb   : > { %p915_p3 = por %p89_p2, %p88_p1  ;;  %p32_p4 = scmp.ge.s32.totalorder %s1021_s1, 2 }
   0xc   : > { %s77_s9 = ssub.s32 %s821_s29, %s1019_s0  ;;  %p678_p6 = scmp.ge.s32.totalorder %s829_s7, 4 }
   0xd   : > { %s1023_s1 = smov (%p32_p4, %s1021_s1), 0 }
   0xe   : > { %s76_s10 = ssub.s32 %s825_s30, %s1023_s1  ;;  %232 = sbr.rel (%p678_p6) target bundleno = 41 (0x29), region = 24 }
   0xf   : > { %s78_s11 = sor.u32 %s77_s9, %s76_s10 }
  0x10   : > { %p79_p5 = scmp.eq.s32.totalorder %s78_s11, 0 }
  0x12   : > { %s927_s13 = scalar_select %p79_p5, %s809_s26, %s81_s12  }
  0x13   : > { %235 = sbr.rel (!%p915_p3) target bundleno = 30 (0x1e), region = 28  ;;  %s237_s14 = sand.u32 (%p915_p3), 1, %s809_s26  }
  0x14   : > { %s680_s15 = sshll.u32 (%p915_p3), %s821_s29, 1  ;;  %s679_s16 = sshll.u32 (%p915_p3), %s237_s14, 5 }
  0x15   : > { %s681_s17 = sshll.u32 (%p915_p3), %s825_s30, 3  ;;  %s239_s23 = scalar_lea.vmem (%p915_p3), [#allocation4], %s679_s16 }
  0x16   : > { %s242_s18 = sadd.s32 (%p915_p3), %s681_s17, %s680_s15 }
  0x17   : > { %s682_s19 = sshll.u32 (%p915_p3), %s242_s18, 3 }
  0x18   : > { %s244_s22 = scalar_lea.vmem %s1002_s2, %s682_s19 }
  0x19   : > { %v257_v0 = vld [vmem:[%s244_s22] sm:$0xff]  ;;  %v259_v1 = vld [vmem:[%s244_s22 + $0x8] sm:$0xff] }
  0x1a   : > { %v261_v2 = vld [vmem:[%s244_s22 + $0x20] sm:$0xff]  ;;  %258 = vst [vmem:[%s239_s23] sm:$0xff] %v257_v0  ;;  %v263_v3 = vld [vmem:[%s244_s22 + $0x28] sm:$0xff] }
  0x1b   : > { %260 = vst [vmem:[%s239_s23 + $0x8] sm:$0xff] %v259_v1 }
  0x1c   : > { %262 = vst [vmem:[%s239_s23 + $0x10] sm:$0xff] %v261_v2 }
  0x1d   : > { %264 = vst [vmem:[%s239_s23 + $0x18] sm:$0xff] %v263_v3 }
  0x1e PF: > { %282 = sbr.rel (!%p915_p3) target bundleno = 41 (0x29), region = 55  ;;  %s284_s24 = sand.u32 (%p915_p3), 1, %s809_s26  }
  0x1f   : > { %s684_s9 = sshll.u32 (%p915_p3), %s821_s29, 1  ;;  %s683_s10 = sshll.u32 (%p915_p3), %s284_s24, 5 }
  0x20   : > { %s685_s11 = sshll.u32 (%p915_p3), %s825_s30, 3  ;;  %s286_s18 = scalar_lea.vmem (%p915_p3), [#allocation5], %s683_s10 }
  0x21   : > { %s289_s12 = sadd.s32 (%p915_p3), %s685_s11, %s684_s9 }
  0x22   : > { %s686_s14 = sshll.u32 (%p915_p3), %s289_s12, 3 }
  0x23   : > { %s291_s17 = scalar_lea.vmem %s1004_s4, %s686_s14 }
  0x24   : > { %v304_v4 = vld [vmem:[%s291_s17] sm:$0xff]  ;;  %v306_v5 = vld [vmem:[%s291_s17 + $0x8] sm:$0xff] }
  0x25   : > { %v308_v6 = vld [vmem:[%s291_s17 + $0x20] sm:$0xff]  ;;  %305 = vst [vmem:[%s286_s18] sm:$0xff] %v304_v4  ;;  %v310_v7 = vld [vmem:[%s291_s17 + $0x28] sm:$0xff] }
  0x26   : > { %307 = vst [vmem:[%s286_s18 + $0x8] sm:$0xff] %v306_v5 }
  0x27   : > { %309 = vst [vmem:[%s286_s18 + $0x10] sm:$0xff] %v308_v6 }
  0x28   : > { %311 = vst [vmem:[%s286_s18 + $0x18] sm:$0xff] %v310_v7 }
  0x29 PF: > { %p687_p7 = scmp.ge.s32.totalorder %s829_s7, 1  ;;  %p328_p8 = scmp.lt.s32.totalorder %s829_s7, 5 }
  0x2b   : > { %p329_p9 = pnand %p687_p7, %p328_p8 }
  0x2c   : > { %s690_s8 = sshll.u32 (!%p329_p9), %s813_s27, 1  ;;  %p395_p10 = scmp.lt.s32.totalorder (!%p329_p9), %s817_s28, 1 }
  0x2d   : > { %332 = sbr.rel (%p329_p9) target bundleno = 286 (0x11e), region = 82  ;;  %p397_p11 = scmp.lt.s32.totalorder (!%p329_p9), %s690_s8, 3 }
  0x2e   : > { %s420_s19 = sld [smem:[#allocation2]] (!%p329_p9)  ;;  %s335_s18 = sand.u32 (!%p329_p9), 1, %s805_s25  }
  0x2f   : > { %s421_s21 = sld [smem:[#allocation3]] (!%p329_p9)  ;;  %p415_p12 = scmp.lt.s32.totalorder (!%p329_p9), %s813_s27, 1 }
  0x32   : > { %s1025_s28 = smov (!%p395_p10, %s817_s28), 1  ;;  %s1027_s8 = smov (!%p397_p11, %s690_s8), 3  ;;  %vm525_vm8 = vcmask 1043456  }
  0x33   : > { %s691_s20 = sshll.u32 %s1025_s28, 2  ;;  %s1029_s27 = smov (!%p415_p12, %s813_s27), 1 }
  0x34   : > { %s400_s22 = sadd.s32 %s691_s20, %s1027_s8  ;;  %s423_s14 = smul.f32 0.001, %s420_s19 }
  0x35   : > { %s401_s9 = scalar_lea.vmem %s1003_s3, %s400_s22  ;;  %s411_s12 = scalar_lea.vmem %s1005_s5, %s400_s22 }
  0x36   : > { %v422_v8 = vld [vmem:[%s401_s9] sm:$0x3]  ;;  %s424_s15 = smul.f32 1000.0, %s420_s19  ;;  %v425_v9 = vstv %s423_s14  ;;  %s688_s8 = sshll.u32 %s335_s18, 5 }
  0x37   : > { %v429_v10 = vld [vmem:[%s411_s12] sm:$0x3]  ;;  %s430_s16 = smul.f32 0.001, %s421_s21  ;;  %v426_v11 = vmax.f32 %v425_v9, %v422_v8  ;;  %s337_s25 = scalar_lea.vmem [#allocation4], %s688_s8 }
  0x38   : > { %v427_v12 = vstv %s424_s15  ;;  %s431_s17 = smul.f32 1000.0, %s421_s21  ;;  %v436_v35 = vld [vmem:[%s337_s25] sm:$0xff]  ;;  %v437_v38 = vld [vmem:[%s337_s25 + $0x8] sm:$0xff]  ;;  %v438_v39 = vld [vmem:[%s337_s25 + $0x10] sm:$0xf]  ;;  %s344_s19 = scalar_lea.vmem [#allocation5], %s688_s8 }
  0x39   : > { %v432_v13 = vstv %s430_s16  ;;  %v428_v14 = vmin.f32 %v427_v12, %v426_v11  ;;  %v439_v40 = vld [vmem:[%s337_s25 + $0x18] sm:$0xf]  ;;  %v476_v45 = vld [vmem:[%s344_s19] sm:$0xff]  ;;  %v477_v51 = vld [vmem:[%s344_s19 + $0x8] sm:$0xff]  ;;  %s694_s20 = sshll.u32 %s1025_s28, 1 }
  0x3a   : > { %v433_v15 = vmax.f32 %v432_v13, %v429_v10  ;;  %v434_v16 = vstv %s431_s17  ;;  %v478_v52 = vld [vmem:[%s344_s19 + $0x10] sm:$0xf]  ;;  %v479_v53 = vld [vmem:[%s344_s19 + $0x18] sm:$0xf]  ;;  %s418_s21 = sadd.s32 %s694_s20, %s1029_s27 }
  0x3b   : > { %755 = vrcp.f32 %v428_v14  ;;  %vm445_vm0 = vweird.f32 %v428_v14  ;;  %v451_v21 = vand.u32 2147483648, %v428_v14  ;;  %v449_v23 = vand.u32 2147483647, %v428_v14  ;;  %s419_s24 = scalar_lea.vmem %s1006_s6, %s418_s21 }
  0x3c   : > { %v435_v17 = vmin.f32 %v434_v16, %v433_v15 }
  0x3d   : > { %v452_v30 = vor.u32 1.1754944e-38, %v451_v21  ;;  %vm450_vm5 = vcmp.eq.f32.partialorder %v449_v23, 8.507059e+37 }
  0x3e   : > { %757 = vrcp.f32 %v435_v17  ;;  %vm485_vm2 = vweird.f32 %v435_v17  ;;  %v491_v25 = vand.u32 2147483648, %v435_v17  ;;  %v489_v28 = vand.u32 2147483647, %v435_v17 }
  0x40   : > { %v492_v34 = vor.u32 1.1754944e-38, %v491_v25  ;;  %vm490_vm7 = vcmp.eq.f32.partialorder %v489_v28, 8.507059e+37 }
  0x41   : > { %v756_v18 = vpop.eup %755 }
  0x42   : > { %v441_v19 = vmul.f32 %v756_v18, %v428_v14  ;;  %vm446_vm1 = vweird.f32 %v756_v18 }
  0x43   : > { %vm961_vm4 = vmor %vm445_vm0, %vm446_vm1 }
  0x44   : > { %v758_v20 = vpop.eup %757  ;;  %v442_v22 = vsub.f32 1.0, %v441_v19 }
  0x45   : > { %v481_v24 = vmul.f32 %v758_v20, %v435_v17  ;;  %vm486_vm3 = vweird.f32 %v758_v20 }
  0x46   : > { %v443_v26 = vmul.f32 %v756_v18, %v442_v22  ;;  %vm965_vm6 = vmor %vm485_vm2, %vm486_vm3 }
  0x47   : > { %v482_v27 = vsub.f32 1.0, %v481_v24 }
  0x48   : > { %v444_v31 = vadd.f32 %v756_v18, %v443_v26 }
  0x49   : > { %v483_v32 = vmul.f32 %v758_v20, %v482_v27 }
  0x4a   : > { %v448_v36 = vsel %vm961_vm4, %v756_v18, %v444_v31 }
  0x4b   : > { %v484_v37 = vadd.f32 %v758_v20, %v483_v32  ;;  %v453_v41 = vsel %vm450_vm5, %v452_v30, %v448_v36 }
  0x4c   : > { %v456_v42 = vperm.slane %v453_v41, 0  ;;  %v457_v43 = vperm.slane %v453_v41, 1 }
  0x4d   : > { %v488_v44 = vsel %vm965_vm6, %v758_v20, %v484_v37 }
  0x4e   : > { %v493_v46 = vsel %vm490_vm7, %v492_v34, %v488_v44  ;;  %v460_v47 = vmul.f32 %v456_v42, %v436_v35  ;;  %v461_v48 = vmul.f32 %v457_v43, %v437_v38  ;;  %v462_v49 = vmul.f32 %v456_v42, %v438_v39 }
  0x4f   : > { %v463_v50 = vmul.f32 %v457_v43, %v439_v40  ;;  %v496_v54 = vperm.slane %v493_v46, 0  ;;  %v497_v55 = vperm.slane %v493_v46, 1 }
  0x50   : > { %v464_v56 = vsub.f32 0.0, %v460_v47  ;;  %v465_v57 = vsub.f32 0.0, %v461_v48  ;;  %v466_v58 = vsub.f32 0.0, %v462_v49 }
  0x51   : > { %v467_v59 = vsub.f32 0.0, %v463_v50  ;;  %v500_v60 = vmul.f32 %v496_v54, %v476_v45  ;;  %v501_v61 = vmul.f32 %v497_v55, %v477_v51  ;;  %v502_v62 = vmul.f32 %v496_v54, %v478_v52 }
  0x52   : > { %v503_v63 = vmul.f32 %v497_v55, %v479_v53  ;;  %v468_v0 = vmul.f32 1.442695, %v464_v56  ;;  %v470_v1 = vmul.f32 1.442695, %v465_v57  ;;  %v472_v2 = vmul.f32 1.442695, %v466_v58 }
  0x53   : > { %v474_v3 = vmul.f32 1.442695, %v467_v59  ;;  %v504_v4 = vsub.f32 0.0, %v500_v60  ;;  %v505_v5 = vsub.f32 0.0, %v501_v61  ;;  %v506_v6 = vsub.f32 0.0, %v502_v62 }
  0x54   : > { %759 = vpow2.f32 %v468_v0  ;;  %v507_v7 = vsub.f32 0.0, %v503_v63 }
  0x55   : > { %761 = vpow2.f32 %v470_v1  ;;  %v508_v8 = vmul.f32 1.442695, %v504_v4  ;;  %v510_v9 = vmul.f32 1.442695, %v505_v5  ;;  %v512_v10 = vmul.f32 1.442695, %v506_v6 }
  0x56   : > { %763 = vpow2.f32 %v472_v2  ;;  %v514_v11 = vmul.f32 1.442695, %v507_v7 }
  0x57   : > { %765 = vpow2.f32 %v474_v3 }
  0x58   : > { %767 = vpow2.f32 %v508_v8 }
  0x59   : > { %769 = vpow2.f32 %v510_v9 }
  0x5a   : > { %v760_v12 = vpop.eup %759  ;;  %771 = vpow2.f32 %v512_v10 }
  0x5b   : > { %v762_v13 = vpop.eup %761  ;;  %773 = vpow2.f32 %v514_v11 }
  0x5c   : > { %v764_v14 = vpop.eup %763 }
  0x5d   : > { %v766_v15 = vpop.eup %765 }
  0x5e   : > { %v768_v16 = vpop.eup %767 }
  0x5f   : > { %v770_v17 = vpop.eup %769  ;;  %v516_v18 = vsub.f32 %v760_v12, %v768_v16 }
  0x60   : > { %v772_v19 = vpop.eup %771  ;;  %v517_v20 = vsub.f32 %v762_v13, %v770_v17 }
  0x61   : > { %v774_v21 = vpop.eup %773  ;;  %v518_v22 = vsub.f32 %v764_v14, %v772_v19  ;;  %v520_v23 = vmul.f32 %v516_v18, %v516_v18 }
  0x62   : > { %v519_v24 = vsub.f32 %v766_v15, %v774_v21  ;;  %v521_v25 = vmul.f32 %v517_v20, %v517_v20 }
  0x63   : > { %v522_v26 = vmul.f32 %v518_v22, %v518_v22 }
  0x64   : > { %v523_v27 = vmul.f32 %v519_v24, %v519_v24  ;;  %v524_v28 = vadd.f32 %v521_v25, %v520_v23 }
  0x65   : > { %v526_v29 = vsel %vm525_vm8, %v522_v26, 0.0 }
  0x66   : > { %v527_v30 = vadd.f32 %v526_v29, %v524_v28  ;;  %v528_v31 = vsel %vm525_vm8, %v523_v27, 0.0 }
  0x68   : > { %v529_v32 = vadd.f32 %v528_v31, %v527_v30 }
  0x6a   : > { %530 = vadd.xlane.f32.xlu0 %v529_v32 }
  0xdd   : > { %v531_v33 = vpop.xlane.xlu0 %530 }
  0xde   : > { %v532_v34 = vrot.slane %v531_v33, 4 }
  0xe0   : > { %v533_v35 = vadd.f32 %v532_v34, %v531_v33 }
  0xe2   : > { %v534_v36 = vrot.slane %v533_v35, 2 }
  0xe4   : > { %v535_v37 = vadd.f32 %v534_v36, %v533_v35 }
  0xe6   : > { %v536_v38 = vrot.slane %v535_v37, 1 }
  0xe8   : > { %v537_v39 = vadd.f32 %v536_v38, %v535_v37 }
  0xea   : > { %697 = vpush %v537_v39 }
 0x11b   : > { %s698_s9 = spop %697 }
 0x11c   : > { %v539_v40 = vstv %s698_s9 }
 0x11d   : > { %540 = vst [vmem:[%s419_s24] sm:$0x1] %v539_v40 }
 0x11e PF: > { %s18_s7 = sadd.s32 1, %s829_s7   ;;  %s1012_s25 = smov %s809_s26 }
 0x11f   : > { %p15_p13 = scmp.ge.s32.totalorder %s18_s7, 6   ;;  %s1013_s26 = smov %s927_s13 }
 0x120   : > { %s1014_s27 = smov %s821_s29  ;;  %s1015_s28 = smov %s825_s30 }
 0x121   : > { %s1016_s29 = smov %s1019_s0  ;;  %s1017_s30 = smov %s1023_s1 }
 0x122   :  { %17 = sbr.rel (!%p15_p13) target bundleno = 7 (0x7), region = 139 }

// kernel: mind_loss.4
= control target key start
LH: loop header
LB: loop body
LE: loop exit
PB: predicated region body
PF: predicated region fallthrough
CT: control target
= control target key end

     0   :  { %s4263_s15 = smov 0   ;;  %s4265_s16 = smov 0   ;;  %s6781_s0 = inlined_call_operand.vmem [shape: f32[2,2,12,12,12], index: 0, kind: input, shape index: {}]   ;;  %s6782_s1 = inlined_call_operand.vmem [shape: f32[8,8], index: 1, kind: input, shape index: {}]   ;;  %s6783_s2 = inlined_call_operand.vmem [shape: f32[2,12,8,8,8], index: 2, kind: output, shape index: {0}]   ;;  %s6784_s3 = inlined_call_operand.vmem [shape: f32[2,1,8,8,8], index: 3, kind: output, shape index: {1}]   ;;  %s6785_s4 = inlined_call_operand.vmem [shape: f32[2,2,1,128], index: 4, kind: output, shape index: {2}]  }
   0x1   :  { %s4267_s17 = smov 0   ;;  %s4269_s18 = smov 0  }
   0x2   :  { %s4271_s19 = smov 0   ;;  %s4273_s20 = smov 0  }
   0x3   :  { %s4275_s21 = smov 0  }
   0x4 LB: > { %s24_s22 = sadd.s32 1, %s4225_s19  ;;  %s27_s23 = sadd.s32 1, %s4229_s20  ;;  %s4233_s21 = sphi %s4275_s21, %s15_s21   ;;  %s4229_s20 = sphi %s4273_s20, %s7016_s20   ;;  %s4225_s19 = sphi %s4271_s19, %s7015_s19   ;;  %s4221_s18 = sphi %s4269_s18, %s7014_s18   ;;  %s4217_s17 = sphi %s4267_s17, %s7013_s17   ;;  %s4213_s16 = sphi %s4265_s16, %s7012_s16   ;;  %s4209_s15 = sphi %s4263_s15, %s7011_s15  }
   0x5   : > { %p25_p0 = scmp.ge.s32.totalorder %s24_s22, 2  ;;  %s3974_s24 = sadd.s32 4294967295, %s4233_s21  }
   0x6   : > { %p95_p1 = scmp.ne.s32.totalorder %s4213_s16, %s4209_s15  ;;  %p96_p2 = scmp.eq.s32.totalorder %s3974_s24, 3 }
   0x7   : > { %s7018_s22 = smov (%p25_p0, %s24_s22), 0  ;;  %s7020_s23 = smov (!%p25_p0, %s27_s23), %s4229_s20 }
   0x8   : > { %s81_s25 = ssub.s32 %s4225_s19, %s7018_s22  ;;  %p29_p3 = scmp.ge.s32.totalorder %s7020_s23, 2 }
   0x9   : > { %p3978_p4 = scmp.ge.s32.totalorder %s4233_s21, 1  ;;  %p4309_p5 = por %p96_p2, %p95_p1 }
   0xa   : > { %p191_p6 = scmp.lt.s32.totalorder %s4233_s21, 5  ;;  %s7022_s23 = smov (%p29_p3, %s7020_s23), 0 }
   0xb   : > { %s80_s27 = ssub.s32 %s4229_s20, %s7022_s23  ;;  %s85_s29 = sadd.s32 1, %s4213_s16 }
   0xc   : > { %p192_p7 = pnand %p3978_p4, %p191_p6  ;;  %s82_s28 = sor.u32 %s81_s25, %s80_s27 }
   0xd   : > { %p83_p8 = scmp.eq.s32.totalorder %s82_s28, 0 }
   0xe   : > { %195 = sbr.rel (%p192_p7) target bundleno = 882 (0x372), region = 28 }
   0xf   : > { %s4320_s30 = scalar_select %p83_p8, %s4213_s16, %s85_s29  }
  0x13   : > { %p236_p9 = scmp.lt.s32.totalorder %s4221_s18, 1  ;;  %p238_p10 = scmp.lt.s32.totalorder %s4217_s17, 1  ;;  %vm464_vm14 = vcmask 64512   ;;  %vm542_vm15 = vcmask 1040384  }
  0x14   : > { %s4325_s5 = sshll.u32 %s4217_s17, 2  ;;  %s4235_s24 = smov 2  }
  0x15   : > { %s4328_s6 = scalar_select %p236_p9, %s4221_s18, 1 }
  0x16   : > { %s7024_s17 = smov (!%p238_p10, %s4217_s17), 1  ;;  %s3985_s8 = sadd.s32 4294967294, %s4325_s5 }
  0x17   : > { %s4116_s7 = smul.u32 48, %s4328_s6  ;;  %v4336_v0 = vstv %s3985_s8  ;;  %s4236_s25 = smov 126  }
  0x18   : > { %s4115_s9 = smul.u32 24, %s7024_s17  ;;  %v4339_v1 = vadd.s32 2, %v4336_v0  ;;  %v4342_v2 = vadd.s32 5, %v4336_v0  ;;  %v4345_v3 = vadd.s32 1, %v4336_v0  ;;  %vm273_vm1 = vcmp.lt.s32.totalorder %v4336_v0, 0  ;;  %s4237_s27 = smov 124  }
  0x19   : > { %vm280_vm3 = vcmp.gt.s32.totalorder %v4336_v0, 7  ;;  %v4358_v4 = vadd.s32 3, %v4336_v0  ;;  %v4430_v22 = vadd.s32 4, %v4336_v0  ;;  %v4492_v33 = vadd.s32 6, %v4336_v0  ;;  %p249_p11 = scmp.lt.s32.totalorder %s4325_s5, 7 }
  0x1a   : > { %s242_s10 = sadd.s32 %s4116_s7, %s4115_s9  ;;  %vm277_vm0 = vcmp.lt.s32.totalorder %v4342_v2, 0  ;;  %vm282_vm2 = vcmp.gt.s32.totalorder %v4339_v1, 7  ;;  %vm274_vm4 = vcmp.lt.s32.totalorder %v4345_v3, 0  ;;  %vm281_vm5 = vcmp.gt.s32.totalorder %v4345_v3, 7  ;;  %s213_s7 = sand.u32 1, %s4209_s15  }
  0x1b   : > { %s3979_s11 = sshll.u32 %s242_s10, 3  ;;  %vm275_vm6 = vcmp.lt.s32.totalorder %v4358_v4, 0  ;;  %vm283_vm7 = vcmp.gt.s32.totalorder %v4358_v4, 7  ;;  %vm276_vm8 = vcmp.lt.s32.totalorder %v4430_v22, 0  ;;  %vm284_vm9 = vcmp.gt.s32.totalorder %v4430_v22, 7  ;;  %s5337_s15 = smul.u32 384, %s213_s7 }
  0x1c   : > { %s4352_s14 = scalar_lea.vmem %s6781_s0, %s3979_s11  ;;  %v4495_v34 = vadd.s32 7, %v4336_v0  ;;  %vm278_vm10 = vcmp.lt.s32.totalorder %v4492_v33, 0  ;;  %vm285_vm12 = vcmp.gt.s32.totalorder %v4492_v33, 7  ;;  %s3981_s10 = sshll.u32 %s4328_s6, 3 }
  0x1d   : > { %v4361_v5 = vld [vmem:[%s4352_s14 + $0x42] sm:$0xff]  ;;  %v4364_v6 = vld [vmem:[%s4352_s14 + $0x72] sm:$0xff]  ;;  %s5356_s8 = scalar_lea.vmem [#allocation2], %s5337_s15 }
  0x1e   : > { %v4367_v7 = vld [vmem:[%s4352_s14 + $0x22] sm:$0xff]  ;;  %v4374_v8 = vsel %vm277_vm0, %v4361_v5, %v4364_v6  ;;  %v288_v10 = vld [vmem:[%s4352_s14 + $0x12] sm:$0xff]  ;;  %vm279_vm11 = vcmp.lt.s32.totalorder %v4495_v34, 0  ;;  %vm286_vm13 = vcmp.gt.s32.totalorder %v4495_v34, 7  ;;  %s250_s9 = scalar_select %p249_p11, %s4325_s5, 7 }
  0x1f   : > { %v318_v9 = vsel %vm273_vm1, %v4361_v5, %v4367_v7  ;;  %v4382_v11 = vld [vmem:[%s4352_s14 + $0x52] sm:$0xff]  ;;  %v4388_v12 = vsel %vm282_vm2, %v4374_v8, %v4361_v5  ;;  %v296_v14 = vsel %vm274_vm4, %v4367_v7, %v288_v10  ;;  %v287_v17 = vld [vmem:[%s4352_s14 + $0x2] sm:$0xff]  ;;  %v298_v32 = vsel %vm276_vm8, %v4367_v7, %v4361_v5 }
  0x20   : > { %v4393_v13 = vsel %vm280_vm3, %v4374_v8, %v318_v9  ;;  %v4402_v15 = vsel %vm277_vm0, %v4367_v7, %v4382_v11  ;;  %v3987_v16 = vld [vmem:[%s4352_s14 + $0x32] sm:$0xff]  ;;  %912 = vrot.lane.b32.xlu1 %v4388_v12, %s4235_s24  ;;  %v295_v20 = vsel %vm273_vm1, %v4367_v7, %v287_v17  ;;  %v320_v21 = vsel %vm275_vm6, %v4361_v5, %v4382_v11  ;;  %v4449_v26 = vld [vmem:[%s4352_s14 + $0x62] sm:$0xff]  ;;  %s252_s11 = sadd.s32 %s3981_s10, %s250_s9 }
  0x21   : > { %6855 = vst [vmem:[#allocation3_spill] sm:$0xff] %v4402_v15  ;;  %908 = vrot.lane.b32.xlu0 %v4393_v13, %s4235_s24  ;;  %v4413_v18 = vsel %vm281_vm5, %v4402_v15, %v296_v14  ;;  %v319_v19 = vsel %vm274_vm4, %v4361_v5, %v3987_v16  ;;  %v4440_v24 = vsel %vm280_vm3, %v4402_v15, %v295_v20  ;;  %v4504_v36 = vld [vmem:[%s4352_s14 + $0x82] sm:$0xff]  ;;  %v4512_v37 = vld [vmem:[%s4352_s14 + $0x92] sm:$0xff]  ;;  %s3982_s12 = sshll.u32 %s252_s11, 3 }
  0x22   : > { %6856 = vst [vmem:[#allocation4_spill] sm:$0xff] %v4413_v18  ;;  %1173 = vrot.lane.b32.xlu2 %v4413_v18, %s4235_s24  ;;  %v4435_v23 = vsel %vm281_vm5, %v4374_v8, %v319_v19  ;;  %v4445_v25 = vsel %vm283_vm7, %v4374_v8, %v320_v21  ;;  %v321_v27 = vsel %vm276_vm8, %v4361_v5, %v4449_v26  ;;  %v4546_v44 = vld [vmem:[%s4352_s14 + $0x40] sm:$0xff]  ;;  %v3999_v45 = vld [vmem:[%s4352_s14 + $0x70] sm:$0xff] }
  0x23   : > { %6857 = vst [vmem:[#allocation5_spill] sm:$0xff] %v4440_v24  ;;  %v297_v28 = vsel %vm275_vm6, %v4367_v7, %v3987_v16  ;;  %v4469_v29 = vsel %vm282_vm2, %v4402_v15, %v4367_v7  ;;  %v4474_v30 = vsel %vm284_vm9, %v4374_v8, %v321_v27  ;;  %v4500_v35 = vsel %vm284_vm9, %v4402_v15, %v298_v32  ;;  %v3994_v46 = vld [vmem:[%s4352_s14 + $0x20] sm:$0xff]  ;;  %v3995_v47 = vld [vmem:[%s4352_s14 + $0x30] sm:$0xff] }
  0x24   : > { %6858 = vst [vmem:[#allocation6_spill] sm:$0xff] %v4469_v29  ;;  %v4479_v31 = vsel %vm283_vm7, %v4402_v15, %v297_v28  ;;  %v323_v38 = vsel %vm278_vm10, %v4361_v5, %v4504_v36  ;;  %v300_v39 = vsel %vm278_vm10, %v4367_v7, %v4449_v26  ;;  %v324_v40 = vsel %vm279_vm11, %v4361_v5, %v4512_v37  ;;  %v3997_v56 = vld [vmem:[%s4352_s14 + $0x50] sm:$0xff]  ;;  %v3998_v59 = vld [vmem:[%s4352_s14 + $0x60] sm:$0xff] }
  0x25   : > { %6859 = vst [vmem:[#allocation7_spill] sm:$0xff] %v4479_v31  ;;  %v4533_v41 = vsel %vm285_vm12, %v4374_v8, %v323_v38  ;;  %v4538_v42 = vsel %vm285_vm12, %v4402_v15, %v300_v39  ;;  %v4543_v43 = vsel %vm286_vm13, %v4374_v8, %v324_v40  ;;  %v301_v48 = vsel %vm279_vm11, %v4367_v7, %v4364_v6  ;;  %v4000_v27 = vld [vmem:[%s4352_s14 + $0x80] sm:$0xff] }
  0x26   : > { %6860 = vst [vmem:[#allocation8_spill] sm:$0xff] %v4500_v35  ;;  %v4564_v49 = vsel %vm277_vm0, %v4546_v44, %v3999_v45  ;;  %v340_v50 = vsel %vm273_vm1, %v4546_v44, %v3994_v46  ;;  %v341_v51 = vsel %vm274_vm4, %v4546_v44, %v3995_v47  ;;  %v4575_v52 = vsel %vm286_vm13, %v4402_v15, %v301_v48 }
  0x27   : > { %6861 = vst [vmem:[#allocation9_spill] sm:$0xff] %v4538_v42  ;;  %v4580_v53 = vsel %vm280_vm3, %v4564_v49, %v340_v50  ;;  %v4585_v54 = vsel %vm281_vm5, %v4564_v49, %v341_v51  ;;  %v4597_v55 = vsel %vm282_vm2, %v4564_v49, %v4546_v44  ;;  %v342_v57 = vsel %vm275_vm6, %v4546_v44, %v3997_v56  ;;  %v4001_v56 = vld [vmem:[%s4352_s14 + $0x90] sm:$0xff] }
  0x28   : > { %1171 = vrot.lane.b32.xlu1 %v4440_v24, %s4235_s24  ;;  %6862 = vst [vmem:[#allocation10_spill] sm:$0xff] %v4575_v52  ;;  %v4612_v58 = vsel %vm283_vm7, %v4564_v49, %v342_v57  ;;  %v343_v60 = vsel %vm276_vm8, %v4546_v44, %v3998_v59  ;;  %v662_v62 = vsub.f32 %v4585_v54, %v4413_v18 }
  0x29   : > { %910 = vrot.lane.b32.xlu0 %v4435_v23, %s4235_s24  ;;  %v4627_v61 = vsel %vm284_vm9, %v4564_v49, %v343_v60  ;;  %v661_v63 = vsub.f32 %v4580_v53, %v4440_v24  ;;  %v663_v10 = vsub.f32 %v4597_v55, %v4469_v29  ;;  %v664_v16 = vsub.f32 %v4612_v58, %v4479_v31 }
  0x2a   : > { %914 = vrot.lane.b32.xlu2 %v4445_v25, %s4235_s24  ;;  %v670_v7 = vmul.f32 %v662_v62, %v662_v62  ;;  %v665_v20 = vsub.f32 %v4627_v61, %v4500_v35  ;;  %v345_v39 = vsel %vm278_vm10, %v4546_v44, %v4000_v27  ;;  %v364_v40 = vsel %vm274_vm4, %v4449_v26, %v4382_v11 }
  0x2b   : > { %v669_v9 = vmul.f32 %v661_v63, %v661_v63  ;;  %v671_v14 = vmul.f32 %v663_v10, %v663_v10  ;;  %v672_v19 = vmul.f32 %v664_v16, %v664_v16  ;;  %v666_v46 = vsub.f32 %v4564_v49, %v4402_v15 }
  0x2c   : > { %v673_v28 = vmul.f32 %v665_v20, %v665_v20  ;;  %v4670_v48 = vsel %vm285_vm12, %v4564_v49, %v345_v39  ;;  %v4676_v50 = vsel %vm277_vm0, %v4449_v26, %v4512_v37  ;;  %v363_v11 = vsel %vm273_vm1, %v4449_v26, %v4361_v5 }
  0x2d   : > { %v677_v17 = vadd.f32 %v670_v7, %v669_v9  ;;  %v678_v38 = vadd.f32 %v671_v14, %v670_v7  ;;  %6863 = vst [vmem:[#allocation11_spill] sm:$0xff] %v4670_v48  ;;  %v4685_v51 = vsel %vm281_vm5, %v4676_v50, %v364_v40  ;;  %v674_v57 = vmul.f32 %v666_v46, %v666_v46 }
  0x2e   : > { %v679_v37 = vadd.f32 %v672_v19, %v671_v14  ;;  %v1945_v60 = vsub.f32 %v4685_v51, %v4585_v54  ;;  %v4696_v5 = vsel %vm280_vm3, %v4676_v50, %v363_v11  ;;  %v366_v62 = vsel %vm276_vm8, %v4449_v26, %v4504_v36 }
  0x2f   : > { %v681_v21 = vadd.f32 %v677_v17, %v671_v14  ;;  %v682_v47 = vadd.f32 %v678_v38, %v672_v19  ;;  %v1944_v63 = vsub.f32 %v4696_v5, %v4580_v53  ;;  %v4710_v7 = vsel %vm282_vm2, %v4676_v50, %v4449_v26 }
  0x30   : > { %916 = vrot.lane.b32.xlu1 %v4474_v30, %s4235_s24  ;;  %v365_v9 = vsel %vm275_vm6, %v4449_v26, %v4364_v6  ;;  %v346_v36 = vsel %vm279_vm11, %v4546_v44, %v4001_v56  ;;  %v1946_v10 = vsub.f32 %v4710_v7, %v4597_v55  ;;  %v4726_v16 = vsel %vm284_vm9, %v4676_v50, %v366_v62 }
  0x31   : > { %1175 = vrot.lane.b32.xlu0 %v4469_v29, %s4235_s24  ;;  %v685_v32 = vadd.f32 %v681_v21, %v672_v19  ;;  %v686_v59 = vadd.f32 %v682_v47, %v673_v28  ;;  %v667_v20 = vsub.f32 %v4670_v48, %v4538_v42  ;;  %v683_v21 = vadd.f32 %v679_v37, %v673_v28 }
  0x32   : > { %1177 = vrot.lane.b32.xlu2 %v4479_v31, %s4235_s24  ;;  %v4733_v6 = vsel %vm283_vm7, %v4676_v50, %v365_v9  ;;  %v4738_v44 = vsel %vm286_vm13, %v4564_v49, %v346_v36  ;;  %v4740_v27 = vmul.f32 %v1945_v60, %v1945_v60  ;;  %v4744_v39 = vmul.f32 %v1946_v10, %v1946_v10  ;;  %v4764_v36 = vld [vmem:[%s4352_s14 + $0x44] sm:$0xff] }
  0x33   : > { %v689_v45 = vadd.f32 %v685_v32, %v673_v28  ;;  %v690_v17 = vadd.f32 %v686_v59, %v674_v57  ;;  %v1952_v32 = vmul.f32 %v1944_v63, %v1944_v63  ;;  %v1947_v38 = vsub.f32 %v4733_v6, %v4612_v58 }
  0x34   : > { %v1948_v40 = vsub.f32 %v4726_v16, %v4627_v61  ;;  %v687_v46 = vadd.f32 %v683_v21, %v674_v57  ;;  %v680_v47 = vadd.f32 %v673_v28, %v672_v19  ;;  %v668_v62 = vsub.f32 %v4738_v44, %v4575_v52  ;;  %v4013_v19 = vld [vmem:[%s4352_s14 + $0x54] sm:$0xff] }
  0x35   : > { %v4753_v11 = vmul.f32 %v1947_v38, %v1947_v38  ;;  %v1960_v56 = vadd.f32 %v4740_v27, %v1952_v32  ;;  %v4015_v28 = vld [vmem:[%s4352_s14 + $0x74] sm:$0xff] }
  0x36   : > { %v4756_v59 = vmul.f32 %v1948_v40, %v1948_v40  ;;  %v684_v63 = vadd.f32 %v680_v47, %v674_v57  ;;  %v387_v57 = vsel %vm275_vm6, %v4764_v36, %v4013_v19  ;;  %v4777_v32 = vsel %vm277_vm0, %v4764_v36, %v4015_v28  ;;  %v4010_v47 = vld [vmem:[%s4352_s14 + $0x24] sm:$0xff] }
  0x37   : > { %v1964_v9 = vadd.f32 %v1960_v56, %v4744_v39  ;;  %6864 = vst [vmem:[#allocation12_spill] sm:$0xff] %v4777_v32  ;;  %v4785_v40 = vsel %vm283_vm7, %v4777_v32, %v387_v57  ;;  %v4795_v2 = vsel %vm282_vm2, %v4777_v32, %v4764_v36  ;;  %v385_v4 = vsel %vm273_vm1, %v4764_v36, %v4010_v47 }
  0x38   : > { %918 = vrot.lane.b32.xlu1 %v4374_v8, %s4235_s24  ;;  %6865 = vst [vmem:[#allocation13_spill] sm:$0xff] %v4785_v40  ;;  %v4816_v28 = vsel %vm280_vm3, %v4777_v32, %v385_v4  ;;  %vm547_vm0 = vcmask 1041408   ;;  %vm556_vm1 = vcmask 1042432   ;;  %vm569_vm2 = vcmask 1046528  }
  0x39   : > { %1179 = vrot.lane.b32.xlu0 %v4500_v35, %s4235_s24  ;;  %v1968_v10 = vadd.f32 %v1964_v9, %v4753_v11  ;;  %6866 = vst [vmem:[#allocation14_spill] sm:$0xff] %v4795_v2  ;;  %vm590_vm3 = vcmask 1045504  }
  0x3a   : > { %1181 = vrot.lane.b32.xlu2 %v4402_v15, %s4235_s24  ;;  %6867 = vst [vmem:[#allocation15_spill] sm:$0xff] %v4816_v28 }
  0x3b   : > { %v1972_v21 = vadd.f32 %v1968_v10, %v4756_v59 }
  0x40   : > { %1183 = vrot.lane.b32.xlu1 %v4538_v42, %s4235_s24 }
  0x41   : > { %920 = vrot.lane.b32.xlu0 %v4533_v41, %s4235_s24 }
  0x42   : > { %922 = vrot.lane.b32.xlu2 %v4543_v43, %s4235_s24 }
  0x48   : > { %1442 = vrot.lane.b32.xlu1 %v4580_v53, %s4235_s24 }
  0x49   : > { %1185 = vrot.lane.b32.xlu0 %v4575_v52, %s4235_s24 }
  0x4a   : > { %1444 = vrot.lane.b32.xlu2 %v4585_v54, %s4235_s24 }
  0x50   : > { %2185 = vrot.lane.b32.xlu1 %v4435_v23, %s4236_s25 }
  0x51   : > { %2183 = vrot.lane.b32.xlu0 %v4393_v13, %s4236_s25 }
  0x52   : > { %1446 = vrot.lane.b32.xlu2 %v4597_v55, %s4235_s24 }
  0x58   : > { %1448 = vrot.lane.b32.xlu1 %v4612_v58, %s4235_s24 }
  0x59   : > { %2187 = vrot.lane.b32.xlu0 %v4388_v12, %s4236_s25 }
  0x5a   : > { %2189 = vrot.lane.b32.xlu2 %v4445_v25, %s4236_s25 }
  0x60   : > { %2191 = vrot.lane.b32.xlu1 %v4474_v30, %s4236_s25 }
  0x61   : > { %1450 = vrot.lane.b32.xlu0 %v4627_v61, %s4235_s24 }
  0x62   : > { %407 = vrot.lane.b32.xlu2 %v4440_v24, %s4236_s25  ;;  %v4009_v24 = vld [vmem:[%s4352_s14 + $0xb2] sm:$0xff] }
  0x68   : > { %411 = vrot.lane.b32.xlu1 %v4469_v29, %s4236_s25 }
  0x69   : > { %409 = vrot.lane.b32.xlu0 %v4413_v18, %s4236_s25 }
  0x6a   : > { %413 = vrot.lane.b32.xlu2 %v4479_v31, %s4236_s25 }
  0x70   : > { %1452 = vrot.lane.b32.xlu1 %v4564_v49, %s4235_s24 }
  0x71   : > { %415 = vrot.lane.b32.xlu0 %v4500_v35, %s4236_s25 }
  0x72   : > { %2193 = vrot.lane.b32.xlu2 %v4374_v8, %s4236_s25 }
  0x78   : > { %1454 = vrot.lane.b32.xlu1 %v4670_v48, %s4235_s24 }
  0x79   : > { %698 = vrot.lane.b32.xlu0 %v689_v45, %s4236_s25  ;;  %v675_v45 = vmul.f32 %v667_v20, %v667_v20 }
  0x7a   : > { %417 = vrot.lane.b32.xlu2 %v4402_v15, %s4236_s25 }
  0x7b   : > { %v691_v60 = vadd.f32 %v687_v46, %v675_v45  ;;  %v688_v20 = vadd.f32 %v684_v63, %v675_v45 }
  0x7c   : > { %v4721_v14 = vpop.permute.xlu2 %1173 }
  0x7d   : > { %v1196_v35 = vsub.f32 %v4435_v23, %v4721_v14 }
  0x80   : > { %1456 = vrot.lane.b32.xlu1 %v4738_v44, %s4235_s24  ;;  %s6434_s24 = scalar_lea.vmem %s6784_s3, %s3982_s12 }
  0x81   : > { %700 = vrot.lane.b32.xlu0 %v690_v17, %s4236_s25  ;;  %v676_v17 = vmul.f32 %v668_v62, %v668_v62  ;;  %v4011_v62 = vld [vmem:[%s4352_s14 + $0x34] sm:$0xff] }
  0x82   : > { %2195 = vrot.lane.b32.xlu2 %v4533_v41, %s4236_s25  ;;  %v386_v10 = vsel %vm274_vm4, %v4764_v36, %v4011_v62  ;;  %vm611_vm4 = vcmask 1044480  }
  0x83   : > { %v692_v45 = vadd.f32 %v688_v20, %v676_v17  ;;  %v4829_v57 = vsel %vm281_vm5, %v4777_v32, %v386_v10  ;;  %vm632_vm5 = vcmask 1043456  }
  0x84   : > { %v4758_v37 = vpop.permute.xlu2 %914  ;;  %6868 = vst [vmem:[#allocation16_spill] sm:$0xff] %v4829_v57 }
  0x85   : > { %v2688_v46 = vsub.f32 %v4785_v40, %v4758_v37  ;;  %v935_v15 = vsub.f32 %v4612_v58, %v4758_v37 }
  0x87   : > { %v4807_v63 = vmul.f32 %v2688_v46, %v2688_v46  ;;  %v4014_v46 = vld [vmem:[%s4352_s14 + $0x64] sm:$0xff]  ;;  %v4860_v58 = vmul.f32 %v935_v15, %v935_v15 }
  0x88   : > { %1981 = vrot.lane.b32.xlu1 %v1972_v21, %s4236_s25 }
  0x89   : > { %702 = vrot.lane.b32.xlu0 %v691_v60, %s4236_s25 }
  0x8a   : > { %419 = vrot.lane.b32.xlu2 %v4538_v42, %s4236_s25 }
  0x8c   : > { %v1178_v38 = vpop.permute.xlu2 %1177 }
  0x91   : > { %704 = vrot.lane.b32.xlu0 %v692_v45, %s4236_s25 }
  0x92   : > { %2197 = vrot.lane.b32.xlu2 %v4543_v43, %s4236_s25  ;;  %v4799_v56 = vpop.permute.xlu1 %912 }
  0x93   : > { %v4804_v60 = vpop.permute.xlu0 %908  ;;  %v2687_v1 = vsub.f32 %v4795_v2, %v4799_v56  ;;  %v934_v47 = vsub.f32 %v4597_v55, %v4799_v56 }
  0x94   : > { %v4811_v9 = vpop.permute.xlu2 %1181  ;;  %v932_v20 = vsub.f32 %v4580_v53, %v4804_v60  ;;  %v2685_v21 = vsub.f32 %v4816_v28, %v4804_v60 }
  0x95   : > { %v2695_v19 = vmul.f32 %v2687_v1, %v2687_v1  ;;  %v4849_v55 = vmul.f32 %v934_v47, %v934_v47 }
  0x96   : > { %v940_v4 = vmul.f32 %v932_v20, %v932_v20  ;;  %v2693_v1 = vmul.f32 %v2685_v21, %v2685_v21 }
  0x97   : > { %v2703_v17 = vadd.f32 %v4807_v63, %v2695_v19 }
  0x9a   : > { %421 = vrot.lane.b32.xlu2 %v4575_v52, %s4236_s25  ;;  %v1172_v45 = vpop.permute.xlu1 %1171  ;;  %v388_v52 = vsel %vm276_vm8, %v4764_v36, %v4014_v46 }
  0x9b   : > { %v4833_v0 = vpop.permute.xlu0 %910  ;;  %v4857_v21 = vsel %vm284_vm9, %v4777_v32, %v388_v52 }
  0x9c   : > { %v933_v53 = vsub.f32 %v4585_v54, %v4833_v0  ;;  %v2686_v62 = vsub.f32 %v4829_v57, %v4833_v0  ;;  %v4842_v3 = vpop.permute.xlu2 %922  ;;  %v1195_v54 = vsub.f32 %v4393_v13, %v1172_v45  ;;  %6869 = vst [vmem:[#allocation17_spill] sm:$0xff] %v4857_v21  ;;  %v4008_v57 = vld [vmem:[%s4352_s14 + $0xa2] sm:$0xff] }
  0x9e   : > { %v941_v10 = vmul.f32 %v933_v53, %v933_v53  ;;  %v2694_v42 = vmul.f32 %v2686_v62, %v2686_v62  ;;  %v1203_v14 = vmul.f32 %v1195_v54, %v1195_v54 }
  0xa0   : > { %v948_v20 = vadd.f32 %v941_v10, %v940_v4  ;;  %v2701_v31 = vadd.f32 %v2694_v42, %v2693_v1  ;;  %v2702_v18 = vadd.f32 %v2695_v19, %v2694_v42  ;;  %v1204_v1 = vmul.f32 %v1196_v35, %v1196_v35  ;;  %v4016_v35 = vld [vmem:[%s4352_s14 + $0x84] sm:$0xff] }
  0xa1   : > { %v949_v28 = vadd.f32 %v4849_v55, %v941_v10  ;;  %v368_v10 = vsel %vm278_vm10, %v4449_v26, %v4008_v57  ;;  %v1200_v57 = vsub.f32 %v4374_v8, %v4811_v9 }
  0xa2   : > { %v952_v46 = vadd.f32 %v948_v20, %v4849_v55  ;;  %v917_v4 = vpop.permute.xlu1 %916  ;;  %v2705_v53 = vadd.f32 %v2701_v31, %v2695_v19  ;;  %v2706_v45 = vadd.f32 %v2702_v18, %v4807_v63  ;;  %v1198_v20 = vsub.f32 %v4445_v25, %v1178_v38  ;;  %v4017_v31 = vld [vmem:[%s4352_s14 + $0x94] sm:$0xff] }
  0xa3   : > { %v1176_v47 = vpop.permute.xlu0 %1175  ;;  %v936_v22 = vsub.f32 %v4627_v61, %v917_v4  ;;  %v2689_v52 = vsub.f32 %v4857_v21, %v917_v4  ;;  %v1211_v61 = vadd.f32 %v1204_v1, %v1203_v14  ;;  %v369_v38 = vsel %vm279_vm11, %v4449_v26, %v4009_v24 }
  0xa4   : > { %v1197_v42 = vsub.f32 %v4388_v12, %v1176_v47  ;;  %v4864_v62 = vpop.permute.xlu2 %1444  ;;  %v2709_v15 = vadd.f32 %v2705_v53, %v4807_v63  ;;  %v956_v54 = vadd.f32 %v952_v46, %v4860_v58  ;;  %v391_v53 = vsel %vm279_vm11, %v4764_v36, %v4017_v31 }
  0xa5   : > { %v4874_v18 = vmul.f32 %v936_v22, %v936_v22  ;;  %v2697_v47 = vmul.f32 %v2689_v52, %v2689_v52  ;;  %v1206_v46 = vmul.f32 %v1198_v20, %v1198_v20  ;;  %v390_v24 = vsel %vm278_vm10, %v4764_v36, %v4016_v35 }
  0xa6   : > { %v4872_v19 = vmul.f32 %v1197_v42, %v1197_v42  ;;  %v1708_v42 = vsub.f32 %v4733_v6, %v4758_v37  ;;  %v953_v26 = vadd.f32 %v949_v28, %v4860_v58  ;;  %v1709_v36 = vsub.f32 %v4726_v16, %v917_v4 }
  0xa7   : > { %v960_v21 = vadd.f32 %v956_v54, %v4874_v18  ;;  %v4897_v54 = vadd.f32 %v2709_v15, %v2697_v47  ;;  %v2710_v31 = vadd.f32 %v2706_v45, %v2697_v47  ;;  %v2707_v29 = vadd.f32 %v2703_v17, %v2697_v47 }
  0xa8   : > { %v1215_v22 = vadd.f32 %v1211_v61, %v4872_v19  ;;  %v1212_v2 = vadd.f32 %v4872_v19, %v1204_v1  ;;  %v2704_v45 = vadd.f32 %v2697_v47, %v4807_v63  ;;  %v4919_v40 = vmul.f32 %v1708_v42, %v1708_v42 }
  0xa9   : > { %969 = vrot.lane.b32.xlu0 %v960_v21, %s4236_s25  ;;  %6870 = vst [vmem:[#allocation18_spill] sm:$0xff] %v4897_v54  ;;  %v4916_v54 = vsel %vm286_vm13, %v4676_v50, %v369_v38  ;;  %v4924_v63 = vsel %vm286_vm13, %v4777_v32, %v391_v53  ;;  %v950_v47 = vadd.f32 %v4860_v58, %v4849_v55 }
  0xaa   : > { %v919_v52 = vpop.permute.xlu1 %918  ;;  %v1219_v35 = vadd.f32 %v1215_v22, %v1206_v46  ;;  %6871 = vst [vmem:[#allocation19_spill] sm:$0xff] %v4916_v54  ;;  %v4929_v22 = vmul.f32 %v1709_v36, %v1709_v36  ;;  %v4934_v38 = vsel %vm285_vm12, %v4676_v50, %v368_v10  ;;  %v4939_v42 = vsel %vm285_vm12, %v4777_v32, %v390_v24 }
  0xab   : > { %v1180_v14 = vpop.permute.xlu0 %1179  ;;  %v937_v21 = vsub.f32 %v4564_v49, %v919_v52  ;;  %v2690_v61 = vsub.f32 %v4777_v32, %v919_v52  ;;  %v1710_v28 = vsub.f32 %v4676_v50, %v919_v52  ;;  %6872 = vst [vmem:[#allocation20_spill] sm:$0xff] %v4924_v63  ;;  %v1208_v34 = vmul.f32 %v1200_v57, %v1200_v57 }
  0xac   : > { %v1199_v37 = vsub.f32 %v4474_v30, %v1180_v14  ;;  %v4900_v20 = vpop.permute.xlu2 %1446  ;;  %v957_v14 = vadd.f32 %v953_v26, %v4874_v18  ;;  %6873 = vst [vmem:[#allocation21_spill] sm:$0xff] %v4934_v38  ;;  %v1712_v53 = vsub.f32 %v4916_v54, %v4842_v3  ;;  %v1216_v52 = vadd.f32 %v1212_v2, %v1206_v46 }
  0xad   : > { %v4910_v15 = vmul.f32 %v937_v21, %v937_v21  ;;  %v2698_v9 = vmul.f32 %v2690_v61, %v2690_v61  ;;  %6874 = vst [vmem:[#allocation22_spill] sm:$0xff] %v4939_v42  ;;  %v2692_v55 = vsub.f32 %v4924_v63, %v4842_v3  ;;  %v4947_v10 = vmul.f32 %v1710_v28, %v1710_v28 }
  0xae   : > { %v1207_v17 = vmul.f32 %v1199_v37, %v1199_v37  ;;  %v954_v33 = vadd.f32 %v950_v47, %v4874_v18  ;;  %v1720_v63 = vmul.f32 %v1712_v53, %v1712_v53 }
  0xaf   : > { %v961_v1 = vadd.f32 %v957_v14, %v4910_v15  ;;  %v4950_v24 = vadd.f32 %v2710_v31, %v2698_v9  ;;  %v1724_v14 = vadd.f32 %v4929_v22, %v4919_v40  ;;  %v2711_v28 = vadd.f32 %v2707_v29, %v2698_v9 }
  0xb0   : > { %v1223_v4 = vadd.f32 %v1219_v35, %v1207_v17  ;;  %v1220_v36 = vadd.f32 %v1216_v52, %v1207_v17  ;;  %v958_v35 = vadd.f32 %v954_v33, %v4910_v15  ;;  %v2700_v33 = vmul.f32 %v2692_v55, %v2692_v55 }
  0xb1   : > { %971 = vrot.lane.b32.xlu0 %v961_v1, %s4236_s25  ;;  %6875 = vst [vmem:[#allocation23_spill] sm:$0xff] %v4950_v24  ;;  %v1728_v32 = vadd.f32 %v1724_v14, %v4947_v10  ;;  %v939_v14 = vsub.f32 %v4738_v44, %v4842_v3 }
  0xb2   : > { %1232 = vrot.lane.b32.xlu1 %v1223_v4, %s4237_s27  ;;  %v1184_v21 = vpop.permute.xlu1 %1183  ;;  %v2708_v4 = vadd.f32 %v2704_v45, %v2698_v9  ;;  %v1224_v52 = vadd.f32 %v1220_v36, %v1208_v34 }
  0xb3   : > { %v921_v37 = vpop.permute.xlu0 %920  ;;  %v1201_v24 = vsub.f32 %v4533_v41, %v1184_v21 }
  0xb4   : > { %v938_v61 = vsub.f32 %v4670_v48, %v921_v37  ;;  %v1711_v2 = vsub.f32 %v4934_v38, %v921_v37  ;;  %v2691_v26 = vsub.f32 %v4939_v42, %v921_v37  ;;  %v4955_v57 = vpop.permute.xlu2 %2189  ;;  %v1213_v37 = vadd.f32 %v1206_v46, %v4872_v19 }
  0xb5   : > { %v1214_v42 = vadd.f32 %v1207_v17, %v1206_v46  ;;  %v1209_v9 = vmul.f32 %v1201_v24, %v1201_v24 }
  0xb6   : > { %v946_v1 = vmul.f32 %v938_v61, %v938_v61  ;;  %v4960_v47 = vmul.f32 %v1711_v2, %v1711_v2  ;;  %v2699_v31 = vmul.f32 %v2691_v26, %v2691_v26  ;;  %v1217_v45 = vadd.f32 %v1213_v37, %v1207_v17 }
  0xb7   : > { %v1218_v46 = vadd.f32 %v1214_v42, %v1208_v34  ;;  %v1706_v17 = vsub.f32 %v4685_v51, %v4833_v0  ;;  %v1707_v0 = vsub.f32 %v4710_v7, %v4799_v56 }
  0xb8   : > { %v962_v54 = vadd.f32 %v958_v35, %v946_v1  ;;  %v1732_v48 = vadd.f32 %v1728_v32, %v4960_v47  ;;  %v4966_v38 = vadd.f32 %v2711_v28, %v2699_v31  ;;  %v2712_v29 = vadd.f32 %v2708_v4, %v2699_v31 }
  0xb9   : > { %v1705_v32 = vsub.f32 %v4696_v5, %v4804_v60  ;;  %v1221_v24 = vadd.f32 %v1217_v45, %v1208_v34  ;;  %v1222_v26 = vadd.f32 %v1218_v46, %v1209_v9  ;;  %v4983_v42 = vmul.f32 %v1706_v17, %v1706_v17 }
  0xba   : > { %1234 = vrot.lane.b32.xlu1 %v1224_v52, %s4237_s27  ;;  %973 = vrot.lane.b32.xlu0 %v962_v54, %s4236_s25  ;;  %v1443_v21 = vpop.permute.xlu1 %1442  ;;  %v4970_v61 = vadd.f32 %v1732_v48, %v1720_v63  ;;  %v4972_v19 = vadd.f32 %v2712_v29, %v2700_v33  ;;  %v951_v48 = vadd.f32 %v4874_v18, %v4860_v58 }
  0xbb   : > { %v1186_v53 = vpop.permute.xlu0 %1185  ;;  %v1225_v36 = vadd.f32 %v1221_v24, %v1209_v9  ;;  %v1713_v63 = vmul.f32 %v1705_v32, %v1705_v32  ;;  %v947_v31 = vmul.f32 %v939_v14, %v939_v14  ;;  %v4999_v3 = vmul.f32 %v1707_v0, %v1707_v0 }
  0xbc   : > { %v1202_v55 = vsub.f32 %v4543_v43, %v1186_v53  ;;  %v4975_v2 = vpop.permute.xlu2 %407  ;;  %v955_v60 = vadd.f32 %v951_v48, %v4910_v15  ;;  %v1466_v37 = vsub.f32 %v4393_v13, %v1443_v21  ;;  %v1467_v29 = vsub.f32 %v4435_v23, %v4864_v62 }
  0xbd   : > { %v1721_v4 = vadd.f32 %v4983_v42, %v1713_v63  ;;  %v1468_v24 = vsub.f32 %v4388_v12, %v4900_v20  ;;  %v1961_v14 = vadd.f32 %v4744_v39, %v4740_v27 }
  0xbe   : > { %v1210_v54 = vmul.f32 %v1202_v55, %v1202_v55  ;;  %v959_v18 = vadd.f32 %v955_v60, %v946_v1  ;;  %v5010_v1 = vld [vmem:[%s6782_s1] sm:$0xff]  ;;  %v1474_v53 = vmul.f32 %v1466_v37, %v1466_v37  ;;  %v1475_v17 = vmul.f32 %v1467_v29, %v1467_v29 }
  0xbf   : > { %v1725_v33 = vadd.f32 %v1721_v4, %v4999_v3  ;;  %492 = vmatpush.msra.mxu0 %v5010_v1  ;;  %729 = vmatpush.msra.mxu1 %v5010_v1  ;;  %v5040_v60 = vmul.f32 %v1468_v24, %v1468_v24  ;;  %v1949_v29 = vsub.f32 %v4676_v50, %v4564_v49 }
  0xc0   : > { %v1226_v35 = vadd.f32 %v1222_v26, %v1210_v54  ;;  %v963_v52 = vadd.f32 %v959_v18, %v947_v31  ;;  %1000 = vmatpush.msra.mxu2 %v5010_v1  ;;  %1263 = vmatpush.msra.mxu3 %v5010_v1 }
  0xc1   : > { %v1729_v62 = vadd.f32 %v1725_v33, %v4919_v40  ;;  %1534 = vmatpush.msrb.mxu0 %v5010_v1  ;;  %1773 = vmatpush.msrb.mxu1 %v5010_v1 }
  0xc2   : > { %1236 = vrot.lane.b32.xlu1 %v1225_v36, %s4237_s27  ;;  %1238 = vrot.lane.b32.xlu2 %v1226_v35, %s4237_s27  ;;  %v4994_v28 = vpop.permute.xlu1 %2185  ;;  %v2210_v36 = vsub.f32 %v4733_v6, %v4955_v57  ;;  %v1482_v35 = vadd.f32 %v1475_v17, %v1474_v53 }
  0xc3   : > { %v4992_v34 = vpop.permute.xlu0 %2183  ;;  %v2208_v56 = vsub.f32 %v4685_v51, %v4994_v28  ;;  %2012 = vmatpush.msrb.mxu2 %v5010_v1  ;;  %2275 = vmatpush.msrb.mxu3 %v5010_v1  ;;  %v1733_v63 = vadd.f32 %v1729_v62, %v4929_v22 }
  0xc4   : > { %v4996_v58 = vpop.permute.xlu2 %413  ;;  %v2207_v15 = vsub.f32 %v4696_v5, %v4992_v34  ;;  %v1486_v27 = vadd.f32 %v1482_v35, %v5040_v60  ;;  %v431_v35 = vsub.f32 %v4393_v13, %v4975_v2 }
  0xc5   : > { %v2216_v46 = vmul.f32 %v2208_v56, %v2208_v56 }
  0xc6   : > { %v2215_v21 = vmul.f32 %v2207_v15, %v2207_v15  ;;  %v5051_v15 = vmul.f32 %v2210_v36, %v2210_v36  ;;  %v439_v13 = vmul.f32 %v431_v35, %v431_v35 }
  0xc8   : > { %v2223_v48 = vadd.f32 %v2216_v46, %v2215_v21 }
  0xca   : > { %975 = vrot.lane.b32.xlu1 %v963_v52, %s4236_s25  ;;  %v1449_v9 = vpop.permute.xlu1 %1448 }
  0xcb   : > { %v5016_v45 = vpop.permute.xlu0 %2187  ;;  %v1469_v54 = vsub.f32 %v4445_v25, %v1449_v9  ;;  %v1965_v9 = vadd.f32 %v1961_v14, %v4753_v11 }
  0xcc   : > { %v2209_v55 = vsub.f32 %v4710_v7, %v5016_v45  ;;  %v5022_v32 = vpop.permute.xlu2 %2193 }
  0xcd   : > { %v5043_v0 = vmul.f32 %v1469_v54, %v1469_v54  ;;  %v2212_v4 = vsub.f32 %v4676_v50, %v5022_v32 }
  0xce   : > { %v5030_v26 = vmul.f32 %v2209_v55, %v2209_v55 }
  0xcf   : > { %v5066_v62 = vmul.f32 %v2212_v4, %v2212_v4 }
  0xd0   : > { %v2227_v20 = vadd.f32 %v2223_v48, %v5030_v26  ;;  %v2224_v18 = vadd.f32 %v5030_v26, %v2216_v46  ;;  %v1490_v46 = vadd.f32 %v1486_v27, %v5043_v0  ;;  %v5076_v48 = vmul.f32 %v1949_v29, %v1949_v29 }
  0xd1   : > { %v434_v29 = vsub.f32 %v4445_v25, %v4996_v58 }
  0xd2   : > { %1742 = vrot.lane.b32.xlu1 %v1733_v63, %s4236_s25  ;;  %v5049_v37 = vpop.permute.xlu1 %2191  ;;  %v2231_v55 = vadd.f32 %v2227_v20, %v5051_v15  ;;  %v2228_v24 = vadd.f32 %v2224_v18, %v5051_v15  ;;  %v1969_v63 = vadd.f32 %v1965_v9, %v4756_v59 }
  0xd3   : > { %v1451_v31 = vpop.permute.xlu0 %1450  ;;  %v2211_v33 = vsub.f32 %v4726_v16, %v5049_v37 }
  0xd4   : > { %v1470_v56 = vsub.f32 %v4474_v30, %v1451_v31  ;;  %v418_v52 = vpop.permute.xlu2 %417 }
  0xd5   : > { %v5062_v21 = vmul.f32 %v2211_v33, %v2211_v33  ;;  %v1722_v33 = vadd.f32 %v4999_v3, %v4983_v42  ;;  %v5096_v42 = vmul.f32 %v434_v29, %v434_v29 }
  0xd6   : > { %v5060_v53 = vmul.f32 %v1470_v56, %v1470_v56  ;;  %v1973_v56 = vadd.f32 %v1969_v63, %v5076_v48 }
  0xd7   : > { %v2235_v36 = vadd.f32 %v2231_v55, %v5062_v21  ;;  %v2232_v49 = vadd.f32 %v2228_v24, %v5062_v21 }
  0xd8   : > { %v1494_v54 = vadd.f32 %v1490_v46, %v5060_v53 }
  0xd9   : > { %2244 = vrot.lane.b32.xlu0 %v2235_v36, %s4236_s25  ;;  %v2236_v18 = vadd.f32 %v2232_v49, %v5066_v62  ;;  %v1962_v49 = vadd.f32 %v4753_v11, %v4744_v39  ;;  %v2225_v39 = vadd.f32 %v5051_v15, %v5030_v26  ;;  %v6879_v26 = vld [vmem:[#allocation14_spill] sm:$0xff] }
  0xda   : > { %1503 = vrot.lane.b32.xlu2 %v1494_v54, %s4237_s27  ;;  %v412_v20 = vpop.permute.xlu1 %411  ;;  %v1726_v54 = vadd.f32 %v1722_v33, %v4919_v40 }
  0xdb   : > { %v410_v14 = vpop.permute.xlu0 %409  ;;  %v433_v27 = vsub.f32 %v4388_v12, %v412_v20  ;;  %2246 = vrot.lane.b32.xlu1 %v2236_v18, %s4236_s25  ;;  %v1966_v33 = vadd.f32 %v1962_v49, %v4756_v59  ;;  %v436_v49 = vsub.f32 %v4374_v8, %v418_v52  ;;  %v6881_v52 = vld [vmem:[#allocation15_spill] sm:$0xff] }
  0xdc   : > { %v432_v4 = vsub.f32 %v4435_v23, %v410_v14  ;;  %v5081_v31 = vpop.permute.xlu2 %2195  ;;  %v1483_v23 = vadd.f32 %v5040_v60, %v1475_v17  ;;  %v1730_v17 = vadd.f32 %v1726_v54, %v4929_v22 }
  0xdd   : > { %v441_v46 = vmul.f32 %v433_v27, %v433_v27 }
  0xde   : > { %v440_v2 = vmul.f32 %v432_v4, %v432_v4  ;;  %v1487_v36 = vadd.f32 %v1483_v23, %v5043_v0  ;;  %v1734_v29 = vadd.f32 %v1730_v17, %v4947_v10  ;;  %v6878_v23 = vld [vmem:[#allocation13_spill] sm:$0xff] }
  0xe0   : > { %v447_v9 = vadd.f32 %v440_v2, %v439_v13  ;;  %v1491_v63 = vadd.f32 %v1487_v36, %v5060_v53  ;;  %v448_v14 = vadd.f32 %v441_v46, %v440_v2  ;;  %v6877_v13 = vld [vmem:[#allocation11_spill] sm:$0xff]  ;;  %v2229_v36 = vadd.f32 %v2225_v39, %v5062_v21 }
  0xe2   : > { %v451_v55 = vadd.f32 %v447_v9, %v441_v46  ;;  %1983 = vrot.lane.b32.xlu2 %v1973_v56, %s4236_s25  ;;  %v1453_v24 = vpop.permute.xlu1 %1452 }
  0xe3   : > { %v416_v12 = vpop.permute.xlu0 %415  ;;  %v1471_v35 = vsub.f32 %v4374_v8, %v1453_v24  ;;  %v6880_v24 = vld [vmem:[#allocation6_spill] sm:$0xff]  ;;  %v1963_v8 = vadd.f32 %v4756_v59, %v4753_v11  ;;  %v6882_v11 = vld [vmem:[#allocation16_spill] sm:$0xff] }
  0xe4   : > { %v435_v25 = vsub.f32 %v4474_v30, %v416_v12  ;;  %v420_v58 = vpop.permute.xlu2 %419  ;;  %v455_v4 = vadd.f32 %v451_v55, %v5096_v42  ;;  %v6876_v30 = vld [vmem:[#allocation21_spill] sm:$0xff]  ;;  %v5119_v55 = vsub.f32 %v6878_v23, %v4733_v6  ;;  %v5123_v12 = vsub.f32 %v6879_v26, %v4710_v7 }
  0xe5   : > { %v5104_v18 = vmul.f32 %v1471_v35, %v1471_v35  ;;  %v2213_v27 = vsub.f32 %v6876_v30, %v5081_v31  ;;  %v1950_v56 = vsub.f32 %v6876_v30, %v6877_v13  ;;  %v5127_v54 = vsub.f32 %v6879_v26, %v6880_v24 }
  0xe6   : > { %v5102_v20 = vmul.f32 %v435_v25, %v435_v25  ;;  %v452_v25 = vadd.f32 %v448_v14, %v5096_v42  ;;  %v1484_v6 = vadd.f32 %v5043_v0, %v5040_v60  ;;  %v3163_v14 = vsub.f32 %v6881_v52, %v4696_v5 }
  0xe7   : > { %v1495_v9 = vadd.f32 %v1491_v63, %v5104_v18  ;;  %v5136_v35 = vmul.f32 %v2213_v27, %v2213_v27  ;;  %v1958_v63 = vmul.f32 %v1950_v56, %v1950_v56  ;;  %v1723_v56 = vadd.f32 %v4919_v40, %v4999_v3 }
  0xe8   : > { %v459_v2 = vadd.f32 %v455_v4, %v5102_v20  ;;  %v1970_v4 = vadd.f32 %v1966_v33, %v5076_v48  ;;  %v1488_v13 = vadd.f32 %v1484_v6, %v5060_v53  ;;  %v456_v27 = vadd.f32 %v452_v25, %v5102_v20 }
  0xe9   : > { %1505 = vrot.lane.b32.xlu0 %v1495_v9, %s4237_s27  ;;  %v2924_v33 = vsub.f32 %v6881_v52, %v4992_v34  ;;  %v2925_v59 = vsub.f32 %v6882_v11, %v4994_v28  ;;  %v2233_v5 = vadd.f32 %v2229_v36, %v5066_v62  ;;  %v6883_v34 = vld [vmem:[#allocation19_spill] sm:$0xff]  ;;  %v1967_v28 = vadd.f32 %v1963_v8, %v5076_v48 }
  0xea   : > { %1744 = vrot.lane.b32.xlu2 %v1734_v29, %s4236_s25  ;;  %4018 = vmatmul.msk.f32.vlgmr.msra.gmra.mxu0 %vm464_vm14, %v459_v2  ;;  %v1455_v7 = vpop.permute.xlu1 %1454  ;;  %v444_v29 = vmul.f32 %v436_v49, %v436_v49  ;;  %v449_v2 = vadd.f32 %v5096_v42, %v441_v46  ;;  %v1492_v9 = vadd.f32 %v1488_v13, %v5104_v18  ;;  %v6884_v46 = vld [vmem:[#allocation5_spill] sm:$0xff] }
  0xeb   : > { %v699_v17 = vpop.permute.xlu0 %698  ;;  %v1472_v60 = vsub.f32 %v4533_v41, %v1455_v7  ;;  %2514 = vmatpush.msra.mxu0 %v5010_v1  ;;  %v2237_v40 = vadd.f32 %v2233_v5, %v5136_v35  ;;  %v1974_v3 = vadd.f32 %v1970_v4, %v1958_v63  ;;  %v1951_v25 = vsub.f32 %v6883_v34, %v4738_v44 }
  0xec   : > { %v5144_v39 = vpop.permute.xlu2 %2197  ;;  %4022 = vmatmul.msk.f32.vlgmr.msra.gmra.mxu1 %vm464_vm14, %v699_v17  ;;  %v437_v36 = vsub.f32 %v4533_v41, %v420_v58  ;;  %v453_v6 = vadd.f32 %v449_v2, %v5102_v20  ;;  %v460_v7 = vadd.f32 %v456_v27, %v444_v29  ;;  %v2446_v17 = vsub.f32 %v6881_v52, %v6884_v46 }
  0xed   : > { %v1480_v24 = vmul.f32 %v1472_v60, %v1472_v60  ;;  %2753 = vmatpush.msra.mxu1 %v5010_v1  ;;  %v3164_v13 = vsub.f32 %v6882_v11, %v4685_v51  ;;  %v6885_v60 = vld [vmem:[#allocation4_spill] sm:$0xff]  ;;  %v2926_v44 = vsub.f32 %v6879_v26, %v5016_v45  ;;  %v2932_v5 = vmul.f32 %v2924_v33, %v2924_v33 }
  0xee   : > { %v2447_v4 = vsub.f32 %v6882_v11, %v6885_v60  ;;  %v1485_v41 = vadd.f32 %v5060_v53, %v5043_v0  ;;  %v1727_v48 = vadd.f32 %v1723_v56, %v4929_v22  ;;  %v5180_v58 = vmul.f32 %v2925_v59, %v2925_v59 }
  0xef   : > { %v1496_v49 = vadd.f32 %v1492_v9, %v1480_v24  ;;  %v1959_v52 = vmul.f32 %v1951_v25, %v1951_v25  ;;  %v1971_v45 = vadd.f32 %v1967_v28, %v1958_v63  ;;  %v445_v26 = vmul.f32 %v437_v36, %v437_v36  ;;  %v6886_v36 = vld [vmem:[#allocation17_spill] sm:$0xff] }
  0xf0   : > { %v457_v27 = vadd.f32 %v453_v6, %v444_v29  ;;  %v1489_v0 = vadd.f32 %v1485_v41, %v5104_v18  ;;  %v2927_v22 = vsub.f32 %v6878_v23, %v4955_v57  ;;  %v5189_v56 = vmul.f32 %v2926_v44, %v2926_v44 }
  0xf1   : > { %1507 = vrot.lane.b32.xlu1 %v1496_v49, %s4237_s27  ;;  %1985 = vrot.lane.b32.xlu0 %v1974_v3, %s4236_s25  ;;  %v1731_v11 = vadd.f32 %v1727_v48, %v4947_v10  ;;  %v3171_v59 = vmul.f32 %v3163_v14, %v3163_v14  ;;  %v450_v63 = vadd.f32 %v5102_v20, %v5096_v42 }
  0xf2   : > { %2248 = vrot.lane.b32.xlu2 %v2237_v40, %s4236_s25  ;;  %4019 = vmatmul.msk.f32.gmra.mxu0 %vm464_vm14, %v460_v7  ;;  %v1457_v51 = vpop.permute.xlu1 %1456  ;;  %v1493_v2 = vadd.f32 %v1489_v0, %v1480_v24  ;;  %v3172_v40 = vmul.f32 %v3164_v13, %v3164_v13  ;;  %v2940_v18 = vadd.f32 %v5180_v58, %v2932_v5 }
  0xf3   : > { %v701_v8 = vpop.permute.xlu0 %700  ;;  %v1473_v53 = vsub.f32 %v4543_v43, %v1457_v51  ;;  %v1975_v3 = vadd.f32 %v1971_v45, %v1959_v52  ;;  %v2454_v25 = vmul.f32 %v2446_v17, %v2446_v17  ;;  %v2455_v28 = vmul.f32 %v2447_v4, %v2447_v4  ;;  %v6888_v51 = vld [vmem:[#allocation8_spill] sm:$0xff] }
  0xf4   : > { %4023 = vmatmul.msk.f32.gmra.mxu1 %vm464_vm14, %v701_v8  ;;  %v422_v33 = vpop.permute.xlu2 %421  ;;  %v2928_v57 = vsub.f32 %v6886_v36, %v5049_v37  ;;  %v461_v6 = vadd.f32 %v457_v27, %v445_v26  ;;  %v5200_v10 = vmul.f32 %v5123_v12, %v5123_v12  ;;  %v2226_v42 = vadd.f32 %v5062_v21, %v5051_v15  ;;  %v6887_v37 = vld [vmem:[#allocation7_spill] sm:$0xff] }
  0xf5   : > { %v1481_v9 = vmul.f32 %v1473_v53, %v1473_v53  ;;  %v438_v49 = vsub.f32 %v4543_v43, %v422_v33  ;;  %v2214_v20 = vsub.f32 %v6883_v34, %v5144_v39  ;;  %v1735_v14 = vadd.f32 %v1731_v11, %v4960_v47 }
  0xf6   : > { %v2944_v24 = vadd.f32 %v2940_v18, %v5189_v56  ;;  %v454_v46 = vadd.f32 %v450_v63, %v444_v29  ;;  %v3179_v43 = vadd.f32 %v3172_v40, %v3171_v59  ;;  %v2449_v12 = vsub.f32 %v6878_v23, %v6887_v37  ;;  %v6889_v59 = vld [vmem:[#allocation12_spill] sm:$0xff] }
  0xf7   : > { %v1497_v7 = vadd.f32 %v1493_v2, %v1481_v9  ;;  %v2456_v17 = vmul.f32 %v5127_v54, %v5127_v54  ;;  %v2462_v47 = vadd.f32 %v2455_v28, %v2454_v25  ;;  %v5216_v21 = vmul.f32 %v2927_v22, %v2927_v22 }
  0xf8   : > { %v5218_v29 = vmul.f32 %v2928_v57, %v2928_v57  ;;  %v446_v13 = vmul.f32 %v438_v49, %v438_v49  ;;  %v5223_v60 = vmul.f32 %v5119_v55, %v5119_v55  ;;  %v2230_v23 = vadd.f32 %v2226_v42, %v5066_v62 }
  0xf9   : > { %1987 = vrot.lane.b32.xlu1 %v1975_v3, %s4236_s25  ;;  %1746 = vrot.lane.b32.xlu0 %v1735_v14, %s4236_s25  ;;  %v2222_v54 = vmul.f32 %v2214_v20, %v2214_v20  ;;  %v3167_v4 = vsub.f32 %v6886_v36, %v4726_v16  ;;  %v458_v44 = vadd.f32 %v454_v46, %v445_v26  ;;  %v6893_v14 = vld [vmem:[#allocation22_spill] sm:$0xff] }
  0xfa   : > { %4020 = vmatmul.msk.f32.gmra.mxu0 %vm464_vm14, %v461_v6  ;;  %1509 = vrot.lane.b32.xlu2 %v1497_v7, %s4237_s27  ;;  %v2948_v5 = vadd.f32 %v2944_v24, %v5216_v21  ;;  %v3183_v41 = vadd.f32 %v3179_v43, %v5200_v10  ;;  %v5230_v48 = vmul.f32 %v2449_v12, %v2449_v12 }
  0xfb   : > { %v703_v15 = vpop.permute.xlu0 %702  ;;  %v2450_v8 = vsub.f32 %v6886_v36, %v6888_v51  ;;  %v2234_v52 = vadd.f32 %v2230_v23, %v5136_v35  ;;  %v2466_v55 = vadd.f32 %v2462_v47, %v2456_v17  ;;  %v462_v45 = vadd.f32 %v458_v44, %v446_v13 }
  0xfc   : > { %4024 = vmatmul.msk.f32.gmra.mxu1 %vm464_vm14, %v703_v15  ;;  %v2952_v62 = vadd.f32 %v2948_v5, %v5218_v29  ;;  %v3175_v16 = vmul.f32 %v3167_v4, %v3167_v4  ;;  %v3187_v26 = vadd.f32 %v3183_v41, %v5223_v60  ;;  %v3180_v0 = vadd.f32 %v5200_v10, %v3172_v40  ;;  %v6894_v41 = vld [vmem:[#allocation20_spill] sm:$0xff] }
  0xfd   : > { %v2238_v27 = vadd.f32 %v2234_v52, %v2222_v54  ;;  %v2458_v53 = vmul.f32 %v2450_v8, %v2450_v8  ;;  %v2470_v22 = vadd.f32 %v2466_v55, %v5230_v48  ;;  %v2463_v33 = vadd.f32 %v2456_v17, %v2455_v28  ;;  %v6891_v28 = vld [vmem:[#allocation18_spill] sm:$0xff]  ;;  %v1982_v52 = vpop.permute.xlu1 %1981 }
  0xfe   : > { %v2941_v11 = vadd.f32 %v5189_v56, %v5180_v58  ;;  %v3168_v63 = vsub.f32 %v6889_v59, %v4676_v50  ;;  %v3184_v2 = vadd.f32 %v3180_v0, %v5223_v60  ;;  %v3191_v9 = vadd.f32 %v3187_v26, %v3175_v16 }
  0xff   : > { %v2474_v40 = vadd.f32 %v2470_v22, %v2458_v53  ;;  %v2467_v3 = vadd.f32 %v2463_v33, %v5230_v48  ;;  %v2929_v25 = vsub.f32 %v6889_v59, %v5022_v32  ;;  %v2464_v57 = vadd.f32 %v5230_v48, %v2456_v17  ;;  %v6892_v32 = vld [vmem:[#allocation9_spill] sm:$0xff]  ;;  %v6896_v22 = vld [vmem:[#allocation10_spill] sm:$0xff] }
 0x100   : > { %v3176_v36 = vmul.f32 %v3168_v63, %v3168_v63  ;;  %v3188_v58 = vadd.f32 %v3184_v2, %v3175_v16  ;;  %v2945_v49 = vadd.f32 %v2941_v11, %v5216_v21  ;;  %v2452_v24 = vsub.f32 %v6893_v14, %v6892_v32 }
 0x101   : > { %1748 = vrot.lane.b32.xlu1 %v4970_v61, %s4236_s25  ;;  %2250 = vrot.lane.b32.xlu0 %v2238_v27, %s4236_s25  ;;  %v6890_v61 = vld [vmem:[#allocation3_spill] sm:$0xff]  ;;  %v2471_v6 = vadd.f32 %v2467_v3, %v2458_v53  ;;  %v2937_v7 = vmul.f32 %v2929_v25, %v2929_v25  ;;  %v2468_v46 = vadd.f32 %v2464_v57, %v2458_v53 }
 0x102   : > { %4021 = vmatmul.msk.f32.gmra.mxu0 %vm464_vm14, %v462_v45  ;;  %2961 = vrot.lane.b32.xlu2 %v2952_v62, %s4236_s25  ;;  %v2451_v18 = vsub.f32 %v6889_v59, %v6890_v61  ;;  %v2949_v42 = vadd.f32 %v2945_v49, %v5218_v29  ;;  %v3192_v20 = vadd.f32 %v3188_v58, %v3176_v36 }
 0x103   : > { %v705_v35 = vpop.permute.xlu0 %704  ;;  %v2942_v37 = vadd.f32 %v5216_v21, %v5189_v56  ;;  %v2930_v12 = vsub.f32 %v6893_v14, %v5081_v31  ;;  %v2460_v15 = vmul.f32 %v2452_v24, %v2452_v24  ;;  %v3181_v23 = vadd.f32 %v5223_v60, %v5200_v10  ;;  %v6895_v10 = vld [vmem:[#allocation23_spill] sm:$0xff] }
 0x104   : > { %4025 = vmatmul.msk.f32.gmra.mxu1 %vm464_vm14, %v705_v35  ;;  %v2459_v50 = vmul.f32 %v2451_v18, %v2451_v18  ;;  %v2953_v17 = vadd.f32 %v2949_v42, %v2937_v7  ;;  %v3169_v56 = vsub.f32 %v6893_v14, %v6876_v30  ;;  %v2943_v5 = vadd.f32 %v5218_v29, %v5216_v21 }
 0x105   : > { %v2946_v13 = vadd.f32 %v2942_v37, %v5218_v29  ;;  %v2938_v54 = vmul.f32 %v2930_v12, %v2930_v12  ;;  %v3185_v44 = vadd.f32 %v3181_v23, %v3175_v16  ;;  %v2931_v51 = vsub.f32 %v6894_v41, %v5144_v39 }
 0x106   : > { %v2475_v43 = vadd.f32 %v2471_v6, %v2459_v50  ;;  %v2472_v47 = vadd.f32 %v2468_v46, %v2459_v50  ;;  %v3177_v55 = vmul.f32 %v3169_v56, %v3169_v56  ;;  %v3182_v30 = vadd.f32 %v3175_v16, %v5223_v60 }
 0x107   : > { %v2950_v31 = vadd.f32 %v2946_v13, %v2937_v7  ;;  %v3189_v45 = vadd.f32 %v3185_v44, %v3176_v36  ;;  %v2465_v62 = vadd.f32 %v2458_v53, %v5230_v48  ;;  %v2947_v27 = vadd.f32 %v2943_v5, %v2937_v7 }
 0x108   : > { %v2476_v4 = vadd.f32 %v2472_v47, %v2460_v15  ;;  %v2939_v21 = vmul.f32 %v2931_v51, %v2931_v51  ;;  %v3170_v26 = vsub.f32 %v6894_v41, %v6883_v34  ;;  %v3186_v35 = vadd.f32 %v3182_v30, %v3176_v36 }
 0x109   : > { %3200 = vrot.lane.b32.xlu1 %v3191_v9, %s4236_s25  ;;  %2483 = vrot.lane.b32.xlu0 %v2474_v40, %s4236_s25  ;;  %v2954_v8 = vadd.f32 %v2950_v31, %v2938_v54  ;;  %v2951_v39 = vadd.f32 %v2947_v27, %v2938_v54  ;;  %v3193_v0 = vadd.f32 %v3189_v45, %v3177_v55 }
 0x10a   : > { %2722 = vrot.lane.b32.xlu2 %v6891_v28, %s4236_s25  ;;  %v2453_v33 = vsub.f32 %v6894_v41, %v6896_v22  ;;  %v2469_v11 = vadd.f32 %v2465_v62, %v2459_v50  ;;  %v3178_v48 = vmul.f32 %v3170_v26, %v3170_v26  ;;  %v3190_v16 = vadd.f32 %v3186_v35, %v3177_v55 }
 0x10b   : > { %v2955_v60 = vadd.f32 %v2951_v39, %v2939_v21 }
 0x10c   : > { %v2461_v53 = vmul.f32 %v2453_v33, %v2453_v33  ;;  %v2473_v34 = vadd.f32 %v2469_v11, %v2460_v15  ;;  %v3194_v2 = vadd.f32 %v3190_v16, %v3178_v48 }
 0x10e   : > { %v2477_v9 = vadd.f32 %v2473_v34, %v2461_v53 }
 0x111   : > { %2485 = vrot.lane.b32.xlu1 %v2475_v43, %s4236_s25  ;;  %2963 = vrot.lane.b32.xlu0 %v2953_v17, %s4236_s25 }
 0x112   : > { %3202 = vrot.lane.b32.xlu2 %v3192_v20, %s4236_s25 }
 0x119   : > { %2965 = vrot.lane.b32.xlu1 %v2954_v8, %s4236_s25  ;;  %2724 = vrot.lane.b32.xlu0 %v6895_v10, %s4236_s25 }
 0x11a   : > { %2487 = vrot.lane.b32.xlu2 %v2476_v4, %s4236_s25 }
 0x11b   : > { %v970_v29 = vpop.permute.xlu0 %969 }
 0x11c   : > { %4030 = vmatmul.msk.f32.vlgmr.msra.gmra.mxu2 %vm464_vm14, %v970_v29  ;;  %v1239_v40 = vpop.permute.xlu2 %1238 }
 0x11d   : > { %2992 = vmatpush.msra.mxu2 %v5010_v1 }
 0x121   : > { %2726 = vrot.lane.b32.xlu1 %v4966_v38, %s4236_s25  ;;  %3204 = vrot.lane.b32.xlu0 %v3193_v0, %s4236_s25 }
 0x122   : > { %2967 = vrot.lane.b32.xlu2 %v2955_v60, %s4236_s25 }
 0x123   : > { %v972_v63 = vpop.permute.xlu0 %971 }
 0x124   : > { %v1233_v59 = vpop.permute.xlu1 %1232  ;;  %4031 = vmatmul.msk.f32.gmra.mxu2 %vm464_vm14, %v972_v63 }
 0x125   : > { %4038 = vmatmul.msk.f32.vlgmr.msra.gmra.mxu3 %vm464_vm14, %v1233_v59 }
 0x126   : > { %3231 = vmatpush.msra.mxu3 %v5010_v1 }
 0x129   : > { %3206 = vrot.lane.b32.xlu1 %v3194_v2, %s4236_s25  ;;  %2489 = vrot.lane.b32.xlu0 %v2477_v9, %s4236_s25 }
 0x12a   : > { %2728 = vrot.lane.b32.xlu2 %v4972_v19, %s4236_s25  ;;  %s3983_s25 = sshll.u32 %s4328_s6, 1 }
 0x12b   : > { %s261_s27 = sadd.s32 %s3983_s25, %s7024_s17  ;;  %s4119_s17 = smul.u32 (%p4309_p5), 96, %s4221_s18 }
 0x12c   : > { %v1235_v38 = vpop.permute.xlu1 %1234  ;;  %v974_v61 = vpop.permute.xlu0 %973  ;;  %s262_s7 = scalar_lea.vmem %s6785_s4, %s261_s27 }
 0x12d   : > { %4032 = vmatmul.msk.f32.gmra.mxu2 %vm464_vm14, %v974_v61  ;;  %4039 = vmatmul.msk.f32.gmra.mxu3 %vm464_vm14, %v1235_v38  ;;  %s3601_s6 = sadd.s32 (%p4309_p5), %s4119_s17, %s4325_s5 }
 0x12e   : > { %s4111_s9 = sshll.u32 (%p4309_p5), %s3601_s6, 3 }
 0x12f   : > { %s6664_s26 = scalar_lea.vmem (%p4309_p5), %s6783_s2, %s4111_s9 }
 0x134   : > { %v1504_v18 = vpop.permute.xlu2 %1503  ;;  %v1237_v3 = vpop.permute.xlu1 %1236 }
 0x135   : > { %4040 = vmatmul.msk.f32.gmra.mxu3 %vm464_vm14, %v1237_v3  ;;  %4046 = vmatmul.msk.f32.vlgmr.msrb.gmra.mxu0 %vm464_vm14, %v1504_v18 }
 0x13c   : > { %v976_v1 = vpop.permute.xlu1 %975  ;;  %v1984_v19 = vpop.permute.xlu2 %1983 }
 0x13d   : > { %4033 = vmatmul.msk.f32.gmra.mxu2 %vm464_vm14, %v976_v1  ;;  %4041 = vmatmul.msk.f32.gmra.mxu3 %vm464_vm14, %v1239_v40 }
 0x144   : > { %v1743_v25 = vpop.permute.xlu1 %1742  ;;  %v1745_v28 = vpop.permute.xlu2 %1744 }
 0x145   : > { %4054 = vmatmul.msk.f32.vlgmr.msrb.gmra.mxu1 %vm464_vm14, %v1743_v25  ;;  %4062 = vmatmul.msk.f32.vlgmr.msrb.gmra.mxu2 %vm464_vm14, %v1982_v52 }
 0x14b   : > { %v2245_v36 = vpop.permute.xlu0 %2244 }
 0x14c   : > { %4070 = vmatmul.msk.f32.vlgmr.msrb.gmra.mxu3 %vm464_vm14, %v2245_v36  ;;  %v2249_v57 = vpop.permute.xlu2 %2248 }
 0x14d   : > { %4055 = vmatmul.msk.f32.gmra.mxu1 %vm464_vm14, %v1745_v28  ;;  %4063 = vmatmul.msk.f32.gmra.mxu2 %vm464_vm14, %v1984_v19  ;;  %v2247_v58 = vpop.permute.xlu1 %2246 }
 0x154   : > { %4071 = vmatmul.msk.f32.gmra.mxu3 %vm464_vm14, %v2247_v58  ;;  %v1510_v6 = vpop.permute.xlu2 %1509 }
 0x15b   : > { %v1506_v50 = vpop.permute.xlu0 %1505 }
 0x15c   : > { %4072 = vmatmul.msk.f32.gmra.mxu3 %vm464_vm14, %v2249_v57  ;;  %4047 = vmatmul.msk.f32.gmra.mxu0 %vm464_vm14, %v1506_v50  ;;  %v5319_v43 = vpop.permute.xlu2 %2961 }
 0x163   : > { %v1508_v49 = vpop.permute.xlu1 %1507  ;;  %v1986_v7 = vpop.permute.xlu0 %1985 }
 0x164   : > { %4048 = vmatmul.msk.f32.gmra.mxu0 %vm464_vm14, %v1508_v49  ;;  %4064 = vmatmul.msk.f32.gmra.mxu2 %vm464_vm14, %v1986_v7  ;;  %v5342_v18 = vpop.permute.xlu2 %2722 }
 0x167   : > { %v494_v42 = vpop.f32.mrf.mxu0 }
 0x168   : > { %v510_v20 = vrot.slane %v494_v42, 7  ;;  %v518_v32 = vrot.slane %v494_v42, 6  ;;  %v526_v14 = vrot.slane %v494_v42, 5  ;;  %v534_v24 = vrot.slane %v494_v42, 4 }
 0x169   : > { %v731_v46 = vpop.f32.mrf.mxu1 }
 0x16a   : > { %v543_v37 = vsel %vm542_vm15, %v494_v42, %v510_v20  ;;  %v552_v12 = vsel %vm547_vm0, %v518_v32, %v526_v14  ;;  %v747_v17 = vrot.slane %v731_v46, 7  ;;  %v755_v15 = vrot.slane %v731_v46, 6 }
 0x16b   : > { %v548_v47 = vsel %vm547_vm0, %v543_v37, %v518_v32  ;;  %v557_v13 = vsel %vm556_vm1, %v552_v12, %v534_v24  ;;  %v763_v23 = vrot.slane %v731_v46, 5  ;;  %v771_v54 = vrot.slane %v731_v46, 4  ;;  %v1988_v52 = vpop.permute.xlu1 %1987  ;;  %v1747_v55 = vpop.permute.xlu0 %1746 }
 0x16c   : > { %v570_v4 = vrot.slane %v548_v47, 1  ;;  %v571_v56 = vrot.slane %v557_v13, 1  ;;  %v591_v31 = vrot.slane %v548_v47, 2  ;;  %v592_v44 = vrot.slane %v557_v13, 2  ;;  %4049 = vmatmul.msk.f32.gmra.mxu0 %vm464_vm14, %v1510_v6  ;;  %4056 = vmatmul.msk.f32.gmra.mxu1 %vm464_vm14, %v1747_v55 }
 0x16d   : > { %v612_v5 = vrot.slane %v548_v47, 3  ;;  %v613_v41 = vrot.slane %v557_v13, 3  ;;  %v633_v51 = vrot.slane %v548_v47, 4  ;;  %v634_v8 = vrot.slane %v557_v13, 4  ;;  %4065 = vmatmul.msk.f32.gmra.mxu2 %vm464_vm14, %v1988_v52 }
 0x16e   : > { %v572_v10 = vsel %vm569_vm2, %v570_v4, %v571_v56  ;;  %v593_v45 = vsel %vm590_vm3, %v591_v31, %v592_v44  ;;  %v779_v30 = vsel %vm542_vm15, %v731_v46, %v747_v17  ;;  %v787_v62 = vsel %vm547_vm0, %v755_v15, %v763_v23 }
 0x16f   : > { %v586_v27 = vadd.f32 %v572_v10, %v548_v47  ;;  %v614_v21 = vsel %vm611_vm4, %v612_v5, %v613_v41  ;;  %v635_v29 = vsel %vm632_vm5, %v633_v51, %v634_v8  ;;  %v783_v39 = vsel %vm547_vm0, %v779_v30, %v755_v15  ;;  %v497_v26 = vpop.f32.mrf.mxu0 }
 0x170   : > { %v791_v0 = vsel %vm556_vm1, %v787_v62, %v771_v54  ;;  %v803_v35 = vrot.slane %v783_v39, 1  ;;  %v823_v22 = vrot.slane %v783_v39, 2  ;;  %v843_v33 = vrot.slane %v783_v39, 3 }
 0x171   : > { %v607_v11 = vadd.f32 %v593_v45, %v586_v27  ;;  %v804_v60 = vrot.slane %v791_v0, 1  ;;  %v824_v48 = vrot.slane %v791_v0, 2  ;;  %v844_v16 = vrot.slane %v791_v0, 3  ;;  %v734_v2 = vpop.f32.mrf.mxu1 }
 0x172   : > { %v863_v53 = vrot.slane %v783_v39, 4  ;;  %v864_v34 = vrot.slane %v791_v0, 4  ;;  %v511_v59 = vrot.slane %v497_v26, 7  ;;  %v519_v63 = vrot.slane %v497_v26, 6 }
 0x173   : > { %v628_v9 = vadd.f32 %v614_v21, %v607_v11  ;;  %v805_v40 = vsel %vm569_vm2, %v803_v35, %v804_v60  ;;  %v825_v38 = vsel %vm590_vm3, %v823_v22, %v824_v48  ;;  %v845_v61 = vsel %vm611_vm4, %v843_v33, %v844_v16  ;;  %v1749_v50 = vpop.permute.xlu1 %1748  ;;  %v2251_v6 = vpop.permute.xlu0 %2250 }
 0x174   : > { %v819_v3 = vadd.f32 %v805_v40, %v783_v39  ;;  %v865_v1 = vsel %vm632_vm5, %v863_v53, %v864_v34  ;;  %v527_v19 = vrot.slane %v497_v26, 5  ;;  %v535_v25 = vrot.slane %v497_v26, 4  ;;  %4073 = vmatmul.msk.f32.gmra.mxu3 %vm464_vm14, %v2251_v6  ;;  %4057 = vmatmul.msk.f32.gmra.mxu1 %vm464_vm14, %v1749_v50  ;;  %v3203_v35 = vpop.permute.xlu2 %3202 }
 0x175   : > { %v649_v28 = vadd.f32 %v635_v29, %v628_v9  ;;  %v544_v36 = vsel %vm542_vm15, %v497_v26, %v511_v59  ;;  %v748_v58 = vrot.slane %v734_v2, 7  ;;  %v756_v57 = vrot.slane %v734_v2, 6  ;;  %4094 = vmatmul.msk.f32.vlgmr.msra.gmra.mxu2 %vm464_vm14, %v5319_v43 }
 0x176   : > { %v839_v49 = vadd.f32 %v825_v38, %v819_v3  ;;  %v549_v7 = vsel %vm547_vm0, %v544_v36, %v519_v63  ;;  %v553_v42 = vsel %vm547_vm0, %v519_v63, %v527_v19  ;;  %v764_v20 = vrot.slane %v734_v2, 5 }
 0x177   : > { %v5349_v32 = vmul.f32 0.008, %v649_v28  ;;  %v558_v14 = vsel %vm556_vm1, %v553_v42, %v535_v25  ;;  %v573_v24 = vrot.slane %v549_v7, 1  ;;  %v594_v46 = vrot.slane %v549_v7, 2  ;;  %v500_v45 = vpop.f32.mrf.mxu0 }
 0x178   : > { %v859_v37 = vadd.f32 %v845_v61, %v839_v49  ;;  %v574_v12 = vrot.slane %v558_v14, 1  ;;  %v595_v17 = vrot.slane %v558_v14, 2  ;;  %v615_v15 = vrot.slane %v549_v7, 3 }
 0x179   : > { %657 = vst.msk [vmem:[%s5356_s8] sm:$0xff] %vm464_vm14, %v5349_v32  ;;  %v616_v47 = vrot.slane %v558_v14, 3  ;;  %v636_v13 = vrot.slane %v549_v7, 4  ;;  %v637_v23 = vrot.slane %v558_v14, 4  ;;  %v772_v54 = vrot.slane %v734_v2, 4  ;;  %v737_v53 = vpop.f32.mrf.mxu1 }
 0x17a   : > { %v879_v4 = vadd.f32 %v865_v1, %v859_v37  ;;  %v575_v56 = vsel %vm569_vm2, %v573_v24, %v574_v12  ;;  %v596_v31 = vsel %vm590_vm3, %v594_v46, %v595_v17  ;;  %v780_v44 = vsel %vm542_vm15, %v734_v2, %v748_v58 }
 0x17b   : > { %v587_v5 = vadd.f32 %v575_v56, %v549_v7  ;;  %v617_v43 = vsel %vm611_vm4, %v615_v15, %v616_v47  ;;  %v638_v41 = vsel %vm632_vm5, %v636_v13, %v637_v23  ;;  %v784_v51 = vsel %vm547_vm0, %v780_v44, %v756_v57  ;;  %v3201_v29 = vpop.permute.xlu1 %3200  ;;  %v2484_v39 = vpop.permute.xlu0 %2483 }
 0x17c   : > { %v5367_v8 = vmul.f32 0.008, %v879_v4  ;;  %v788_v52 = vsel %vm547_vm0, %v756_v57, %v764_v20  ;;  %v806_v55 = vrot.slane %v784_v51, 1  ;;  %v826_v10 = vrot.slane %v784_v51, 2  ;;  %4078 = vmatmul.msk.f32.vlgmr.msra.gmra.mxu0 %vm464_vm14, %v2484_v39  ;;  %4102 = vmatmul.msk.f32.vlgmr.msra.gmra.mxu3 %vm464_vm14, %v3201_v29  ;;  %v2488_v56 = vpop.permute.xlu2 %2487 }
 0x17d   : > { %v608_v30 = vadd.f32 %v596_v31, %v587_v5  ;;  %v792_v62 = vsel %vm556_vm1, %v788_v52, %v772_v54  ;;  %v846_v27 = vrot.slane %v784_v51, 3  ;;  %v866_v21 = vrot.slane %v784_v51, 4  ;;  %4086 = vmatmul.msk.f32.vlgmr.msra.gmra.mxu1 %vm464_vm14, %v5342_v18 }
 0x17e   : > { %4026 = vst.msk [vmem:[%s5356_s8 + $0x20] sm:$0xff] %vm464_vm14, %v5367_v8  ;;  %v892_v26 = vmin.f32 %v5349_v32, %v5367_v8  ;;  %v5378_v0 = vadd.f32 %v5367_v8, %v5349_v32  ;;  %v807_v22 = vrot.slane %v792_v62, 1  ;;  %v827_v33 = vrot.slane %v792_v62, 2 }
 0x17f   : > { %v629_v11 = vadd.f32 %v617_v43, %v608_v30  ;;  %v847_v60 = vrot.slane %v792_v62, 3  ;;  %v867_v48 = vrot.slane %v792_v62, 4  ;;  %v512_v16 = vrot.slane %v500_v45, 7  ;;  %v503_v47 = vpop.f32.mrf.mxu0 }
 0x180   : > { %v808_v34 = vsel %vm569_vm2, %v806_v55, %v807_v22  ;;  %v828_v59 = vsel %vm590_vm3, %v826_v10, %v827_v33  ;;  %v520_v63 = vrot.slane %v500_v45, 6  ;;  %v528_v2 = vrot.slane %v500_v45, 5 }
 0x181   : > { %v650_v9 = vadd.f32 %v638_v41, %v629_v11  ;;  %v820_v40 = vadd.f32 %v808_v34, %v784_v51  ;;  %v848_v38 = vsel %vm611_vm4, %v846_v27, %v847_v60  ;;  %v868_v61 = vsel %vm632_vm5, %v866_v21, %v867_v48  ;;  %v740_v60 = vpop.f32.mrf.mxu1 }
 0x182   : > { %v536_v3 = vrot.slane %v500_v45, 4  ;;  %v545_v1 = vsel %vm542_vm15, %v500_v45, %v512_v16  ;;  %v554_v19 = vsel %vm547_vm0, %v520_v63, %v528_v2  ;;  %v749_v25 = vrot.slane %v737_v53, 7 }
 0x183   : > { %v5390_v18 = vmul.f32 0.008, %v650_v9  ;;  %v840_v28 = vadd.f32 %v828_v59, %v820_v40  ;;  %v550_v36 = vsel %vm547_vm0, %v545_v1, %v520_v63  ;;  %v757_v58 = vrot.slane %v737_v53, 6  ;;  %v2486_v24 = vpop.permute.xlu1 %2485  ;;  %v2964_v46 = vpop.permute.xlu0 %2963 }
 0x184   : > { %v559_v57 = vsel %vm556_vm1, %v554_v19, %v536_v3  ;;  %v576_v50 = vrot.slane %v550_v36, 1  ;;  %v597_v6 = vrot.slane %v550_v36, 2  ;;  %v618_v49 = vrot.slane %v550_v36, 3  ;;  %4079 = vmatmul.msk.f32.gmra.mxu0 %vm464_vm14, %v2486_v24  ;;  %4095 = vmatmul.msk.f32.gmra.mxu2 %vm464_vm14, %v2964_v46 }
 0x185   : > { %658 = vst.msk [vmem:[%s5356_s8 + $0x8] sm:$0xff] %vm464_vm14, %v5390_v18  ;;  %v860_v7 = vadd.f32 %v848_v38, %v840_v28  ;;  %v577_v42 = vrot.slane %v559_v57, 1  ;;  %v598_v20 = vrot.slane %v559_v57, 2  ;;  %v619_v14 = vrot.slane %v559_v57, 3  ;;  %4103 = vmatmul.msk.f32.gmra.mxu3 %vm464_vm14, %v3203_v35 }
 0x186   : > { %v639_v37 = vrot.slane %v550_v36, 4  ;;  %v640_v12 = vrot.slane %v559_v57, 4  ;;  %v765_v17 = vrot.slane %v737_v53, 5  ;;  %v773_v15 = vrot.slane %v737_v53, 4 }
 0x187   : > { %v880_v13 = vadd.f32 %v868_v61, %v860_v7  ;;  %v578_v23 = vsel %vm569_vm2, %v576_v50, %v577_v42  ;;  %v599_v54 = vsel %vm590_vm3, %v597_v6, %v598_v20  ;;  %v620_v4 = vsel %vm611_vm4, %v618_v49, %v619_v14  ;;  %v2968_v7 = vpop.permute.xlu2 %2967 }
 0x188   : > { %v588_v31 = vadd.f32 %v578_v23, %v550_v36  ;;  %v641_v44 = vsel %vm632_vm5, %v639_v37, %v640_v12  ;;  %v781_v5 = vsel %vm542_vm15, %v737_v53, %v749_v25  ;;  %v789_v43 = vsel %vm547_vm0, %v757_v58, %v765_v17 }
 0x189   : > { %v5406_v41 = vmul.f32 0.008, %v880_v13  ;;  %v785_v51 = vsel %vm547_vm0, %v781_v5, %v757_v58  ;;  %v793_v52 = vsel %vm556_vm1, %v789_v43, %v773_v15  ;;  %v513_v55 = vrot.slane %v503_v47, 7 }
 0x18a   : > { %v609_v10 = vadd.f32 %v599_v54, %v588_v31  ;;  %v809_v45 = vrot.slane %v785_v51, 1  ;;  %v810_v30 = vrot.slane %v793_v52, 1  ;;  %v829_v62 = vrot.slane %v785_v51, 2 }
 0x18b   : > { %4027 = vst.msk [vmem:[%s5356_s8 + $0x28] sm:$0xff] %vm464_vm14, %v5406_v41  ;;  %v893_v27 = vmin.f32 %v5390_v18, %v5406_v41  ;;  %v5417_v21 = vadd.f32 %v5406_v41, %v5390_v18  ;;  %v830_v29 = vrot.slane %v793_v52, 2  ;;  %v849_v39 = vrot.slane %v785_v51, 3  ;;  %v2966_v59 = vpop.permute.xlu1 %2965  ;;  %v2725_v63 = vpop.permute.xlu0 %2724 }
 0x18c   : > { %v630_v35 = vadd.f32 %v620_v4, %v609_v10  ;;  %v811_v22 = vsel %vm569_vm2, %v809_v45, %v810_v30  ;;  %v850_v33 = vrot.slane %v793_v52, 3  ;;  %v869_v11 = vrot.slane %v785_v51, 4  ;;  %4080 = vmatmul.msk.f32.gmra.mxu0 %vm464_vm14, %v2488_v56  ;;  %4087 = vmatmul.msk.f32.gmra.mxu1 %vm464_vm14, %v2725_v63 }
 0x18d   : > { %v821_v48 = vadd.f32 %v811_v22, %v785_v51  ;;  %v831_v16 = vsel %vm590_vm3, %v829_v62, %v830_v29  ;;  %v870_v53 = vrot.slane %v793_v52, 4  ;;  %v521_v34 = vrot.slane %v503_v47, 6  ;;  %4096 = vmatmul.msk.f32.gmra.mxu2 %vm464_vm14, %v2966_v59 }
 0x18e   : > { %v651_v2 = vadd.f32 %v641_v44, %v630_v35  ;;  %v851_v9 = vsel %vm611_vm4, %v849_v39, %v850_v33  ;;  %v529_v40 = vrot.slane %v503_v47, 5  ;;  %v537_v38 = vrot.slane %v503_v47, 4 }
 0x18f   : > { %v841_v61 = vadd.f32 %v831_v16, %v821_v48  ;;  %v871_v3 = vsel %vm632_vm5, %v869_v11, %v870_v53  ;;  %v546_v1 = vsel %vm542_vm15, %v503_v47, %v513_v55  ;;  %v750_v19 = vrot.slane %v740_v60, 7  ;;  %v2729_v63 = vpop.permute.xlu2 %2728 }
 0x190   : > { %v5427_v25 = vmul.f32 0.008, %v651_v2  ;;  %v551_v28 = vsel %vm547_vm0, %v546_v1, %v521_v34  ;;  %v555_v36 = vsel %vm547_vm0, %v521_v34, %v529_v40  ;;  %v758_v58 = vrot.slane %v740_v60, 6 }
 0x191   : > { %v861_v57 = vadd.f32 %v851_v9, %v841_v61  ;;  %v560_v50 = vsel %vm556_vm1, %v555_v36, %v537_v38  ;;  %v579_v6 = vrot.slane %v551_v28, 1  ;;  %v600_v49 = vrot.slane %v551_v28, 2 }
 0x192   : > { %659 = vst.msk [vmem:[%s5356_s8 + $0x10] sm:$0xff] %vm464_vm14, %v5427_v25  ;;  %v580_v42 = vrot.slane %v560_v50, 1  ;;  %v601_v20 = vrot.slane %v560_v50, 2  ;;  %v621_v14 = vrot.slane %v551_v28, 3  ;;  %v622_v24 = vrot.slane %v560_v50, 3 }
 0x193   : > { %v881_v46 = vadd.f32 %v871_v3, %v861_v57  ;;  %v766_v37 = vrot.slane %v740_v60, 5  ;;  %v642_v17 = vrot.slane %v551_v28, 4  ;;  %v643_v15 = vrot.slane %v560_v50, 4  ;;  %v2727_v56 = vpop.permute.xlu1 %2726  ;;  %v3205_v31 = vpop.permute.xlu0 %3204 }
 0x194   : > { %v581_v12 = vsel %vm569_vm2, %v579_v6, %v580_v42  ;;  %v774_v47 = vrot.slane %v740_v60, 4  ;;  %v602_v54 = vsel %vm590_vm3, %v600_v49, %v601_v20  ;;  %v782_v4 = vsel %vm542_vm15, %v740_v60, %v750_v19  ;;  %4088 = vmatmul.msk.f32.gmra.mxu1 %vm464_vm14, %v2727_v56  ;;  %4104 = vmatmul.msk.f32.gmra.mxu3 %vm464_vm14, %v3205_v31 }
 0x195   : > { %v5436_v13 = vmul.f32 0.008, %v881_v46  ;;  %v589_v23 = vadd.f32 %v581_v12, %v551_v28  ;;  %v623_v44 = vsel %vm611_vm4, %v621_v14, %v622_v24  ;;  %v786_v5 = vsel %vm547_vm0, %v782_v4, %v758_v58  ;;  %4097 = vmatmul.msk.f32.gmra.mxu2 %vm464_vm14, %v2968_v7 }
 0x196   : > { %v790_v43 = vsel %vm547_vm0, %v758_v58, %v766_v37  ;;  %v812_v45 = vrot.slane %v786_v5, 1  ;;  %v832_v62 = vrot.slane %v786_v5, 2  ;;  %v644_v35 = vsel %vm632_vm5, %v642_v17, %v643_v15 }
 0x197   : > { %4028 = vst.msk [vmem:[%s5356_s8 + $0x30] sm:$0xff] %vm464_vm14, %v5436_v13  ;;  %v894_v51 = vmin.f32 %v5427_v25, %v5436_v13  ;;  %v5452_v52 = vadd.f32 %v5436_v13, %v5427_v25  ;;  %v610_v55 = vadd.f32 %v602_v54, %v589_v23  ;;  %v794_v10 = vsel %vm556_vm1, %v790_v43, %v774_v47 }
 0x198   : > { %v813_v30 = vrot.slane %v794_v10, 1  ;;  %v833_v29 = vrot.slane %v794_v10, 2  ;;  %v852_v22 = vrot.slane %v786_v5, 3  ;;  %v853_v33 = vrot.slane %v794_v10, 3 }
 0x199   : > { %v631_v39 = vadd.f32 %v623_v44, %v610_v55  ;;  %v872_v48 = vrot.slane %v786_v5, 4  ;;  %v873_v16 = vrot.slane %v794_v10, 4 }
 0x19a   : > { %v814_v11 = vsel %vm569_vm2, %v812_v45, %v813_v30  ;;  %v834_v60 = vsel %vm590_vm3, %v832_v62, %v833_v29  ;;  %v854_v59 = vsel %vm611_vm4, %v852_v22, %v853_v33 }
 0x19b   : > { %v652_v53 = vadd.f32 %v644_v35, %v631_v39  ;;  %v822_v34 = vadd.f32 %v814_v11, %v786_v5  ;;  %v3207_v40 = vpop.permute.xlu1 %3206  ;;  %v2490_v38 = vpop.permute.xlu0 %2489  ;;  %v874_v61 = vsel %vm632_vm5, %v872_v48, %v873_v16 }
 0x19c   : > { %4081 = vmatmul.msk.f32.gmra.mxu0 %vm464_vm14, %v2490_v38  ;;  %4089 = vmatmul.msk.f32.gmra.mxu1 %vm464_vm14, %v2729_v63 }
 0x19d   : > { %v5460_v2 = vmul.f32 0.008, %v652_v53  ;;  %v842_v9 = vadd.f32 %v834_v60, %v822_v34  ;;  %4105 = vmatmul.msk.f32.gmra.mxu3 %vm464_vm14, %v3207_v40 }
 0x19f   : > { %660 = vst.msk [vmem:[%s5356_s8 + $0x18] sm:$0xff] %vm464_vm14, %v5460_v2  ;;  %v862_v3 = vadd.f32 %v854_v59, %v842_v9  ;;  %v1002_v1 = vpop.f32.mrf.mxu2 }
 0x1a0   : > { %v1018_v28 = vrot.slane %v1002_v1, 7  ;;  %v1026_v36 = vrot.slane %v1002_v1, 6  ;;  %v1034_v58 = vrot.slane %v1002_v1, 5  ;;  %v1042_v57 = vrot.slane %v1002_v1, 4 }
 0x1a1   : > { %v882_v19 = vadd.f32 %v874_v61, %v862_v3 }
 0x1a2   : > { %v1050_v6 = vsel %vm542_vm15, %v1002_v1, %v1018_v28  ;;  %v1058_v49 = vsel %vm547_vm0, %v1026_v36, %v1034_v58 }
 0x1a3   : > { %v5469_v50 = vmul.f32 0.008, %v882_v19  ;;  %v1054_v7 = vsel %vm547_vm0, %v1050_v6, %v1026_v36  ;;  %v1062_v42 = vsel %vm556_vm1, %v1058_v49, %v1042_v57 }
 0x1a4   : > { %v1074_v20 = vrot.slane %v1054_v7, 1  ;;  %v1075_v14 = vrot.slane %v1062_v42, 1  ;;  %v1094_v24 = vrot.slane %v1054_v7, 2  ;;  %v1095_v46 = vrot.slane %v1062_v42, 2 }
 0x1a5   : > { %4029 = vst.msk [vmem:[%s5356_s8 + $0x38] sm:$0xff] %vm464_vm14, %v5469_v50  ;;  %v1114_v37 = vrot.slane %v1054_v7, 3  ;;  %v1115_v12 = vrot.slane %v1062_v42, 3  ;;  %v1134_v17 = vrot.slane %v1054_v7, 4  ;;  %v1135_v47 = vrot.slane %v1062_v42, 4 }
 0x1a6   : > { %v1076_v15 = vsel %vm569_vm2, %v1074_v20, %v1075_v14  ;;  %v1096_v54 = vsel %vm590_vm3, %v1094_v24, %v1095_v46 }
 0x1a7   : > { %v1090_v23 = vadd.f32 %v1076_v15, %v1054_v7  ;;  %v1116_v4 = vsel %vm611_vm4, %v1114_v37, %v1115_v12  ;;  %v1005_v56 = vpop.f32.mrf.mxu2  ;;  %v1136_v44 = vsel %vm632_vm5, %v1134_v17, %v1135_v47 }
 0x1a8   : > { %v1265_v31 = vpop.f32.mrf.mxu3  ;;  %v1019_v5 = vrot.slane %v1005_v56, 7  ;;  %v1027_v43 = vrot.slane %v1005_v56, 6  ;;  %v1035_v55 = vrot.slane %v1005_v56, 5  ;;  %v1043_v45 = vrot.slane %v1005_v56, 4 }
 0x1a9   : > { %v1110_v10 = vadd.f32 %v1096_v54, %v1090_v23  ;;  %v1281_v30 = vrot.slane %v1265_v31, 7  ;;  %v1289_v62 = vrot.slane %v1265_v31, 6  ;;  %v1297_v35 = vrot.slane %v1265_v31, 5 }
 0x1aa   : > { %v1051_v29 = vsel %vm542_vm15, %v1005_v56, %v1019_v5  ;;  %v1059_v39 = vsel %vm547_vm0, %v1027_v43, %v1035_v55  ;;  %v1305_v22 = vrot.slane %v1265_v31, 4 }
 0x1ab   : > { %v1130_v33 = vadd.f32 %v1116_v4, %v1110_v10  ;;  %v1055_v11 = vsel %vm547_vm0, %v1051_v29, %v1027_v43  ;;  %v1063_v60 = vsel %vm556_vm1, %v1059_v39, %v1043_v45  ;;  %v1313_v48 = vsel %vm542_vm15, %v1265_v31, %v1281_v30 }
 0x1ac   : > { %v1077_v16 = vrot.slane %v1055_v11, 1  ;;  %v1078_v53 = vrot.slane %v1063_v60, 1  ;;  %v1097_v34 = vrot.slane %v1055_v11, 2  ;;  %v1098_v59 = vrot.slane %v1063_v60, 2 }
 0x1ad   : > { %v1150_v63 = vadd.f32 %v1136_v44, %v1130_v33  ;;  %v1117_v9 = vrot.slane %v1055_v11, 3  ;;  %v1118_v40 = vrot.slane %v1063_v60, 3  ;;  %v1137_v38 = vrot.slane %v1055_v11, 4 }
 0x1ae   : > { %v1079_v61 = vsel %vm569_vm2, %v1077_v16, %v1078_v53  ;;  %v1099_v3 = vsel %vm590_vm3, %v1097_v34, %v1098_v59  ;;  %v1138_v1 = vrot.slane %v1063_v60, 4  ;;  %v1317_v19 = vsel %vm547_vm0, %v1313_v48, %v1289_v62 }
 0x1af   : > { %v1154_v28 = vmul.f32 0.008, %v1150_v63  ;;  %v1091_v36 = vadd.f32 %v1079_v61, %v1055_v11  ;;  %v1119_v58 = vsel %vm611_vm4, %v1117_v9, %v1118_v40  ;;  %v1321_v57 = vsel %vm547_vm0, %v1289_v62, %v1297_v35 }
 0x1b0   : > { %v1139_v6 = vsel %vm632_vm5, %v1137_v38, %v1138_v1  ;;  %v1325_v49 = vsel %vm556_vm1, %v1321_v57, %v1305_v22  ;;  %v1337_v7 = vrot.slane %v1317_v19, 1  ;;  %v1357_v42 = vrot.slane %v1317_v19, 2  ;;  %v1008_v20 = vpop.f32.mrf.mxu2  ;;  %v1268_v31 = vpop.f32.mrf.mxu3 }
 0x1b1   : > { %4034 = vst.msk [vmem:[%s5356_s8 + $0x40] sm:$0xff] %vm464_vm14, %v1154_v28  ;;  %v5499_v14 = vmin.f32 %v892_v26, %v1154_v28  ;;  %v5502_v24 = vadd.f32 %v1154_v28, %v5378_v0  ;;  %v1111_v46 = vadd.f32 %v1099_v3, %v1091_v36  ;;  %v1338_v37 = vrot.slane %v1325_v49, 1 }
 0x1b2   : > { %v1358_v12 = vrot.slane %v1325_v49, 2  ;;  %v1377_v17 = vrot.slane %v1317_v19, 3  ;;  %v1378_v15 = vrot.slane %v1325_v49, 3  ;;  %v1397_v47 = vrot.slane %v1317_v19, 4  ;;  %v1536_v1 = vpop.f32.mrf.mxu0 }
 0x1b3   : > { %v1131_v23 = vadd.f32 %v1119_v58, %v1111_v46  ;;  %v1339_v54 = vsel %vm569_vm2, %v1337_v7, %v1338_v37  ;;  %v1398_v4 = vrot.slane %v1325_v49, 4  ;;  %v1020_v56 = vrot.slane %v1008_v20, 7 }
 0x1b4   : > { %v1353_v44 = vadd.f32 %v1339_v54, %v1317_v19  ;;  %v1359_v32 = vsel %vm590_vm3, %v1357_v42, %v1358_v12  ;;  %v1379_v8 = vsel %vm611_vm4, %v1377_v17, %v1378_v15  ;;  %v1028_v26 = vrot.slane %v1008_v20, 6 }
 0x1b5   : > { %v1151_v0 = vadd.f32 %v1139_v6, %v1131_v23  ;;  %v1399_v5 = vsel %vm632_vm5, %v1397_v47, %v1398_v4  ;;  %v1036_v43 = vrot.slane %v1008_v20, 5  ;;  %v1044_v55 = vrot.slane %v1008_v20, 4 }
 0x1b6   : > { %v1373_v10 = vadd.f32 %v1359_v32, %v1353_v44  ;;  %v1052_v45 = vsel %vm542_vm15, %v1008_v20, %v1020_v56  ;;  %v1282_v30 = vrot.slane %v1268_v31, 7  ;;  %v1290_v62 = vrot.slane %v1268_v31, 6 }
 0x1b7   : > { %v1155_v29 = vmul.f32 0.008, %v1151_v0  ;;  %v1056_v39 = vsel %vm547_vm0, %v1052_v45, %v1028_v26  ;;  %v1060_v35 = vsel %vm547_vm0, %v1028_v26, %v1036_v43  ;;  %v1298_v22 = vrot.slane %v1268_v31, 5 }
 0x1b8   : > { %v1393_v33 = vadd.f32 %v1379_v8, %v1373_v10  ;;  %v1064_v11 = vsel %vm556_vm1, %v1060_v35, %v1044_v55  ;;  %v1080_v60 = vrot.slane %v1056_v39, 1  ;;  %v1100_v48 = vrot.slane %v1056_v39, 2  ;;  %v1271_v56 = vpop.f32.mrf.mxu3 }
 0x1b9   : > { %4035 = vst.msk [vmem:[%s5356_s8 + $0x48] sm:$0xff] %vm464_vm14, %v1155_v29  ;;  %v5517_v16 = vmin.f32 %v893_v27, %v1155_v29  ;;  %v5520_v53 = vadd.f32 %v1155_v29, %v5417_v21  ;;  %v1081_v34 = vrot.slane %v1064_v11, 1  ;;  %v1101_v59 = vrot.slane %v1064_v11, 2 }
 0x1ba   : > { %v1413_v63 = vadd.f32 %v1399_v5, %v1393_v33  ;;  %v1120_v9 = vrot.slane %v1056_v39, 3  ;;  %v1121_v40 = vrot.slane %v1064_v11, 3  ;;  %v1140_v61 = vrot.slane %v1056_v39, 4 }
 0x1bb   : > { %v1082_v38 = vsel %vm569_vm2, %v1080_v60, %v1081_v34  ;;  %v1306_v3 = vrot.slane %v1268_v31, 4  ;;  %v1141_v18 = vrot.slane %v1064_v11, 4  ;;  %v1314_v41 = vsel %vm542_vm15, %v1268_v31, %v1282_v30 }
 0x1bc   : > { %v5523_v19 = vmul.f32 0.008, %v1413_v63  ;;  %v1092_v28 = vadd.f32 %v1082_v38, %v1056_v39  ;;  %v1102_v27 = vsel %vm590_vm3, %v1100_v48, %v1101_v59  ;;  %v1122_v21 = vsel %vm611_vm4, %v1120_v9, %v1121_v40 }
 0x1bd   : > { %v1318_v36 = vsel %vm547_vm0, %v1314_v41, %v1290_v62  ;;  %v1322_v58 = vsel %vm547_vm0, %v1290_v62, %v1298_v22  ;;  %v1552_v7 = vrot.slane %v1536_v1, 7  ;;  %v1142_v17 = vsel %vm632_vm5, %v1140_v61, %v1141_v18 }
 0x1be   : > { %4042 = vst.msk [vmem:[%s5356_s8 + $0x60] sm:$0xff] %vm464_vm14, %v5523_v19  ;;  %v1112_v57 = vadd.f32 %v1102_v27, %v1092_v28  ;;  %v1326_v6 = vsel %vm556_vm1, %v1322_v58, %v1306_v3  ;;  %v1340_v49 = vrot.slane %v1318_v36, 1  ;;  %v1360_v20 = vrot.slane %v1318_v36, 2 }
 0x1bf   : > { %v1341_v42 = vrot.slane %v1326_v6, 1  ;;  %v1361_v46 = vrot.slane %v1326_v6, 2  ;;  %v1380_v37 = vrot.slane %v1318_v36, 3  ;;  %v1381_v15 = vrot.slane %v1326_v6, 3 }
 0x1c0   : > { %v1132_v12 = vadd.f32 %v1122_v21, %v1112_v57  ;;  %v1400_v23 = vrot.slane %v1318_v36, 4  ;;  %v1560_v54 = vrot.slane %v1536_v1, 6  ;;  %v1568_v4 = vrot.slane %v1536_v1, 5  ;;  %v1011_v18 = vpop.f32.mrf.mxu2 }
 0x1c1   : > { %v1342_v47 = vsel %vm569_vm2, %v1340_v49, %v1341_v42  ;;  %v1362_v32 = vsel %vm590_vm3, %v1360_v20, %v1361_v46  ;;  %v1401_v8 = vrot.slane %v1326_v6, 4  ;;  %v1382_v26 = vsel %vm611_vm4, %v1380_v37, %v1381_v15 }
 0x1c2   : > { %v1152_v31 = vadd.f32 %v1142_v17, %v1132_v12  ;;  %v1354_v44 = vadd.f32 %v1342_v47, %v1318_v36  ;;  %v1576_v0 = vrot.slane %v1536_v1, 4  ;;  %v1584_v5 = vsel %vm542_vm15, %v1536_v1, %v1552_v7 }
 0x1c3   : > { %v1592_v43 = vsel %vm547_vm0, %v1560_v54, %v1568_v4  ;;  %v1588_v45 = vsel %vm547_vm0, %v1584_v5, %v1560_v54  ;;  %v1283_v30 = vrot.slane %v1271_v56, 7  ;;  %v1291_v35 = vrot.slane %v1271_v56, 6  ;;  %v1274_v4 = vpop.f32.mrf.mxu3 }
 0x1c4   : > { %v5540_v55 = vmul.f32 0.008, %v1152_v31  ;;  %v1374_v10 = vadd.f32 %v1362_v32, %v1354_v44  ;;  %v1596_v62 = vsel %vm556_vm1, %v1592_v43, %v1576_v0  ;;  %v1608_v29 = vrot.slane %v1588_v45, 1 }
 0x1c5   : > { %v1628_v39 = vrot.slane %v1588_v45, 2  ;;  %v1609_v33 = vrot.slane %v1596_v62, 1  ;;  %v1629_v11 = vrot.slane %v1596_v62, 2  ;;  %v1648_v60 = vrot.slane %v1588_v45, 3 }
 0x1c6   : > { %4036 = vst.msk [vmem:[%s5356_s8 + $0x50] sm:$0xff] %vm464_vm14, %v5540_v55  ;;  %v1394_v22 = vadd.f32 %v1382_v26, %v1374_v10  ;;  %v1402_v48 = vsel %vm632_vm5, %v1400_v23, %v1401_v8  ;;  %v1649_v34 = vrot.slane %v1596_v62, 3  ;;  %v1299_v59 = vrot.slane %v1271_v56, 5 }
 0x1c7   : > { %v1610_v9 = vsel %vm569_vm2, %v1608_v29, %v1609_v33  ;;  %v1668_v40 = vrot.slane %v1588_v45, 4  ;;  %v1307_v38 = vrot.slane %v1271_v56, 4  ;;  %v1630_v3 = vsel %vm590_vm3, %v1628_v39, %v1629_v11 }
 0x1c8   : > { %v1414_v63 = vadd.f32 %v1402_v48, %v1394_v22  ;;  %v1624_v61 = vadd.f32 %v1610_v9, %v1588_v45  ;;  %v1669_v1 = vrot.slane %v1596_v62, 4  ;;  %v1315_v28 = vsel %vm542_vm15, %v1271_v56, %v1283_v30 }
 0x1c9   : > { %v1650_v27 = vsel %vm611_vm4, %v1648_v60, %v1649_v34  ;;  %v1319_v21 = vsel %vm547_vm0, %v1315_v28, %v1291_v35  ;;  %v1323_v36 = vsel %vm547_vm0, %v1291_v35, %v1299_v59  ;;  %v1021_v46 = vrot.slane %v1011_v18, 7 }
 0x1ca   : > { %v5551_v41 = vmul.f32 0.008, %v1414_v63  ;;  %v1644_v58 = vadd.f32 %v1630_v3, %v1624_v61  ;;  %v1327_v57 = vsel %vm556_vm1, %v1323_v36, %v1307_v38  ;;  %v1343_v6 = vrot.slane %v1319_v21, 1 }
 0x1cb   : > { %v1363_v49 = vrot.slane %v1319_v21, 2  ;;  %v1344_v7 = vrot.slane %v1327_v57, 1  ;;  %v1364_v42 = vrot.slane %v1327_v57, 2  ;;  %v1383_v20 = vrot.slane %v1319_v21, 3 }
 0x1cc   : > { %4043 = vst.msk [vmem:[%s5356_s8 + $0x68] sm:$0xff] %vm464_vm14, %v5551_v41  ;;  %v1664_v37 = vadd.f32 %v1650_v27, %v1644_v58  ;;  %v1670_v12 = vsel %vm632_vm5, %v1668_v40, %v1669_v1  ;;  %v1384_v17 = vrot.slane %v1327_v57, 3  ;;  %v1403_v47 = vrot.slane %v1319_v21, 4  ;;  %v1775_v27 = vpop.f32.mrf.mxu1 }
 0x1cd   : > { %v1345_v15 = vsel %vm569_vm2, %v1343_v6, %v1344_v7  ;;  %v1029_v23 = vrot.slane %v1011_v18, 6  ;;  %v1037_v54 = vrot.slane %v1011_v18, 5  ;;  %v1365_v44 = vsel %vm590_vm3, %v1363_v49, %v1364_v42 }
 0x1ce   : > { %v1684_v56 = vadd.f32 %v1670_v12, %v1664_v37  ;;  %v1355_v31 = vadd.f32 %v1345_v15, %v1319_v21  ;;  %v1404_v32 = vrot.slane %v1327_v57, 4  ;;  %v1385_v8 = vsel %vm611_vm4, %v1383_v20, %v1384_v17 }
 0x1cf   : > { %v1045_v26 = vrot.slane %v1011_v18, 4  ;;  %v1053_v0 = vsel %vm542_vm15, %v1011_v18, %v1021_v46  ;;  %v1061_v5 = vsel %vm547_vm0, %v1029_v23, %v1037_v54  ;;  %v1284_v30 = vrot.slane %v1274_v4, 7 }
 0x1d0   : > { %v5566_v43 = vmul.f32 0.008, %v1684_v56  ;;  %v1375_v10 = vadd.f32 %v1365_v44, %v1355_v31  ;;  %v1057_v45 = vsel %vm547_vm0, %v1053_v0, %v1029_v23  ;;  %v1292_v35 = vrot.slane %v1274_v4, 6  ;;  %v2014_v44 = vpop.f32.mrf.mxu2 }
 0x1d1   : > { %v1065_v62 = vsel %vm556_vm1, %v1061_v5, %v1045_v26  ;;  %v1083_v29 = vrot.slane %v1057_v45, 1  ;;  %v1103_v39 = vrot.slane %v1057_v45, 2  ;;  %v1123_v60 = vrot.slane %v1057_v45, 3 }
 0x1d2   : > { %4050 = vst.msk [vmem:[%s5356_s8 + $0x80] sm:$0xff] %vm464_vm14, %v5566_v43  ;;  %v1395_v22 = vadd.f32 %v1385_v8, %v1375_v10  ;;  %v1084_v33 = vrot.slane %v1065_v62, 1  ;;  %v1104_v11 = vrot.slane %v1065_v62, 2  ;;  %v895_v48 = vmin.f32 %v5460_v2, %v5469_v50 }
 0x1d3   : > { %v1405_v34 = vsel %vm632_vm5, %v1403_v47, %v1404_v32  ;;  %v1124_v59 = vrot.slane %v1065_v62, 3  ;;  %v1300_v63 = vrot.slane %v1274_v4, 5  ;;  %v1143_v38 = vrot.slane %v1057_v45, 4 }
 0x1d4   : > { %v1415_v9 = vadd.f32 %v1405_v34, %v1395_v22  ;;  %v1085_v40 = vsel %vm569_vm2, %v1083_v29, %v1084_v33  ;;  %v1308_v61 = vrot.slane %v1274_v4, 4  ;;  %v1105_v1 = vsel %vm590_vm3, %v1103_v39, %v1104_v11 }
 0x1d5   : > { %v1093_v3 = vadd.f32 %v1085_v40, %v1057_v45  ;;  %v1144_v28 = vrot.slane %v1065_v62, 4  ;;  %v1316_v18 = vsel %vm542_vm15, %v1274_v4, %v1284_v30  ;;  %v1125_v36 = vsel %vm611_vm4, %v1123_v60, %v1124_v59 }
 0x1d6   : > { %v5579_v21 = vmul.f32 0.008, %v1415_v9  ;;  %v1320_v58 = vsel %vm547_vm0, %v1316_v18, %v1292_v35  ;;  %v1324_v57 = vsel %vm547_vm0, %v1292_v35, %v1300_v63  ;;  %v1791_v12 = vrot.slane %v1775_v27, 7 }
 0x1d7   : > { %v1113_v6 = vadd.f32 %v1105_v1, %v1093_v3  ;;  %v1328_v49 = vsel %vm556_vm1, %v1324_v57, %v1308_v61  ;;  %v1346_v7 = vrot.slane %v1320_v58, 1  ;;  %v1366_v42 = vrot.slane %v1320_v58, 2 }
 0x1d8   : > { %4044 = vst.msk [vmem:[%s5356_s8 + $0x70] sm:$0xff] %vm464_vm14, %v5579_v21  ;;  %v1347_v20 = vrot.slane %v1328_v49, 1  ;;  %v1367_v46 = vrot.slane %v1328_v49, 2  ;;  %v1386_v37 = vrot.slane %v1320_v58, 3  ;;  %v1426_v17 = vmin.f32 %v5499_v14, %v5523_v19 }
 0x1d9   : > { %v1133_v15 = vadd.f32 %v1125_v36, %v1113_v6  ;;  %v1145_v47 = vsel %vm632_vm5, %v1143_v38, %v1144_v28  ;;  %v1387_v23 = vrot.slane %v1328_v49, 3  ;;  %v1406_v4 = vrot.slane %v1320_v58, 4 }
 0x1da   : > { %v1348_v54 = vsel %vm569_vm2, %v1346_v7, %v1347_v20  ;;  %v1799_v56 = vrot.slane %v1775_v27, 6  ;;  %v1807_v31 = vrot.slane %v1775_v27, 5  ;;  %v1368_v26 = vsel %vm590_vm3, %v1366_v42, %v1367_v46 }
 0x1db   : > { %v1153_v32 = vadd.f32 %v1145_v47, %v1133_v15  ;;  %v1356_v8 = vadd.f32 %v1348_v54, %v1320_v58  ;;  %v1407_v0 = vrot.slane %v1328_v49, 4  ;;  %v1388_v5 = vsel %vm611_vm4, %v1386_v37, %v1387_v23  ;;  %v1778_v49 = vpop.f32.mrf.mxu1 }
 0x1dc   : > { %v1815_v10 = vrot.slane %v1775_v27, 4  ;;  %v1823_v45 = vsel %vm542_vm15, %v1775_v27, %v1791_v12  ;;  %v1831_v30 = vsel %vm547_vm0, %v1799_v56, %v1807_v31  ;;  %v2030_v35 = vrot.slane %v2014_v44, 7 }
 0x1dd   : > { %v5596_v62 = vmul.f32 0.008, %v1153_v32  ;;  %v1376_v29 = vadd.f32 %v1368_v26, %v1356_v8  ;;  %v1827_v39 = vsel %vm547_vm0, %v1823_v45, %v1799_v56  ;;  %v2038_v60 = vrot.slane %v2014_v44, 6 }
 0x1de   : > { %v1835_v22 = vsel %vm556_vm1, %v1831_v30, %v1815_v10  ;;  %v1847_v33 = vrot.slane %v1827_v39, 1  ;;  %v1867_v11 = vrot.slane %v1827_v39, 2  ;;  %v1887_v9 = vrot.slane %v1827_v39, 3 }
 0x1df   : > { %4037 = vst.msk [vmem:[%s5356_s8 + $0x58] sm:$0xff] %vm464_vm14, %v5596_v62  ;;  %v1396_v34 = vadd.f32 %v1388_v5, %v1376_v29  ;;  %v1848_v59 = vrot.slane %v1835_v22, 1  ;;  %v1868_v63 = vrot.slane %v1835_v22, 2  ;;  %v5607_v40 = vmin.f32 %v894_v51, %v5540_v55 }
 0x1e0   : > { %v1408_v38 = vsel %vm632_vm5, %v1406_v4, %v1407_v0  ;;  %v1888_v61 = vrot.slane %v1835_v22, 3  ;;  %v2046_v3 = vrot.slane %v2014_v44, 5  ;;  %v1907_v18 = vrot.slane %v1827_v39, 4  ;;  %v2277_v0 = vpop.f32.mrf.mxu3 }
 0x1e1   : > { %v1416_v1 = vadd.f32 %v1408_v38, %v1396_v34  ;;  %v1849_v28 = vsel %vm569_vm2, %v1847_v33, %v1848_v59  ;;  %v2054_v27 = vrot.slane %v2014_v44, 4  ;;  %v1869_v58 = vsel %vm590_vm3, %v1867_v11, %v1868_v63 }
 0x1e2   : > { %v1863_v36 = vadd.f32 %v1849_v28, %v1827_v39  ;;  %v1908_v57 = vrot.slane %v1835_v22, 4  ;;  %v2062_v6 = vsel %vm542_vm15, %v2014_v44, %v2030_v35  ;;  %v1889_v13 = vsel %vm611_vm4, %v1887_v9, %v1888_v61 }
 0x1e3   : > { %v5613_v25 = vmul.f32 0.008, %v1416_v1  ;;  %v2066_v51 = vsel %vm547_vm0, %v2062_v6, %v2038_v60  ;;  %v2070_v7 = vsel %vm547_vm0, %v2038_v60, %v2046_v3  ;;  %v1792_v23 = vrot.slane %v1778_v49, 7 }
 0x1e4   : > { %v1883_v42 = vadd.f32 %v1869_v58, %v1863_v36  ;;  %v2074_v20 = vsel %vm556_vm1, %v2070_v7, %v2054_v27  ;;  %v2086_v46 = vrot.slane %v2066_v51, 1  ;;  %v2106_v37 = vrot.slane %v2066_v51, 2 }
 0x1e5   : > { %4045 = vst.msk [vmem:[%s5356_s8 + $0x78] sm:$0xff] %vm464_vm14, %v5613_v25  ;;  %v2087_v12 = vrot.slane %v2074_v20, 1  ;;  %v2107_v15 = vrot.slane %v2074_v20, 2  ;;  %v2126_v47 = vrot.slane %v2066_v51, 3  ;;  %v2127_v4 = vrot.slane %v2074_v20, 3 }
 0x1e6   : > { %v1903_v54 = vadd.f32 %v1889_v13, %v1883_v42  ;;  %v2146_v56 = vrot.slane %v2066_v51, 4  ;;  %v2147_v31 = vrot.slane %v2074_v20, 4  ;;  %v1909_v44 = vsel %vm632_vm5, %v1907_v18, %v1908_v57 }
 0x1e7   : > { %v2088_v32 = vsel %vm569_vm2, %v2086_v46, %v2087_v12  ;;  %v1800_v8 = vrot.slane %v1778_v49, 6  ;;  %v1808_v26 = vrot.slane %v1778_v49, 5  ;;  %v2108_v45 = vsel %vm590_vm3, %v2106_v37, %v2107_v15  ;;  %v2017_v46 = vpop.f32.mrf.mxu2 }
 0x1e8   : > { %v1923_v5 = vadd.f32 %v1909_v44, %v1903_v54  ;;  %v2102_v10 = vadd.f32 %v2088_v32, %v2066_v51  ;;  %v2128_v30 = vsel %vm611_vm4, %v2126_v47, %v2127_v4  ;;  %v2148_v29 = vsel %vm632_vm5, %v2146_v56, %v2147_v31 }
 0x1e9   : > { %v1816_v39 = vrot.slane %v1778_v49, 4  ;;  %v1824_v35 = vsel %vm542_vm15, %v1778_v49, %v1792_v23  ;;  %v1832_v22 = vsel %vm547_vm0, %v1800_v8, %v1808_v26  ;;  %v2293_v34 = vrot.slane %v2277_v0, 7 }
 0x1ea   : > { %v5629_v33 = vmul.f32 0.008, %v1923_v5  ;;  %v2122_v11 = vadd.f32 %v2108_v45, %v2102_v10  ;;  %v1828_v60 = vsel %vm547_vm0, %v1824_v35, %v1800_v8  ;;  %v2301_v28 = vrot.slane %v2277_v0, 6  ;;  %v2280_v45 = vpop.f32.mrf.mxu3 }
 0x1eb   : > { %v1836_v59 = vsel %vm556_vm1, %v1832_v22, %v1816_v39  ;;  %v1850_v63 = vrot.slane %v1828_v60, 1  ;;  %v1870_v9 = vrot.slane %v1828_v60, 2  ;;  %v1890_v38 = vrot.slane %v1828_v60, 3 }
 0x1ec   : > { %4058 = vst.msk [vmem:[%s5356_s8 + $0xa0] sm:$0xff] %vm464_vm14, %v5629_v33  ;;  %v2142_v61 = vadd.f32 %v2128_v30, %v2122_v11  ;;  %v1851_v3 = vrot.slane %v1836_v59, 1  ;;  %v1871_v1 = vrot.slane %v1836_v59, 2  ;;  %v1891_v18 = vrot.slane %v1836_v59, 3 }
 0x1ed   : > { %v1910_v27 = vrot.slane %v1828_v60, 4  ;;  %v1911_v36 = vrot.slane %v1836_v59, 4  ;;  %v2309_v58 = vrot.slane %v2277_v0, 5  ;;  %v1427_v57 = vmin.f32 %v5517_v16, %v5551_v41 }
 0x1ee   : > { %v2162_v6 = vadd.f32 %v2148_v29, %v2142_v61  ;;  %v1852_v49 = vsel %vm569_vm2, %v1850_v63, %v1851_v3  ;;  %v2317_v13 = vrot.slane %v2277_v0, 4  ;;  %v1872_v7 = vsel %vm590_vm3, %v1870_v9, %v1871_v1 }
 0x1ef   : > { %v1864_v51 = vadd.f32 %v1852_v49, %v1828_v60  ;;  %v1892_v42 = vsel %vm611_vm4, %v1890_v38, %v1891_v18  ;;  %v2325_v20 = vsel %vm542_vm15, %v2277_v0, %v2293_v34  ;;  %v1912_v12 = vsel %vm632_vm5, %v1910_v27, %v1911_v36 }
 0x1f0   : > { %v5642_v37 = vmul.f32 0.008, %v2162_v6  ;;  %v2329_v15 = vsel %vm547_vm0, %v2325_v20, %v2301_v28  ;;  %v2333_v47 = vsel %vm547_vm0, %v2301_v28, %v2309_v58  ;;  %v2031_v8 = vrot.slane %v2017_v46, 7 }
 0x1f1   : > { %v1884_v23 = vadd.f32 %v1872_v7, %v1864_v51  ;;  %v2337_v54 = vsel %vm556_vm1, %v2333_v47, %v2317_v13  ;;  %v2349_v4 = vrot.slane %v2329_v15, 1  ;;  %v2369_v56 = vrot.slane %v2329_v15, 2 }
 0x1f2   : > { %4066 = vst.msk [vmem:[%s5356_s8 + $0xc0] sm:$0xff] %vm464_vm14, %v5642_v37  ;;  %v2350_v31 = vrot.slane %v2337_v54, 1  ;;  %v2370_v44 = vrot.slane %v2337_v54, 2  ;;  %v2389_v32 = vrot.slane %v2329_v15, 3  ;;  %v2390_v0 = vrot.slane %v2337_v54, 3 }
 0x1f3   : > { %v1904_v26 = vadd.f32 %v1892_v42, %v1884_v23  ;;  %v2409_v5 = vrot.slane %v2329_v15, 4  ;;  %v2410_v10 = vrot.slane %v2337_v54, 4  ;;  %v2039_v39 = vrot.slane %v2017_v46, 6 }
 0x1f4   : > { %v2351_v30 = vsel %vm569_vm2, %v2349_v4, %v2350_v31  ;;  %v2371_v29 = vsel %vm590_vm3, %v2369_v56, %v2370_v44  ;;  %v2047_v35 = vrot.slane %v2017_v46, 5  ;;  %v2391_v60 = vsel %vm611_vm4, %v2389_v32, %v2390_v0  ;;  %v1539_v44 = vpop.f32.mrf.mxu0 }
 0x1f5   : > { %v1924_v22 = vadd.f32 %v1912_v12, %v1904_v26  ;;  %v2365_v11 = vadd.f32 %v2351_v30, %v2329_v15  ;;  %v2411_v34 = vsel %vm632_vm5, %v2409_v5, %v2410_v10  ;;  %v2055_v59 = vrot.slane %v2017_v46, 4 }
 0x1f6   : > { %v2063_v63 = vsel %vm542_vm15, %v2017_v46, %v2031_v8  ;;  %v2071_v9 = vsel %vm547_vm0, %v2039_v39, %v2047_v35  ;;  %v2294_v38 = vrot.slane %v2280_v45, 7  ;;  %v2302_v28 = vrot.slane %v2280_v45, 6 }
 0x1f7   : > { %v5657_v61 = vmul.f32 0.008, %v1924_v22  ;;  %v2385_v3 = vadd.f32 %v2371_v29, %v2365_v11  ;;  %v2067_v1 = vsel %vm547_vm0, %v2063_v63, %v2039_v39  ;;  %v2075_v18 = vsel %vm556_vm1, %v2071_v9, %v2055_v59 }
 0x1f8   : > { %v2089_v27 = vrot.slane %v2067_v1, 1  ;;  %v2109_v36 = vrot.slane %v2067_v1, 2  ;;  %v2129_v58 = vrot.slane %v2067_v1, 3  ;;  %v2090_v49 = vrot.slane %v2075_v18, 1 }
 0x1f9   : > { %4059 = vst.msk [vmem:[%s5356_s8 + $0xa8] sm:$0xff] %vm464_vm14, %v5657_v61  ;;  %v2405_v6 = vadd.f32 %v2391_v60, %v2385_v3  ;;  %v2110_v13 = vrot.slane %v2075_v18, 2  ;;  %v2130_v51 = vrot.slane %v2075_v18, 3  ;;  %v2149_v7 = vrot.slane %v2067_v1, 4 }
 0x1fa   : > { %v2150_v42 = vrot.slane %v2075_v18, 4  ;;  %v2310_v20 = vrot.slane %v2280_v45, 5  ;;  %v2318_v46 = vrot.slane %v2280_v45, 4  ;;  %v1697_v12 = vmin.f32 %v1426_v17, %v5566_v43 }
 0x1fb   : > { %v2425_v15 = vadd.f32 %v2411_v34, %v2405_v6  ;;  %v2091_v47 = vsel %vm569_vm2, %v2089_v27, %v2090_v49  ;;  %v2111_v23 = vsel %vm590_vm3, %v2109_v36, %v2110_v13  ;;  %v2131_v4 = vsel %vm611_vm4, %v2129_v58, %v2130_v51 }
 0x1fc   : > { %v2103_v54 = vadd.f32 %v2091_v47, %v2067_v1  ;;  %v2326_v56 = vsel %vm542_vm15, %v2280_v45, %v2294_v38  ;;  %v2334_v31 = vsel %vm547_vm0, %v2302_v28, %v2310_v20  ;;  %v2151_v8 = vsel %vm632_vm5, %v2149_v7, %v2150_v42  ;;  %v2283_v38 = vpop.f32.mrf.mxu3 }
 0x1fd   : > { %v5673_v32 = vmul.f32 0.008, %v2425_v15  ;;  %v2330_v14 = vsel %vm547_vm0, %v2326_v56, %v2302_v28  ;;  %v2338_v17 = vsel %vm556_vm1, %v2334_v31, %v2318_v46  ;;  %v1553_v39 = vrot.slane %v1539_v44, 7 }
 0x1fe   : > { %v2123_v26 = vadd.f32 %v2111_v23, %v2103_v54  ;;  %v2352_v0 = vrot.slane %v2330_v14, 1  ;;  %v2353_v5 = vrot.slane %v2338_v17, 1  ;;  %v2372_v10 = vrot.slane %v2330_v14, 2 }
 0x1ff   : > { %6897 = vst [vmem:[#allocation21_spill] sm:$0xff] %v5673_v32  ;;  %v2373_v30 = vrot.slane %v2338_v17, 2  ;;  %v2392_v45 = vrot.slane %v2330_v14, 3  ;;  %v2393_v29 = vrot.slane %v2338_v17, 3  ;;  %v2412_v11 = vrot.slane %v2330_v14, 4 }
 0x200   : > { %4074 = vst.msk [vmem:[%s5356_s8 + $0xe0] sm:$0xff] %vm464_vm14, %v5673_v32  ;;  %v2143_v35 = vadd.f32 %v2131_v4, %v2123_v26  ;;  %v2354_v22 = vsel %vm569_vm2, %v2352_v0, %v2353_v5  ;;  %v2413_v60 = vrot.slane %v2338_v17, 4  ;;  %v5686_v34 = vmin.f32 %v895_v48, %v5596_v62  ;;  %v1542_v26 = vpop.f32.mrf.mxu0 }
 0x201   : > { %v1936_v59 = vmin.f32 %v1697_v12, %v5629_v33  ;;  %v2366_v63 = vadd.f32 %v2354_v22, %v2330_v14  ;;  %v1561_v9 = vrot.slane %v1539_v44, 6  ;;  %v2374_v1 = vsel %vm590_vm3, %v2372_v10, %v2373_v30 }
 0x202   : > { %v2163_v3 = vadd.f32 %v2151_v8, %v2143_v35  ;;  %v1569_v28 = vrot.slane %v1539_v44, 5  ;;  %v1577_v18 = vrot.slane %v1539_v44, 4  ;;  %v2394_v36 = vsel %vm611_vm4, %v2392_v45, %v2393_v29 }
 0x203   : > { %v2386_v27 = vadd.f32 %v2374_v1, %v2366_v63  ;;  %v2414_v58 = vsel %vm632_vm5, %v2412_v11, %v2413_v60  ;;  %v1585_v6 = vsel %vm542_vm15, %v1539_v44, %v1553_v39  ;;  %v2295_v51 = vrot.slane %v2283_v38, 7 }
 0x204   : > { %v5693_v48 = vmul.f32 0.008, %v2163_v3  ;;  %v1589_v49 = vsel %vm547_vm0, %v1585_v6, %v1561_v9  ;;  %v1593_v13 = vsel %vm547_vm0, %v1561_v9, %v1569_v28  ;;  %v2303_v46 = vrot.slane %v2283_v38, 6 }
 0x205   : > { %v2406_v7 = vadd.f32 %v2394_v36, %v2386_v27  ;;  %v1597_v42 = vsel %vm556_vm1, %v1593_v13, %v1577_v18  ;;  %v1611_v20 = vrot.slane %v1589_v49, 1  ;;  %v1631_v15 = vrot.slane %v1589_v49, 2  ;;  %v2020_v13 = vpop.f32.mrf.mxu2 }
 0x206   : > { %4067 = vst.msk [vmem:[%s5356_s8 + $0xc8] sm:$0xff] %vm464_vm14, %v5693_v48  ;;  %v1612_v12 = vrot.slane %v1597_v42, 1  ;;  %v1632_v47 = vrot.slane %v1597_v42, 2  ;;  %v2311_v23 = vrot.slane %v2283_v38, 5  ;;  %v1651_v4 = vrot.slane %v1589_v49, 3 }
 0x207   : > { %v2426_v54 = vadd.f32 %v2414_v58, %v2406_v7  ;;  %v1652_v56 = vrot.slane %v1597_v42, 3  ;;  %v2319_v31 = vrot.slane %v2283_v38, 4  ;;  %v1671_v8 = vrot.slane %v1589_v49, 4 }
 0x208   : > { %v1613_v44 = vsel %vm569_vm2, %v1611_v20, %v1612_v12  ;;  %v1672_v14 = vrot.slane %v1597_v42, 4  ;;  %v2327_v17 = vsel %vm542_vm15, %v2283_v38, %v2295_v51  ;;  %v5704_v0 = vmin.f32 %v1936_v59, %v5642_v37 }
 0x209   : > { %v5706_v5 = vmul.f32 0.008, %v2426_v54  ;;  %v1625_v10 = vadd.f32 %v1613_v44, %v1589_v49  ;;  %v2331_v30 = vsel %vm547_vm0, %v2327_v17, %v2303_v46  ;;  %v1428_v45 = vmin.f32 %v5607_v40, %v5579_v21 }
 0x20a   : > { %6898 = vst [vmem:[#allocation11_spill] sm:$0xff] %v5704_v0  ;;  %v1429_v29 = vmin.f32 %v5686_v34, %v5613_v25  ;;  %v1633_v39 = vsel %vm590_vm3, %v1631_v15, %v1632_v47  ;;  %v2335_v35 = vsel %vm547_vm0, %v2303_v46, %v2311_v23  ;;  %v1554_v59 = vrot.slane %v1542_v26, 7 }
 0x20b   : > { %4075 = vst.msk [vmem:[%s5356_s8 + $0xe8] sm:$0xff] %vm464_vm14, %v5706_v5  ;;  %v1645_v11 = vadd.f32 %v1633_v39, %v1625_v10  ;;  %v2339_v60 = vsel %vm556_vm1, %v2335_v35, %v2319_v31  ;;  %v1653_v63 = vsel %vm611_vm4, %v1651_v4, %v1652_v56  ;;  %v1673_v9 = vsel %vm632_vm5, %v1671_v8, %v1672_v14  ;;  %v1545_v35 = vpop.f32.mrf.mxu0 }
 0x20c   : > { %v2355_v38 = vrot.slane %v2331_v30, 1  ;;  %v2356_v3 = vrot.slane %v2339_v60, 1  ;;  %v1562_v28 = vrot.slane %v1542_v26, 6  ;;  %v1570_v18 = vrot.slane %v1542_v26, 5 }
 0x20d   : > { %v1665_v1 = vadd.f32 %v1653_v63, %v1645_v11  ;;  %v1578_v27 = vrot.slane %v1542_v26, 4  ;;  %v2375_v36 = vrot.slane %v2331_v30, 2  ;;  %v2376_v58 = vrot.slane %v2339_v60, 2 }
 0x20e   : > { %v2395_v6 = vrot.slane %v2331_v30, 3  ;;  %v2415_v49 = vrot.slane %v2331_v30, 4  ;;  %v2396_v7 = vrot.slane %v2339_v60, 3  ;;  %v1586_v42 = vsel %vm542_vm15, %v1542_v26, %v1554_v59 }
 0x20f   : > { %v1685_v51 = vadd.f32 %v1673_v9, %v1665_v1  ;;  %v1594_v20 = vsel %vm547_vm0, %v1562_v28, %v1570_v18  ;;  %v2357_v46 = vsel %vm569_vm2, %v2355_v38, %v2356_v3  ;;  %v2416_v12 = vrot.slane %v2339_v60, 4 }
 0x210   : > { %v1590_v15 = vsel %vm547_vm0, %v1586_v42, %v1562_v28  ;;  %v1598_v47 = vsel %vm556_vm1, %v1594_v20, %v1578_v27  ;;  %v2032_v56 = vrot.slane %v2020_v13, 7  ;;  %v2377_v31 = vsel %vm590_vm3, %v2375_v36, %v2376_v58 }
 0x211   : > { %v5728_v23 = vmul.f32 0.008, %v1685_v51  ;;  %v1614_v54 = vrot.slane %v1590_v15, 1  ;;  %v1615_v4 = vrot.slane %v1598_v47, 1  ;;  %v1634_v44 = vrot.slane %v1590_v15, 2 }
 0x212   : > { %v1635_v8 = vrot.slane %v1598_v47, 2  ;;  %v2040_v14 = vrot.slane %v2020_v13, 6  ;;  %v2367_v17 = vadd.f32 %v2357_v46, %v2331_v30  ;;  %v1654_v10 = vrot.slane %v1590_v15, 3 }
 0x213   : > { %4051 = vst.msk [vmem:[%s5356_s8 + $0x88] sm:$0xff] %vm464_vm14, %v5728_v23  ;;  %v1616_v26 = vsel %vm569_vm2, %v1614_v54, %v1615_v4  ;;  %v1655_v39 = vrot.slane %v1598_v47, 3  ;;  %v5736_v11 = vsel %vm611_vm4, %v2395_v6, %v2396_v7  ;;  %v1674_v59 = vrot.slane %v1590_v15, 4 }
 0x214   : > { %v1626_v60 = vadd.f32 %v1616_v26, %v1590_v15  ;;  %v1675_v63 = vrot.slane %v1598_v47, 4  ;;  %v1636_v9 = vsel %vm590_vm3, %v1634_v44, %v1635_v8  ;;  %v2048_v38 = vrot.slane %v2020_v13, 5 }
 0x215   : > { %v2056_v3 = vrot.slane %v2020_v13, 4  ;;  %v2064_v1 = vsel %vm542_vm15, %v2020_v13, %v2032_v56  ;;  %v5741_v28 = vsel %vm632_vm5, %v2415_v49, %v2416_v12  ;;  %v1555_v27 = vrot.slane %v1545_v35, 7 }
 0x216   : > { %v1646_v30 = vadd.f32 %v1636_v9, %v1626_v60  ;;  %v2068_v18 = vsel %vm547_vm0, %v2064_v1, %v2040_v14  ;;  %v5744_v36 = vadd.f32 %v2377_v31, %v2367_v17  ;;  %v1656_v58 = vsel %vm611_vm4, %v1654_v10, %v1655_v39  ;;  %v1781_v60 = vpop.f32.mrf.mxu1 }
 0x217   : > { %v2072_v6 = vsel %vm547_vm0, %v2040_v14, %v2048_v38  ;;  %v2092_v51 = vrot.slane %v2068_v18, 1  ;;  %v1676_v42 = vsel %vm632_vm5, %v1674_v59, %v1675_v63  ;;  %v1563_v13 = vrot.slane %v1545_v35, 6 }
 0x218   : > { %v1666_v7 = vadd.f32 %v1656_v58, %v1646_v30  ;;  %v2076_v20 = vsel %vm556_vm1, %v2072_v6, %v2056_v3  ;;  %v2112_v49 = vrot.slane %v2068_v18, 2  ;;  %v2132_v15 = vrot.slane %v2068_v18, 3 }
 0x219   : > { %v2093_v46 = vrot.slane %v2076_v20, 1  ;;  %v2113_v12 = vrot.slane %v2076_v20, 2  ;;  %v1571_v54 = vrot.slane %v1545_v35, 5  ;;  %v1579_v4 = vrot.slane %v1545_v35, 4 }
 0x21a   : > { %v1686_v47 = vadd.f32 %v1676_v42, %v1666_v7  ;;  %v1587_v56 = vsel %vm542_vm15, %v1545_v35, %v1555_v27  ;;  %v2133_v44 = vrot.slane %v2076_v20, 3  ;;  %v2152_v8 = vrot.slane %v2068_v18, 4 }
 0x21b   : > { %v2094_v31 = vsel %vm569_vm2, %v2092_v51, %v2093_v46  ;;  %v2153_v14 = vrot.slane %v2076_v20, 4  ;;  %v1591_v10 = vsel %vm547_vm0, %v1587_v56, %v1563_v13  ;;  %v1595_v39 = vsel %vm547_vm0, %v1563_v13, %v1571_v54  ;;  %v2023_v13 = vpop.f32.mrf.mxu2 }
 0x21c   : > { %v5752_v17 = vmul.f32 0.008, %v1686_v47  ;;  %v2104_v26 = vadd.f32 %v2094_v31, %v2068_v18  ;;  %v2114_v59 = vsel %vm590_vm3, %v2112_v49, %v2113_v12  ;;  %v1599_v63 = vsel %vm556_vm1, %v1595_v39, %v1579_v4 }
 0x21d   : > { %v1617_v9 = vrot.slane %v1591_v10, 1  ;;  %v1637_v38 = vrot.slane %v1591_v10, 2  ;;  %v1618_v3 = vrot.slane %v1599_v63, 1  ;;  %v1638_v1 = vrot.slane %v1599_v63, 2 }
 0x21e   : > { %4052 = vst.msk [vmem:[%s5356_s8 + $0x90] sm:$0xff] %vm464_vm14, %v5752_v17  ;;  %v2124_v35 = vadd.f32 %v2114_v59, %v2104_v26  ;;  %v1657_v30 = vrot.slane %v1591_v10, 3  ;;  %v2134_v18 = vsel %vm611_vm4, %v2132_v15, %v2133_v44  ;;  %v2154_v27 = vsel %vm632_vm5, %v2152_v8, %v2153_v14 }
 0x21f   : > { %v1658_v58 = vrot.slane %v1599_v63, 3  ;;  %v1793_v6 = vrot.slane %v1781_v60, 7  ;;  %v1619_v7 = vsel %vm569_vm2, %v1617_v9, %v1618_v3  ;;  %v1677_v42 = vrot.slane %v1591_v10, 4 }
 0x220   : > { %v2144_v51 = vadd.f32 %v2134_v18, %v2124_v35  ;;  %v1801_v20 = vrot.slane %v1781_v60, 6  ;;  %v1627_v46 = vadd.f32 %v1619_v7, %v1591_v10  ;;  %v1639_v49 = vsel %vm590_vm3, %v1637_v38, %v1638_v1 }
 0x221   : > { %v1678_v12 = vrot.slane %v1599_v63, 4  ;;  %v1809_v47 = vrot.slane %v1781_v60, 5  ;;  %v1659_v4 = vsel %vm611_vm4, %v1657_v30, %v1658_v58  ;;  %v1817_v15 = vrot.slane %v1781_v60, 4 }
 0x222   : > { %v2164_v54 = vadd.f32 %v2154_v27, %v2144_v51  ;;  %v1825_v56 = vsel %vm542_vm15, %v1781_v60, %v1793_v6  ;;  %v1647_v31 = vadd.f32 %v1639_v49, %v1627_v46  ;;  %v2033_v14 = vrot.slane %v2023_v13, 7 }
 0x223   : > { %v1829_v44 = vsel %vm547_vm0, %v1825_v56, %v1801_v20  ;;  %v1833_v8 = vsel %vm547_vm0, %v1801_v20, %v1809_v47  ;;  %v2041_v59 = vrot.slane %v2023_v13, 6  ;;  %v5776_v60 = vmin.f32 %v1427_v57, %v5728_v23  ;;  %v1784_v57 = vpop.f32.mrf.mxu1 }
 0x224   : > { %v5769_v26 = vmul.f32 0.008, %v2164_v54  ;;  %v1837_v10 = vsel %vm556_vm1, %v1833_v8, %v1817_v15  ;;  %v1853_v39 = vrot.slane %v1829_v44, 1  ;;  %v1667_v63 = vadd.f32 %v1659_v4, %v1647_v31 }
 0x225   : > { %v1854_v9 = vrot.slane %v1837_v10, 1  ;;  %v1873_v38 = vrot.slane %v1829_v44, 2  ;;  %v1874_v35 = vrot.slane %v1837_v10, 2  ;;  %v1679_v3 = vsel %vm632_vm5, %v1677_v42, %v1678_v12 }
 0x226   : > { %4068 = vst.msk [vmem:[%s5356_s8 + $0xd0] sm:$0xff] %vm464_vm14, %v5769_v26  ;;  %v1893_v1 = vrot.slane %v1829_v44, 3  ;;  %v2049_v30 = vrot.slane %v2023_v13, 5  ;;  %v1687_v18 = vadd.f32 %v1679_v3, %v1667_v63  ;;  %v1894_v58 = vrot.slane %v1837_v10, 3 }
 0x227   : > { %v1855_v27 = vsel %vm569_vm2, %v1853_v39, %v1854_v9  ;;  %v2057_v6 = vrot.slane %v2023_v13, 4  ;;  %v1913_v7 = vrot.slane %v1829_v44, 4  ;;  %v1914_v20 = vrot.slane %v1837_v10, 4  ;;  %v2286_v9 = vpop.f32.mrf.mxu3 }
 0x228   : > { %v1865_v51 = vadd.f32 %v1855_v27, %v1829_v44  ;;  %v2065_v16 = vsel %vm542_vm15, %v2023_v13, %v2033_v14  ;;  %v5784_v46 = vmul.f32 0.008, %v1687_v18  ;;  %v1875_v49 = vsel %vm590_vm3, %v1873_v38, %v1874_v35 }
 0x229   : > { %v2069_v42 = vsel %vm547_vm0, %v2065_v16, %v2041_v59  ;;  %v2073_v12 = vsel %vm547_vm0, %v2041_v59, %v2049_v30  ;;  %v5793_v54 = vadd.f32 %v5736_v11, %v5744_v36  ;;  %v1895_v13 = vsel %vm611_vm4, %v1893_v1, %v1894_v58 }
 0x22a   : > { %v1885_v4 = vadd.f32 %v1875_v49, %v1865_v51  ;;  %v2077_v15 = vsel %vm556_vm1, %v2073_v12, %v2057_v6  ;;  %4053 = vst.msk [vmem:[%s5356_s8 + $0x98] sm:$0xff] %vm464_vm14, %v5784_v46  ;;  %v2095_v56 = vrot.slane %v2069_v42, 1  ;;  %v1794_v44 = vrot.slane %v1784_v57, 7 }
 0x22b   : > { %v2096_v31 = vrot.slane %v2077_v15, 1  ;;  %v5804_v8 = vmin.f32 %v1428_v45, %v5752_v17  ;;  %v1915_v11 = vsel %vm632_vm5, %v1913_v7, %v1914_v20  ;;  %v2115_v36 = vrot.slane %v2069_v42, 2 }
 0x22c   : > { %v1905_v14 = vadd.f32 %v1895_v13, %v1885_v4  ;;  %v5811_v10 = vmin.f32 %v1429_v29, %v5784_v46  ;;  %v2116_v39 = vrot.slane %v2077_v15, 2  ;;  %v1802_v59 = vrot.slane %v1784_v57, 6 }
 0x22d   : > { %v1810_v63 = vrot.slane %v1784_v57, 5  ;;  %v2135_v35 = vrot.slane %v2069_v42, 3  ;;  %v2136_v40 = vrot.slane %v2077_v15, 3  ;;  %v2155_v45 = vrot.slane %v2069_v42, 4 }
 0x22e   : > { %v1925_v38 = vadd.f32 %v1915_v11, %v1905_v14  ;;  %v2097_v3 = vsel %vm569_vm2, %v2095_v56, %v2096_v31  ;;  %v1818_v1 = vrot.slane %v1784_v57, 4  ;;  %v1826_v30 = vsel %vm542_vm15, %v1784_v57, %v1794_v44 }
 0x22f   : > { %v1834_v18 = vsel %vm547_vm0, %v1802_v59, %v1810_v63  ;;  %v2156_v34 = vrot.slane %v2077_v15, 4  ;;  %v1830_v29 = vsel %vm547_vm0, %v1826_v30, %v1802_v59  ;;  %v2296_v58 = vrot.slane %v2286_v9, 7 }
 0x230   : > { %v5816_v27 = vmul.f32 0.008, %v1925_v38  ;;  %v2117_v6 = vsel %vm590_vm3, %v2115_v36, %v2116_v39  ;;  %v1838_v51 = vsel %vm556_vm1, %v1834_v18, %v1818_v1  ;;  %v1856_v7 = vrot.slane %v1830_v29, 1  ;;  %v2994_v36 = vpop.f32.mrf.mxu2 }
 0x231   : > { %v2304_v20 = vrot.slane %v2286_v9, 6  ;;  %v2105_v16 = vadd.f32 %v2097_v3, %v2069_v42  ;;  %v1857_v49 = vrot.slane %v1838_v51, 1  ;;  %v1876_v57 = vrot.slane %v1830_v29, 2 }
 0x232   : > { %4060 = vst.msk [vmem:[%s5356_s8 + $0xb0] sm:$0xff] %vm464_vm14, %v5816_v27  ;;  %v1877_v12 = vrot.slane %v1838_v51, 2  ;;  %v1896_v4 = vrot.slane %v1830_v29, 3  ;;  %v1897_v13 = vrot.slane %v1838_v51, 3  ;;  %v1916_v56 = vrot.slane %v1830_v29, 4 }
 0x233   : > { %v2312_v15 = vrot.slane %v2286_v9, 5  ;;  %v1858_v31 = vsel %vm569_vm2, %v1856_v7, %v1857_v49  ;;  %v1917_v44 = vrot.slane %v1838_v51, 4  ;;  %v2320_v14 = vrot.slane %v2286_v9, 4 }
 0x234   : > { %v2328_v11 = vsel %vm542_vm15, %v2286_v9, %v2296_v58  ;;  %v2137_v39 = vsel %vm611_vm4, %v2135_v35, %v2136_v40  ;;  %v5828_v59 = vsel %vm632_vm5, %v2155_v45, %v2156_v34  ;;  %v1866_v42 = vadd.f32 %v1858_v31, %v1830_v29  ;;  %v2516_v31 = vpop.f32.mrf.mxu0 }
 0x235   : > { %v5831_v63 = vsel %vm547_vm0, %v2328_v11, %v2304_v20  ;;  %v2125_v38 = vadd.f32 %v2117_v6, %v2105_v16  ;;  %v1878_v3 = vsel %vm590_vm3, %v1876_v57, %v1877_v12  ;;  %v2336_v1 = vsel %vm547_vm0, %v2304_v20, %v2312_v15 }
 0x236   : > { %v2358_v30 = vrot.slane %v5831_v63, 1  ;;  %v1886_v18 = vadd.f32 %v1878_v3, %v1866_v42  ;;  %v1898_v9 = vsel %vm611_vm4, %v1896_v4, %v1897_v13  ;;  %v5838_v58 = vsel %vm556_vm1, %v2336_v1, %v2320_v14 }
 0x237   : > { %v3010_v35 = vrot.slane %v2994_v36, 7  ;;  %v1918_v40 = vsel %vm632_vm5, %v1916_v56, %v1917_v44  ;;  %v2359_v45 = vrot.slane %v5838_v58, 1  ;;  %v2378_v34 = vrot.slane %v5831_v63, 2 }
 0x238   : > { %v2398_v29 = vrot.slane %v5831_v63, 3  ;;  %v1906_v6 = vadd.f32 %v1898_v9, %v1886_v18  ;;  %v3018_v51 = vrot.slane %v2994_v36, 6  ;;  %v3026_v7 = vrot.slane %v2994_v36, 5 }
 0x239   : > { %v3034_v20 = vrot.slane %v2994_v36, 4  ;;  %v2360_v16 = vsel %vm569_vm2, %v2358_v30, %v2359_v45  ;;  %v2379_v49 = vrot.slane %v5838_v58, 2  ;;  %v2399_v57 = vrot.slane %v5838_v58, 3 }
 0x23a   : > { %v3042_v12 = vsel %vm542_vm15, %v2994_v36, %v3010_v35  ;;  %v1926_v4 = vadd.f32 %v1918_v40, %v1906_v6  ;;  %v2368_v13 = vadd.f32 %v2360_v16, %v5831_v63  ;;  %v3050_v15 = vsel %vm547_vm0, %v3018_v51, %v3026_v7  ;;  %v2755_v35 = vpop.f32.mrf.mxu1 }
 0x23b   : > { %v5850_v56 = vsel %vm547_vm0, %v3042_v12, %v3018_v51  ;;  %v5855_v14 = vadd.f32 %v2137_v39, %v2125_v38  ;;  %v5858_v11 = vsel %vm556_vm1, %v3050_v15, %v3034_v20  ;;  %v2380_v18 = vsel %vm590_vm3, %v2378_v34, %v2379_v49 }
 0x23c   : > { %6899 = vst [vmem:[#allocation13_spill] sm:$0xff] %v5850_v56  ;;  %v3066_v36 = vrot.slane %v5850_v56, 1  ;;  %v5861_v42 = vmul.f32 0.008, %v1926_v4  ;;  %v3067_v30 = vrot.slane %v5858_v11, 1  ;;  %v2400_v9 = vsel %vm611_vm4, %v2398_v29, %v2399_v57 }
 0x23d   : > { %6900 = vst [vmem:[#allocation14_spill] sm:$0xff] %v5858_v11  ;;  %v3086_v39 = vrot.slane %v5850_v56, 2  ;;  %v2532_v38 = vrot.slane %v2516_v31, 7  ;;  %v2388_v40 = vadd.f32 %v2380_v18, %v2368_v13  ;;  %v3087_v6 = vrot.slane %v5858_v11, 2 }
 0x23e   : > { %4061 = vst.msk [vmem:[%s5356_s8 + $0xb8] sm:$0xff] %vm464_vm14, %v5861_v42  ;;  %v3068_v45 = vsel %vm569_vm2, %v3066_v36, %v3067_v30  ;;  %v2540_v20 = vrot.slane %v2516_v31, 6  ;;  %v2548_v34 = vrot.slane %v2516_v31, 5  ;;  %v2556_v16 = vrot.slane %v2516_v31, 4 }
 0x23f   : > { %v2564_v29 = vsel %vm542_vm15, %v2516_v31, %v2532_v38  ;;  %v2771_v49 = vrot.slane %v2755_v35, 7  ;;  %v2779_v57 = vrot.slane %v2755_v35, 6  ;;  %v2787_v12 = vrot.slane %v2755_v35, 5 }
 0x240   : > { %v3082_v4 = vadd.f32 %v3068_v45, %v5850_v56  ;;  %v2568_v15 = vsel %vm547_vm0, %v2564_v29, %v2540_v20  ;;  %v2572_v36 = vsel %vm547_vm0, %v2540_v20, %v2548_v34  ;;  %v2795_v7 = vrot.slane %v2755_v35, 4  ;;  %v3233_v34 = vpop.f32.mrf.mxu3 }
 0x241   : > { %v2576_v18 = vsel %vm556_vm1, %v2572_v36, %v2556_v16  ;;  %v2588_v51 = vrot.slane %v2568_v15, 1  ;;  %v5885_v38 = vadd.f32 %v2400_v9, %v2388_v40  ;;  %v3088_v22 = vsel %vm590_vm3, %v3086_v39, %v3087_v6 }
 0x242   : > { %v2589_v45 = vrot.slane %v2576_v18, 1  ;;  %v2608_v44 = vrot.slane %v2568_v15, 2  ;;  %v2609_v13 = vrot.slane %v2576_v18, 2  ;;  %v2803_v29 = vsel %vm542_vm15, %v2755_v35, %v2771_v49 }
 0x243   : > { %v2811_v20 = vsel %vm547_vm0, %v2779_v57, %v2787_v12  ;;  %v5890_v30 = vadd.f32 %v3088_v22, %v3082_v4  ;;  %v2628_v36 = vrot.slane %v2568_v15, 3  ;;  %v5894_v47 = vsel %vm547_vm0, %v2803_v29, %v2779_v57  ;;  %v2519_v29 = vpop.f32.mrf.mxu0 }
 0x244   : > { %v2590_v16 = vsel %vm569_vm2, %v2588_v51, %v2589_v45  ;;  %6902 = vst [vmem:[#allocation15_spill] sm:$0xff] %v5894_v47  ;;  %v2629_v40 = vrot.slane %v2576_v18, 3  ;;  %v5897_v39 = vsel %vm556_vm1, %v2811_v20, %v2795_v7  ;;  %v2827_v6 = vrot.slane %v5894_v47, 1 }
 0x245   : > { %6901 = vst [vmem:[#allocation6_spill] sm:$0xff] %v5890_v30  ;;  %v2604_v9 = vadd.f32 %v2590_v16, %v2568_v15  ;;  %v2828_v35 = vrot.slane %v5897_v39, 1  ;;  %v2847_v49 = vrot.slane %v5894_v47, 2  ;;  %v2848_v22 = vrot.slane %v5897_v39, 2 }
 0x246   : > { %6903 = vst [vmem:[#allocation16_spill] sm:$0xff] %v5897_v39  ;;  %v3249_v12 = vrot.slane %v3233_v34, 7  ;;  %v2610_v51 = vsel %vm590_vm3, %v2608_v44, %v2609_v13  ;;  %v2648_v4 = vrot.slane %v2568_v15, 4  ;;  %v2649_v45 = vrot.slane %v2576_v18, 4 }
 0x247   : > { %v2867_v57 = vrot.slane %v5894_v47, 3  ;;  %v2624_v16 = vadd.f32 %v2610_v51, %v2604_v9  ;;  %v2829_v7 = vsel %vm569_vm2, %v2827_v6, %v2828_v35  ;;  %v3257_v20 = vrot.slane %v3233_v34, 6 }
 0x248   : > { %v3265_v31 = vrot.slane %v3233_v34, 5  ;;  %v2843_v3 = vadd.f32 %v2829_v7, %v5894_v47  ;;  %v2849_v1 = vsel %vm590_vm3, %v2847_v49, %v2848_v22  ;;  %v2868_v30 = vrot.slane %v5897_v39, 3 }
 0x249   : > { %v3273_v56 = vrot.slane %v3233_v34, 4  ;;  %v3281_v11 = vsel %vm542_vm15, %v3233_v34, %v3249_v12  ;;  %v2533_v13 = vrot.slane %v2519_v29, 7  ;;  %v2541_v15 = vrot.slane %v2519_v29, 6 }
 0x24a   : > { %v3289_v44 = vsel %vm547_vm0, %v3257_v20, %v3265_v31  ;;  %v2863_v18 = vadd.f32 %v2849_v1, %v2843_v3  ;;  %v5912_v9 = vsel %vm547_vm0, %v3281_v11, %v3257_v20  ;;  %v2549_v35 = vrot.slane %v2519_v29, 5  ;;  %v2997_v31 = vpop.f32.mrf.mxu2 }
 0x24b   : > { %6904 = vst [vmem:[#allocation19_spill] sm:$0xff] %v5912_v9  ;;  %v5915_v6 = vsel %vm556_vm1, %v3289_v44, %v3273_v56  ;;  %v2630_v51 = vsel %vm611_vm4, %v2628_v36, %v2629_v40  ;;  %v5919_v49 = vsel %vm632_vm5, %v2648_v4, %v2649_v45  ;;  %v3305_v22 = vrot.slane %v5912_v9, 1 }
 0x24c   : > { %6905 = vst [vmem:[#allocation5_spill] sm:$0xff] %v5915_v6  ;;  %v3306_v34 = vrot.slane %v5915_v6, 1  ;;  %v5923_v12 = vadd.f32 %v2630_v51, %v2624_v16  ;;  %v2869_v3 = vsel %vm611_vm4, %v2867_v57, %v2868_v30  ;;  %v3325_v36 = vrot.slane %v5912_v9, 2 }
 0x24d   : > { %v3326_v40 = vrot.slane %v5915_v6, 2  ;;  %v2557_v4 = vrot.slane %v2519_v29, 4  ;;  %v5931_v45 = vadd.f32 %v2869_v3, %v2863_v18  ;;  %v2565_v7 = vsel %vm542_vm15, %v2519_v29, %v2533_v13 }
 0x24e   : > { %v3307_v1 = vsel %vm569_vm2, %v3305_v22, %v3306_v34  ;;  %v2573_v16 = vsel %vm547_vm0, %v2541_v15, %v2549_v35  ;;  %v3011_v20 = vrot.slane %v2997_v31, 7  ;;  %v2569_v57 = vsel %vm547_vm0, %v2565_v7, %v2541_v15 }
 0x24f   : > { %6906 = vst [vmem:[#allocation4_spill] sm:$0xff] %v5931_v45  ;;  %v3321_v30 = vadd.f32 %v3307_v1, %v5912_v9  ;;  %v2577_v44 = vsel %vm556_vm1, %v2573_v16, %v2557_v4  ;;  %v3019_v51 = vrot.slane %v2997_v31, 6  ;;  %v2591_v22 = vrot.slane %v2569_v57, 1 }
 0x250   : > { %v2592_v34 = vrot.slane %v2577_v44, 1  ;;  %v2611_v11 = vrot.slane %v2569_v57, 2  ;;  %v3027_v56 = vrot.slane %v2997_v31, 5  ;;  %v2612_v47 = vrot.slane %v2577_v44, 2 }
 0x251   : > { %v2631_v39 = vrot.slane %v2569_v57, 3  ;;  %v2632_v18 = vrot.slane %v2577_v44, 3  ;;  %v2651_v3 = vrot.slane %v2569_v57, 4  ;;  %v2652_v13 = vrot.slane %v2577_v44, 4  ;;  %v3236_v44 = vpop.f32.mrf.mxu3 }
 0x252   : > { %v2593_v29 = vsel %vm569_vm2, %v2591_v22, %v2592_v34  ;;  %v3035_v35 = vrot.slane %v2997_v31, 4  ;;  %v3043_v45 = vsel %vm542_vm15, %v2997_v31, %v3011_v20  ;;  %v3327_v16 = vsel %vm590_vm3, %v3325_v36, %v3326_v40 }
 0x253   : > { %v2605_v4 = vadd.f32 %v2593_v29, %v2569_v57  ;;  %v5943_v7 = vsel %vm547_vm0, %v3043_v45, %v3019_v51  ;;  %v3051_v32 = vsel %vm547_vm0, %v3019_v51, %v3027_v56  ;;  %v5949_v34 = vadd.f32 %v3327_v16, %v3321_v30  ;;  %v2522_v51 = vpop.f32.mrf.mxu0 }
 0x254   : > { %6907 = vst [vmem:[#allocation17_spill] sm:$0xff] %v5943_v7  ;;  %v3069_v22 = vrot.slane %v5943_v7, 1  ;;  %v2613_v20 = vsel %vm590_vm3, %v2611_v11, %v2612_v47  ;;  %v5954_v57 = vsel %vm556_vm1, %v3051_v32, %v3035_v35  ;;  %v2633_v45 = vsel %vm611_vm4, %v2631_v39, %v2632_v18  ;;  %v2758_v32 = vpop.f32.mrf.mxu1 }
 0x255   : > { %6908 = vst [vmem:[#allocation7_spill] sm:$0xff] %v5949_v34  ;;  %v5958_v36 = vsel %vm632_vm5, %v2651_v3, %v2652_v13  ;;  %v3070_v40 = vrot.slane %v5954_v57, 1  ;;  %v3089_v56 = vrot.slane %v5943_v7, 2  ;;  %v2625_v29 = vadd.f32 %v2613_v20, %v2605_v4 }
 0x256   : > { %6909 = vst [vmem:[#allocation8_spill] sm:$0xff] %v5954_v57  ;;  %v3250_v30 = vrot.slane %v3236_v44, 7  ;;  %v3258_v16 = vrot.slane %v3236_v44, 6  ;;  %v3266_v0 = vrot.slane %v3236_v44, 5  ;;  %v3090_v47 = vrot.slane %v5954_v57, 2 }
 0x257   : > { %6910 = vst [vmem:[#allocation12_spill] sm:$0xff] %v5958_v36  ;;  %v3071_v31 = vsel %vm569_vm2, %v3069_v22, %v3070_v40  ;;  %v3274_v11 = vrot.slane %v3236_v44, 4  ;;  %v2534_v3 = vrot.slane %v2522_v51, 7  ;;  %v2542_v13 = vrot.slane %v2522_v51, 6 }
 0x258   : > { %v3282_v39 = vsel %vm542_vm15, %v3236_v44, %v3250_v30  ;;  %v3290_v18 = vsel %vm547_vm0, %v3258_v16, %v3266_v0  ;;  %v2550_v20 = vrot.slane %v2522_v51, 5  ;;  %v2558_v1 = vrot.slane %v2522_v51, 4 }
 0x259   : > { %v5968_v35 = vsel %vm547_vm0, %v3282_v39, %v3258_v16  ;;  %v5971_v4 = vsel %vm556_vm1, %v3290_v18, %v3274_v11  ;;  %v3083_v22 = vadd.f32 %v3071_v31, %v5943_v7  ;;  %v5981_v11 = vadd.f32 %v2633_v45, %v2625_v29 }
 0x25a   : > { %6911 = vst [vmem:[#allocation3_spill] sm:$0xff] %v5968_v35  ;;  %v3308_v15 = vrot.slane %v5968_v35, 1  ;;  %v3309_v44 = vrot.slane %v5971_v4, 1  ;;  %v3328_v16 = vrot.slane %v5968_v35, 2  ;;  %v3329_v39 = vrot.slane %v5971_v4, 2 }
 0x25b   : > { %6912 = vst [vmem:[#allocation18_spill] sm:$0xff] %v5971_v4  ;;  %v2566_v31 = vsel %vm542_vm15, %v2522_v51, %v2534_v3  ;;  %v2574_v40 = vsel %vm547_vm0, %v2542_v13, %v2550_v20  ;;  %v3091_v34 = vsel %vm590_vm3, %v3089_v56, %v3090_v47 }
 0x25c   : > { %6913 = vst [vmem:[#allocation9_spill] sm:$0xff] %v5981_v11  ;;  %v3310_v18 = vsel %vm569_vm2, %v3308_v15, %v3309_v44  ;;  %v5989_v0 = vsel %vm547_vm0, %v2566_v31, %v2542_v13  ;;  %v5992_v30 = vsel %vm556_vm1, %v2574_v40, %v2558_v1  ;;  %v5994_v6 = vadd.f32 %v3091_v34, %v3083_v22  ;;  %v3000_v13 = vpop.f32.mrf.mxu2 }
 0x25d   : > { %v3322_v9 = vadd.f32 %v3310_v18, %v5968_v35  ;;  %v2594_v15 = vrot.slane %v5989_v0, 1  ;;  %v2595_v51 = vrot.slane %v5992_v30, 1  ;;  %v3330_v29 = vsel %vm590_vm3, %v3328_v16, %v3329_v39 }
 0x25e   : > { %6914 = vst [vmem:[#allocation22_spill] sm:$0xff] %v5994_v6  ;;  %v2614_v34 = vrot.slane %v5989_v0, 2  ;;  %v2615_v20 = vrot.slane %v5992_v30, 2  ;;  %v2772_v22 = vrot.slane %v2758_v32, 7  ;;  %v2780_v18 = vrot.slane %v2758_v32, 6 }
 0x25f   : > { %v2596_v1 = vsel %vm569_vm2, %v2594_v15, %v2595_v51  ;;  %v6006_v40 = vadd.f32 %v3330_v29, %v3322_v9  ;;  %v2788_v16 = vrot.slane %v2758_v32, 5  ;;  %v2634_v39 = vrot.slane %v5989_v0, 3 }
 0x260   : > { %v2606_v44 = vadd.f32 %v2596_v1, %v5989_v0  ;;  %v2796_v31 = vrot.slane %v2758_v32, 4  ;;  %v2804_v47 = vsel %vm542_vm15, %v2758_v32, %v2772_v22  ;;  %v3012_v3 = vrot.slane %v3000_v13, 7 }
 0x261   : > { %6915 = vst [vmem:[#allocation20_spill] sm:$0xff] %v6006_v40  ;;  %v2635_v45 = vrot.slane %v5992_v30, 3  ;;  %v6013_v15 = vsel %vm547_vm0, %v2804_v47, %v2780_v18  ;;  %v2812_v51 = vsel %vm547_vm0, %v2780_v18, %v2788_v16  ;;  %v3020_v56 = vrot.slane %v3000_v13, 6 }
 0x262   : > { %6916 = vst [vmem:[#allocation23_spill] sm:$0xff] %v6013_v15  ;;  %v2616_v9 = vsel %vm590_vm3, %v2614_v34, %v2615_v20  ;;  %v6018_v29 = vsel %vm556_vm1, %v2812_v51, %v2796_v31  ;;  %v2830_v1 = vrot.slane %v6013_v15, 1  ;;  %v3028_v40 = vrot.slane %v3000_v13, 5  ;;  %v2761_v20 = vpop.f32.mrf.mxu1 }
 0x263   : > { %6917 = vst [vmem:[#allocation10_spill] sm:$0xff] %v6018_v29  ;;  %v2626_v35 = vadd.f32 %v2616_v9, %v2606_v44  ;;  %v2831_v32 = vrot.slane %v6018_v29, 1  ;;  %v2850_v22 = vrot.slane %v6013_v15, 2  ;;  %v2870_v4 = vrot.slane %v6013_v15, 3 }
 0x264   : > { %v2851_v47 = vrot.slane %v6018_v29, 2  ;;  %v2871_v18 = vrot.slane %v6018_v29, 3  ;;  %v3036_v16 = vrot.slane %v3000_v13, 4  ;;  %v3044_v34 = vsel %vm542_vm15, %v3000_v13, %v3012_v3 }
 0x265   : > { %v2832_v44 = vsel %vm569_vm2, %v2830_v1, %v2831_v32  ;;  %v6031_v9 = vsel %vm547_vm0, %v3044_v34, %v3020_v56  ;;  %v2636_v6 = vsel %vm611_vm4, %v2634_v39, %v2635_v45  ;;  %v3052_v57 = vsel %vm547_vm0, %v3020_v56, %v3028_v40  ;;  %v3003_v34 = vpop.f32.mrf.mxu2 }
 0x266   : > { %6918 = vst [vmem:[#allocation24_spill] sm:$0xff] %v6031_v9  ;;  %v2844_v7 = vadd.f32 %v2832_v44, %v6013_v15  ;;  %v3072_v36 = vrot.slane %v6031_v9, 1  ;;  %v6037_v11 = vadd.f32 %v2636_v6, %v2626_v35  ;;  %v6041_v13 = vsel %vm556_vm1, %v3052_v57, %v3036_v16 }
 0x267   : > { %6919 = vst [vmem:[#allocation25_spill] sm:$0xff] %v6041_v13  ;;  %v2773_v31 = vrot.slane %v2761_v20, 7  ;;  %v2852_v1 = vsel %vm590_vm3, %v2850_v22, %v2851_v47  ;;  %v2872_v32 = vsel %vm611_vm4, %v2870_v4, %v2871_v18  ;;  %v3073_v39 = vrot.slane %v6041_v13, 1  ;;  %v3239_v22 = vpop.f32.mrf.mxu3 }
 0x268   : > { %v2864_v56 = vadd.f32 %v2852_v1, %v2844_v7  ;;  %v2781_v40 = vrot.slane %v2761_v20, 6  ;;  %v2789_v44 = vrot.slane %v2761_v20, 5  ;;  %v2797_v6 = vrot.slane %v2761_v20, 4 }
 0x269   : > { %v3074_v35 = vsel %vm569_vm2, %v3072_v36, %v3073_v39  ;;  %v3092_v3 = vrot.slane %v6031_v9, 2  ;;  %v3093_v57 = vrot.slane %v6041_v13, 2  ;;  %v2805_v16 = vsel %vm542_vm15, %v2761_v20, %v2773_v31 }
 0x26a   : > { %v6053_v4 = vsel %vm547_vm0, %v2805_v16, %v2781_v40  ;;  %v2813_v47 = vsel %vm547_vm0, %v2781_v40, %v2789_v44  ;;  %v3013_v18 = vrot.slane %v3003_v34, 7  ;;  %v6062_v45 = vadd.f32 %v2872_v32, %v2864_v56 }
 0x26b   : > { %6920 = vst [vmem:[#allocation26_spill] sm:$0xff] %v6053_v4  ;;  %v6059_v36 = vsel %vm556_vm1, %v2813_v47, %v2797_v6  ;;  %v2833_v39 = vrot.slane %v6053_v4, 1  ;;  %v3084_v20 = vadd.f32 %v3074_v35, %v6031_v9  ;;  %v3094_v40 = vsel %vm590_vm3, %v3092_v3, %v3093_v57  ;;  %v2525_v47 = vpop.f32.mrf.mxu0 }
 0x26c   : > { %6921 = vst [vmem:[#allocation27_spill] sm:$0xff] %v6059_v36  ;;  %v2834_v16 = vrot.slane %v6059_v36, 1  ;;  %v2853_v44 = vrot.slane %v6053_v4, 2  ;;  %v3021_v7 = vrot.slane %v3003_v34, 6  ;;  %v3029_v1 = vrot.slane %v3003_v34, 5 }
 0x26d   : > { %6922 = vst [vmem:[#allocation28_spill] sm:$0xff] %v6062_v45  ;;  %v3037_v51 = vrot.slane %v3003_v34, 4  ;;  %v3045_v32 = vsel %vm542_vm15, %v3003_v34, %v3013_v18  ;;  %v2854_v56 = vrot.slane %v6059_v36, 2  ;;  %v3251_v9 = vrot.slane %v3239_v22, 7 }
 0x26e   : > { %v2835_v6 = vsel %vm569_vm2, %v2833_v39, %v2834_v16  ;;  %v6074_v35 = vsel %vm547_vm0, %v3045_v32, %v3021_v7  ;;  %v3053_v31 = vsel %vm547_vm0, %v3021_v7, %v3029_v1  ;;  %v6077_v3 = vadd.f32 %v3094_v40, %v3084_v20 }
 0x26f   : > { %6923 = vst [vmem:[#allocation29_spill] sm:$0xff] %v6074_v35  ;;  %v6081_v13 = vsel %vm556_vm1, %v3053_v31, %v3037_v51  ;;  %v3075_v39 = vrot.slane %v6074_v35, 1  ;;  %v2845_v16 = vadd.f32 %v2835_v6, %v6053_v4  ;;  %v3095_v7 = vrot.slane %v6074_v35, 2  ;;  %v3242_v36 = vpop.f32.mrf.mxu3 }
 0x270   : > { %6924 = vst [vmem:[#allocation30_spill] sm:$0xff] %v6077_v3  ;;  %v3076_v32 = vrot.slane %v6081_v13, 1  ;;  %v3096_v1 = vrot.slane %v6081_v13, 2  ;;  %v3259_v20 = vrot.slane %v3239_v22, 6  ;;  %v3267_v40 = vrot.slane %v3239_v22, 5 }
 0x271   : > { %6925 = vst [vmem:[#allocation31_spill] sm:$0xff] %v6081_v13  ;;  %v2855_v51 = vsel %vm590_vm3, %v2853_v44, %v2854_v56  ;;  %v3275_v57 = vrot.slane %v3239_v22, 4  ;;  %v3283_v6 = vsel %vm542_vm15, %v3239_v22, %v3251_v9  ;;  %v2535_v45 = vrot.slane %v2525_v47, 7  ;;  %v2764_v56 = vpop.f32.mrf.mxu1 }
 0x272   : > { %v3077_v31 = vsel %vm569_vm2, %v3075_v39, %v3076_v32  ;;  %v6095_v18 = vsel %vm547_vm0, %v3283_v6, %v3259_v20  ;;  %v3291_v3 = vsel %vm547_vm0, %v3259_v20, %v3267_v40  ;;  %v6098_v15 = vadd.f32 %v2855_v51, %v2845_v16 }
 0x273   : > { %6926 = vst [vmem:[#allocation32_spill] sm:$0xff] %v6095_v18  ;;  %v3085_v29 = vadd.f32 %v3077_v31, %v6074_v35  ;;  %v6103_v44 = vsel %vm556_vm1, %v3291_v3, %v3275_v57  ;;  %v3097_v9 = vsel %vm590_vm3, %v3095_v7, %v3096_v1  ;;  %v3311_v32 = vrot.slane %v6095_v18, 1 }
 0x274   : > { %6927 = vst [vmem:[#allocation33_spill] sm:$0xff] %v6098_v15  ;;  %v2543_v40 = vrot.slane %v2525_v47, 6  ;;  %v2551_v51 = vrot.slane %v2525_v47, 5  ;;  %v3312_v31 = vrot.slane %v6103_v44, 1  ;;  %v2559_v6 = vrot.slane %v2525_v47, 4 }
 0x275   : > { %6928 = vst [vmem:[#allocation34_spill] sm:$0xff] %v6103_v44  ;;  %v2567_v3 = vsel %vm542_vm15, %v2525_v47, %v2535_v45  ;;  %v2774_v57 = vrot.slane %v2764_v56, 7  ;;  %v6113_v34 = vadd.f32 %v3097_v9, %v3085_v29  ;;  %v2782_v22 = vrot.slane %v2764_v56, 6 }
 0x276   : > { %v2571_v7 = vsel %vm547_vm0, %v2567_v3, %v2543_v40  ;;  %v2575_v1 = vsel %vm547_vm0, %v2543_v40, %v2551_v51  ;;  %v3313_v29 = vsel %vm569_vm2, %v3311_v32, %v3312_v31  ;;  %v2790_v47 = vrot.slane %v2764_v56, 5 }
 0x277   : > { %6929 = vst [vmem:[#allocation35_spill] sm:$0xff] %v6113_v34  ;;  %v2579_v16 = vsel %vm556_vm1, %v2575_v1, %v2559_v6  ;;  %v2597_v4 = vrot.slane %v2571_v7, 1  ;;  %v2617_v15 = vrot.slane %v2571_v7, 2  ;;  %v2798_v9 = vrot.slane %v2764_v56, 4 }
 0x278   : > { %v2598_v13 = vrot.slane %v2579_v16, 1  ;;  %v2618_v45 = vrot.slane %v2579_v16, 2  ;;  %v2806_v3 = vsel %vm542_vm15, %v2764_v56, %v2774_v57  ;;  %v2637_v39 = vrot.slane %v2571_v7, 3 }
 0x279   : > { %v6126_v20 = vsel %vm547_vm0, %v2806_v3, %v2782_v22  ;;  %v2638_v1 = vrot.slane %v2579_v16, 3  ;;  %v2814_v35 = vsel %vm547_vm0, %v2782_v22, %v2790_v47  ;;  %v6131_v32 = vadd.f32 %v3313_v29, %v6095_v18 }
 0x27a   : > { %v2599_v51 = vsel %vm569_vm2, %v2597_v4, %v2598_v13  ;;  %v2836_v34 = vrot.slane %v6126_v20, 1  ;;  %v2619_v56 = vsel %vm590_vm3, %v2617_v15, %v2618_v45  ;;  %v2657_v31 = vrot.slane %v2571_v7, 4 }
 0x27b   : > { %v2607_v6 = vadd.f32 %v2599_v51, %v2571_v7  ;;  %6930 = vst [vmem:[#allocation36_spill] sm:$0xff] %v6131_v32  ;;  %v6135_v57 = vsel %vm556_vm1, %v2814_v35, %v2798_v9  ;;  %v2658_v4 = vrot.slane %v2579_v16, 4  ;;  %v2856_v51 = vrot.slane %v6126_v20, 2 }
 0x27c   : > { %v2837_v3 = vrot.slane %v6135_v57, 1  ;;  %v2857_v22 = vrot.slane %v6135_v57, 2  ;;  %v3252_v47 = vrot.slane %v3242_v36, 7  ;;  %v3260_v40 = vrot.slane %v3242_v36, 6 }
 0x27d   : > { %v2627_v13 = vadd.f32 %v2619_v56, %v2607_v6  ;;  %v3268_v44 = vrot.slane %v3242_v36, 5  ;;  %v2639_v29 = vsel %vm611_vm4, %v2637_v39, %v2638_v1  ;;  %v2876_v15 = vrot.slane %v6126_v20, 3 }
 0x27e   : > { %v2838_v32 = vsel %vm569_vm2, %v2836_v34, %v2837_v3  ;;  %v2877_v35 = vrot.slane %v6135_v57, 3  ;;  %v3276_v16 = vrot.slane %v3242_v36, 4  ;;  %v3284_v45 = vsel %vm542_vm15, %v3242_v36, %v3252_v47 }
 0x27f   : > { %v2846_v7 = vadd.f32 %v2838_v32, %v6126_v20  ;;  %v3292_v9 = vsel %vm547_vm0, %v3260_v40, %v3268_v44  ;;  %v2659_v6 = vsel %vm632_vm5, %v2657_v31, %v2658_v4  ;;  %v2896_v56 = vrot.slane %v6126_v20, 4  ;;  %v6964_v20 = vld [vmem:[#allocation8_spill] sm:$0xff] }
 0x280   : > { %v2897_v18 = vrot.slane %v6135_v57, 4  ;;  %v6151_v39 = vsel %vm547_vm0, %v3284_v45, %v3260_v40  ;;  %v2647_v34 = vadd.f32 %v2639_v29, %v2627_v13  ;;  %v2858_v1 = vsel %vm590_vm3, %v2856_v51, %v2857_v22 }
 0x281   : > { %v6155_v3 = vsel %vm556_vm1, %v3292_v9, %v3276_v16  ;;  %v899_v36 = vadd.f32 %v5469_v50, %v5460_v2  ;;  %v2878_v44 = vsel %vm611_vm4, %v2876_v15, %v2877_v35  ;;  %v3314_v32 = vrot.slane %v6151_v39, 1 }
 0x282   : > { %v3315_v31 = vrot.slane %v6155_v3, 1  ;;  %v1169_v4 = vadd.f32 %v5540_v55, %v5452_v52  ;;  %v2866_v40 = vadd.f32 %v2858_v1, %v2846_v7  ;;  %v1430_v51 = vadd.f32 %v5523_v19, %v5502_v24 }
 0x283   : > { %v1170_v13 = vadd.f32 %v5596_v62, %v899_v36  ;;  %v1431_v22 = vadd.f32 %v5551_v41, %v5520_v53  ;;  %v3334_v2 = vrot.slane %v6151_v39, 2  ;;  %v3335_v50 = vrot.slane %v6155_v3, 2 }
 0x284   : > { %v1432_v47 = vadd.f32 %v5579_v21, %v1169_v4  ;;  %v2165_v29 = vadd.f32 %v5828_v59, %v5855_v14  ;;  %v3354_v52 = vrot.slane %v6151_v39, 3  ;;  %v3355_v55 = vrot.slane %v6155_v3, 3 }
 0x285   : > { %v3374_v62 = vrot.slane %v6151_v39, 4  ;;  %v1702_v24 = vadd.f32 %v5728_v23, %v1431_v22  ;;  %v3316_v53 = vsel %vm569_vm2, %v3314_v32, %v3315_v31  ;;  %v1433_v19 = vadd.f32 %v5613_v25, %v1170_v13 }
 0x286   : > { %v1703_v41 = vadd.f32 %v5752_v17, %v1432_v47  ;;  %v2169_v15 = vmul.f32 0.008, %v2165_v29  ;;  %v1701_v21 = vadd.f32 %v5566_v43, %v1430_v51  ;;  %v6931_v14 = vrot.slane %v5838_v58, 4  ;;  %v6943_v47 = vld [vmem:[#allocation26_spill] sm:$0xff] }
 0x287   : > { %v1941_v59 = vadd.f32 %v5657_v61, %v1702_v24  ;;  %v6932_v35 = vrot.slane %v5831_v63, 4  ;;  %v2427_v23 = vadd.f32 %v5741_v28, %v5793_v54  ;;  %v1704_v16 = vadd.f32 %v5784_v46, %v1433_v19 }
 0x288   : > { %v1942_v25 = vadd.f32 %v5816_v27, %v1703_v41  ;;  %v6933_v17 = vmin.f32 %v5776_v60, %v5657_v61  ;;  %4069 = vst.msk [vmem:[%s5356_s8 + $0xd8] sm:$0xff] %vm464_vm14, %v2169_v15  ;;  %v6200_v63 = vadd.f32 %v3316_v53, %v6151_v39  ;;  %v3375_v58 = vrot.slane %v6155_v3, 4  ;;  %v6945_v41 = vld [vmem:[#allocation33_spill] sm:$0xff] }
 0x289   : > { %v2420_v7 = vsel %vm632_vm5, %v6932_v35, %v6931_v14  ;;  %v1940_v28 = vadd.f32 %v5629_v33, %v1701_v21  ;;  %v2431_v46 = vmul.f32 0.008, %v2427_v23  ;;  %v1943_v54 = vadd.f32 %v5861_v42, %v1704_v16  ;;  %v6946_v23 = vld [vmem:[#allocation11_spill] sm:$0xff] }
 0x28a   : > { %v2176_v43 = vmin.f32 %v6933_v17, %v5693_v48  ;;  %v2428_v45 = vadd.f32 %v2420_v7, %v5885_v38  ;;  %v6934_v61 = vmin.f32 %v5804_v8, %v5816_v27  ;;  %v6935_v38 = vmin.f32 %v5811_v10, %v5861_v42  ;;  %v6938_v27 = vld [vmem:[#allocation9_spill] sm:$0xff]  ;;  %v6939_v42 = vld [vmem:[#allocation12_spill] sm:$0xff] }
 0x28b   : > { %v2179_v36 = vadd.f32 %v5642_v37, %v1940_v28  ;;  %v2180_v32 = vadd.f32 %v5693_v48, %v1941_v59  ;;  %v6936_v31 = vrot.slane %v5992_v30, 4  ;;  %v6937_v33 = vrot.slane %v5989_v0, 4  ;;  %4076 = vst.msk [vmem:[%s5356_s8 + $0xf0] sm:$0xff] %vm464_vm14, %v2431_v46  ;;  %v6940_v0 = vld [vmem:[#allocation21_spill] sm:$0xff]  ;;  %v6948_v17 = vld [vmem:[#allocation16_spill] sm:$0xff] }
 0x28c   : > { %v2177_v60 = vmin.f32 %v6934_v61, %v5769_v26  ;;  %v2178_v9 = vmin.f32 %v6935_v38, %v2169_v15  ;;  %v2432_v1 = vmul.f32 0.008, %v2428_v45  ;;  %v2664_v13 = vadd.f32 %v5919_v49, %v5923_v12  ;;  %v6941_v49 = vld [vmem:[#allocation27_spill] sm:$0xff] }
 0x28d   : > { %v2656_v4 = vsel %vm632_vm5, %v6937_v33, %v6936_v31  ;;  %v2181_v8 = vadd.f32 %v5769_v26, %v1942_v25  ;;  %v2439_v10 = vmin.f32 %v2176_v43, %v5706_v5  ;;  %v2665_v37 = vadd.f32 %v6939_v42, %v6938_v27  ;;  %v6950_v45 = vld [vmem:[#allocation15_spill] sm:$0xff]  ;;  %v6959_v31 = vld [vmem:[#allocation28_spill] sm:$0xff]  ;;  %v6960_v27 = vld [vmem:[#allocation14_spill] sm:$0xff] }
 0x28e   : > { %v2666_v48 = vadd.f32 %v2656_v4, %v6037_v11  ;;  %4077 = vst.msk [vmem:[%s5356_s8 + $0xf8] sm:$0xff] %vm464_vm14, %v2432_v1  ;;  %v2442_v30 = vadd.f32 %v6940_v0, %v2179_v36  ;;  %v2667_v51 = vadd.f32 %v2659_v6, %v2647_v34  ;;  %v2668_v22 = vmul.f32 0.008, %v2664_v13  ;;  %v6958_v36 = vld [vmem:[#allocation4_spill] sm:$0xff] }
 0x28f   : > { %v6942_v12 = vrot.slane %v6941_v49, 3  ;;  %v6944_v29 = vrot.slane %v6943_v47, 3  ;;  %v2182_v24 = vadd.f32 %v2169_v15, %v1943_v54  ;;  %v2669_v53 = vmul.f32 0.008, %v2665_v37  ;;  %v6954_v54 = vld [vmem:[#allocation23_spill] sm:$0xff]  ;;  %v6962_v37 = vld [vmem:[#allocation13_spill] sm:$0xff] }
 0x290   : > { %v2670_v19 = vmul.f32 0.008, %v2666_v48  ;;  %v2440_v11 = vmin.f32 %v2177_v60, %v2431_v46  ;;  %v2443_v59 = vadd.f32 %v5706_v5, %v2180_v32  ;;  %v2671_v14 = vmul.f32 0.008, %v2667_v51  ;;  %4082 = vst.msk [vmem:[%s5356_s8 + $0x100] sm:$0xff] %vm464_vm14, %v2668_v22 }
 0x291   : > { %v2875_v26 = vsel %vm611_vm4, %v6944_v29, %v6942_v12  ;;  %v2886_v35 = vadd.f32 %v2878_v44, %v2866_v40  ;;  %v2441_v6 = vmin.f32 %v2178_v9, %v2432_v1  ;;  %v2444_v34 = vadd.f32 %v2431_v46, %v2181_v8  ;;  %4083 = vst.msk [vmem:[%s5356_s8 + $0x108] sm:$0xff] %vm464_vm14, %v2669_v53  ;;  %v6952_v40 = vld [vmem:[#allocation10_spill] sm:$0xff] }
 0x292   : > { %v2885_v21 = vadd.f32 %v2875_v26, %v6945_v41  ;;  %v2445_v7 = vadd.f32 %v2432_v1, %v2182_v24  ;;  %v6947_v16 = vmin.f32 %v6946_v23, %v6940_v0  ;;  %v2681_v25 = vadd.f32 %v2668_v22, %v2442_v30  ;;  %4084 = vst.msk [vmem:[%s5356_s8 + $0x110] sm:$0xff] %vm464_vm14, %v2670_v19  ;;  %v6972_v41 = vld [vmem:[#allocation6_spill] sm:$0xff] }
 0x293   : > { %v6949_v43 = vrot.slane %v6948_v17, 4  ;;  %v6951_v5 = vrot.slane %v6950_v45, 4  ;;  %v6953_v28 = vrot.slane %v6952_v40, 4  ;;  %v6955_v61 = vrot.slane %v6954_v54, 4  ;;  %4085 = vst.msk [vmem:[%s5356_s8 + $0x118] sm:$0xff] %vm464_vm14, %v2671_v14 }
 0x294   : > { %v6243_v15 = vmin.f32 %v6947_v16, %v2668_v22  ;;  %v6956_v60 = vrot.slane %v6941_v49, 4  ;;  %v6957_v38 = vrot.slane %v6943_v47, 4  ;;  %v2898_v1 = vsel %vm632_vm5, %v2896_v56, %v2897_v18  ;;  %v6966_v18 = vld [vmem:[#allocation17_spill] sm:$0xff]  ;;  %v6970_v47 = vld [vmem:[#allocation24_spill] sm:$0xff]  ;;  %v6974_v16 = vld [vmem:[#allocation30_spill] sm:$0xff] }
 0x295   : > { %v2889_v44 = vsel %vm632_vm5, %v6951_v5, %v6949_v43  ;;  %v2892_v46 = vsel %vm632_vm5, %v6955_v61, %v6953_v28  ;;  %v6273_v13 = vmin.f32 %v2439_v10, %v2669_v53  ;;  %v2906_v8 = vadd.f32 %v2898_v1, %v2886_v35  ;;  %v6968_v49 = vld [vmem:[#allocation25_spill] sm:$0xff]  ;;  %v6973_v35 = vld [vmem:[#allocation22_spill] sm:$0xff]  ;;  %v6975_v61 = vld [vmem:[#allocation31_spill] sm:$0xff] }
 0x296   : > { %v2895_v9 = vsel %vm632_vm5, %v6957_v38, %v6956_v60  ;;  %v2903_v32 = vadd.f32 %v2889_v44, %v6958_v36  ;;  %v2904_v33 = vadd.f32 %v2892_v46, %v6959_v31  ;;  %v6961_v42 = vrot.slane %v6960_v27, 3  ;;  %v6977_v60 = vld [vmem:[#allocation29_spill] sm:$0xff] }
 0x297   : > { %v2905_v4 = vadd.f32 %v2895_v9, %v2885_v21  ;;  %v6963_v48 = vrot.slane %v6962_v37, 3  ;;  %v6965_v0 = vrot.slane %v6964_v20, 3  ;;  %v6967_v56 = vrot.slane %v6966_v18, 3 }
 0x298   : > { %v2907_v51 = vmul.f32 0.008, %v2903_v32  ;;  %v6285_v22 = vmul.f32 0.008, %v2904_v33  ;;  %v6969_v12 = vrot.slane %v6968_v49, 3  ;;  %v6971_v29 = vrot.slane %v6970_v47, 3 }
 0x299   : > { %v3108_v57 = vsel %vm611_vm4, %v6963_v48, %v6961_v42  ;;  %v3111_v30 = vsel %vm611_vm4, %v6967_v56, %v6965_v0  ;;  %v6287_v10 = vmul.f32 0.008, %v2905_v4  ;;  %v6294_v24 = vmul.f32 0.008, %v2906_v8 }
 0x29a   : > { %v3114_v26 = vsel %vm611_vm4, %v6971_v29, %v6969_v12  ;;  %v3122_v21 = vadd.f32 %v3108_v57, %v6972_v41  ;;  %v3123_v23 = vadd.f32 %v3111_v30, %v6973_v35  ;;  %v6299_v43 = vmin.f32 %v2440_v11, %v2670_v19  ;;  %4090 = vst.msk [vmem:[%s5356_s8 + $0x120] sm:$0xff] %vm464_vm14, %v2907_v51  ;;  %v6990_v57 = vld [vmem:[#allocation32_spill] sm:$0xff] }
 0x29b   : > { %v3124_v17 = vadd.f32 %v3114_v26, %v6974_v16  ;;  %v6301_v45 = vmin.f32 %v2441_v6, %v2671_v14  ;;  %v2682_v5 = vadd.f32 %v2669_v53, %v2443_v59  ;;  %v2683_v44 = vadd.f32 %v2670_v19, %v2444_v34  ;;  %4091 = vst.msk [vmem:[%s5356_s8 + $0x128] sm:$0xff] %vm464_vm14, %v6285_v22  ;;  %v6979_v53 = vld [vmem:[#allocation35_spill] sm:$0xff] }
 0x29c   : > { %v2684_v40 = vadd.f32 %v2671_v14, %v2445_v7  ;;  %v2916_v28 = vmin.f32 %v6243_v15, %v2907_v51  ;;  %v2917_v54 = vmin.f32 %v6273_v13, %v6285_v22  ;;  %v6976_v46 = vrot.slane %v6975_v61, 3  ;;  %4092 = vst.msk [vmem:[%s5356_s8 + $0x130] sm:$0xff] %vm464_vm14, %v6287_v10 }
 0x29d   : > { %v6978_v38 = vrot.slane %v6977_v60, 3  ;;  %v6980_v59 = vrot.slane %v6960_v27, 4  ;;  %v6981_v14 = vrot.slane %v6962_v37, 4  ;;  %v6982_v34 = vrot.slane %v6964_v20, 4  ;;  %4093 = vst.msk [vmem:[%s5356_s8 + $0x138] sm:$0xff] %vm464_vm14, %v6294_v24  ;;  %v6988_v37 = vld [vmem:[#allocation34_spill] sm:$0xff] }
 0x29e   : > { %v6983_v7 = vrot.slane %v6966_v18, 4  ;;  %v6984_v9 = vrot.slane %v6968_v49, 4  ;;  %v6985_v1 = vrot.slane %v6970_v47, 4  ;;  %v6986_v32 = vrot.slane %v6975_v61, 4 }
 0x29f   : > { %v3117_v11 = vsel %vm611_vm4, %v6978_v38, %v6976_v46  ;;  %v3128_v6 = vsel %vm632_vm5, %v6981_v14, %v6980_v59  ;;  %v6987_v31 = vrot.slane %v6977_v60, 4  ;;  %v2920_v27 = vadd.f32 %v2907_v51, %v2681_v25  ;;  %v6992_v25 = vld [vmem:[#allocation36_spill] sm:$0xff]  ;;  %v7003_v46 = vld [vmem:[#allocation7_spill] sm:$0xff] }
 0x2a0   : > { %v3125_v19 = vadd.f32 %v3117_v11, %v6979_v53  ;;  %v3131_v15 = vsel %vm632_vm5, %v6983_v7, %v6982_v34  ;;  %v3134_v36 = vsel %vm632_vm5, %v6985_v1, %v6984_v9  ;;  %v3142_v4 = vadd.f32 %v3128_v6, %v3122_v21  ;;  %v6993_v21 = vld [vmem:[#allocation5_spill] sm:$0xff]  ;;  %v7004_v38 = vld [vmem:[#allocation20_spill] sm:$0xff] }
 0x2a1   : > { %v3137_v33 = vsel %vm632_vm5, %v6987_v31, %v6986_v32  ;;  %v3143_v13 = vadd.f32 %v3131_v15, %v3123_v23  ;;  %v3144_v8 = vadd.f32 %v3134_v36, %v3124_v17  ;;  %v6989_v48 = vrot.slane %v6988_v37, 2  ;;  %v6995_v23 = vld [vmem:[#allocation19_spill] sm:$0xff] }
 0x2a2   : > { %v3145_v42 = vadd.f32 %v3137_v33, %v3125_v19  ;;  %v6991_v20 = vrot.slane %v6990_v57, 2  ;;  %v3336_v18 = vsel %vm590_vm3, %v3334_v2, %v3335_v50  ;;  %v3146_v56 = vmul.f32 0.008, %v3142_v4 }
 0x2a3   : > { %v3147_v30 = vmul.f32 0.008, %v3143_v13  ;;  %v3148_v49 = vmul.f32 0.008, %v3144_v8  ;;  %v2918_v12 = vmin.f32 %v6299_v43, %v6287_v10  ;;  %v2919_v47 = vmin.f32 %v6301_v45, %v6294_v24  ;;  %v6997_v45 = vld [vmem:[#allocation18_spill] sm:$0xff] }
 0x2a4   : > { %v3333_v0 = vsel %vm590_vm3, %v6991_v20, %v6989_v48  ;;  %v3149_v29 = vmul.f32 0.008, %v3145_v42  ;;  %v3344_v26 = vadd.f32 %v3336_v18, %v6200_v63  ;;  %v2921_v41 = vadd.f32 %v6285_v22, %v2682_v5  ;;  %4098 = vst.msk [vmem:[%s5356_s8 + $0x140] sm:$0xff] %vm464_vm14, %v3146_v56  ;;  %v6999_v5 = vld [vmem:[#allocation3_spill] sm:$0xff] }
 0x2a5   : > { %v3343_v51 = vadd.f32 %v3333_v0, %v6992_v25  ;;  %v2922_v2 = vadd.f32 %v6287_v10, %v2683_v44  ;;  %v2923_v50 = vadd.f32 %v6294_v24, %v2684_v40  ;;  %v6994_v35 = vrot.slane %v6993_v21, 3  ;;  %4099 = vst.msk [vmem:[%s5356_s8 + $0x148] sm:$0xff] %vm464_vm14, %v3147_v30 }
 0x2a6   : > { %v6996_v16 = vrot.slane %v6995_v23, 3  ;;  %v3155_v43 = vmin.f32 %v2916_v28, %v3146_v56  ;;  %v3159_v63 = vadd.f32 %v3146_v56, %v2920_v27  ;;  %v6998_v22 = vrot.slane %v6997_v45, 3  ;;  %4100 = vst.msk [vmem:[%s5356_s8 + $0x150] sm:$0xff] %vm464_vm14, %v3148_v49 }
 0x2a7   : > { %v7000_v61 = vrot.slane %v6999_v5, 3  ;;  %v7001_v24 = vrot.slane %v6988_v37, 3  ;;  %v7002_v44 = vrot.slane %v6990_v57, 3  ;;  %v3356_v28 = vsel %vm611_vm4, %v3354_v52, %v3355_v55  ;;  %4101 = vst.msk [vmem:[%s5356_s8 + $0x158] sm:$0xff] %vm464_vm14, %v3149_v29 }
 0x2a8   : > { %v3347_v17 = vsel %vm611_vm4, %v6996_v16, %v6994_v35  ;;  %v3364_v19 = vadd.f32 %v3356_v28, %v3344_v26  ;;  %v7005_v59 = vrot.slane %v6993_v21, 4  ;;  %v7006_v14 = vrot.slane %v6995_v23, 4  ;;  %v3411_v26 = vld [vmem:[%s5356_s8 + $0x8] sm:$0xff]  ;;  %v3413_v16 = vld [vmem:[%s5356_s8 + $0x18] sm:$0xff]  ;;  %v3416_v28 = vld [vmem:[%s5356_s8 + $0x30] sm:$0xff] }
 0x2a9   : > { %v3350_v10 = vsel %vm611_vm4, %v7000_v61, %v6998_v22  ;;  %v3353_v40 = vsel %vm611_vm4, %v7002_v44, %v7001_v24  ;;  %v3361_v60 = vadd.f32 %v3347_v17, %v7003_v46  ;;  %v7007_v34 = vrot.slane %v6997_v45, 4  ;;  %v3415_v61 = vld [vmem:[%s5356_s8 + $0x28] sm:$0xff] }
 0x2aa   : > { %v3362_v11 = vadd.f32 %v3350_v10, %v7004_v38  ;;  %v3363_v53 = vadd.f32 %v3353_v40, %v3343_v51  ;;  %v3367_v6 = vsel %vm632_vm5, %v7006_v14, %v7005_v59  ;;  %v7008_v7 = vrot.slane %v6999_v5, 4  ;;  %v3419_v59 = vld [vmem:[%s5356_s8 + $0x48] sm:$0xff] }
 0x2ab   : > { %v7009_v55 = vrot.slane %v6988_v37, 4  ;;  %v7010_v15 = vrot.slane %v6990_v57, 4  ;;  %v3376_v1 = vsel %vm632_vm5, %v3374_v62, %v3375_v58  ;;  %v3381_v36 = vadd.f32 %v3367_v6, %v3361_v60  ;;  %v3417_v60 = vld [vmem:[%s5356_s8 + $0x38] sm:$0xff]  ;;  %v3420_v6 = vld [vmem:[%s5356_s8 + $0x50] sm:$0xff] }
 0x2ac   : > { %v3370_v52 = vsel %vm632_vm5, %v7008_v7, %v7007_v34  ;;  %v3156_v33 = vmin.f32 %v2917_v54, %v3147_v30  ;;  %v3160_v4 = vadd.f32 %v3147_v30, %v2921_v41  ;;  %v3162_v13 = vadd.f32 %v3149_v29, %v2923_v50  ;;  %v3410_v54 = vld [vmem:[%s5356_s8] sm:$0xff]  ;;  %v3421_v7 = vld [vmem:[%s5356_s8 + $0x58] sm:$0xff] }
 0x2ad   : > { %v3373_v9 = vsel %vm632_vm5, %v7010_v15, %v7009_v55  ;;  %v3382_v32 = vadd.f32 %v3370_v52, %v3362_v11  ;;  %v3384_v8 = vadd.f32 %v3376_v1, %v3364_v19  ;;  %v3385_v27 = vmul.f32 0.008, %v3381_v36  ;;  %v3418_v11 = vld [vmem:[%s5356_s8 + $0x40] sm:$0xff]  ;;  %v3424_v36 = vld [vmem:[%s5356_s8 + $0x70] sm:$0xff] }
 0x2ae   : > { %v3383_v31 = vadd.f32 %v3373_v9, %v3363_v53  ;;  %v3158_v48 = vmin.f32 %v2919_v47, %v3149_v29  ;;  %v3161_v3 = vadd.f32 %v3148_v49, %v2922_v2  ;;  %v3157_v62 = vmin.f32 %v2918_v12, %v3148_v49  ;;  %v3412_v2 = vld [vmem:[%s5356_s8 + $0x10] sm:$0xff]  ;;  %v3422_v55 = vld [vmem:[%s5356_s8 + $0x60] sm:$0xff]  ;;  %v3423_v9 = vld [vmem:[%s5356_s8 + $0x68] sm:$0xff] }
 0x2af   : > { %v3386_v42 = vmul.f32 0.008, %v3382_v32  ;;  %v3388_v39 = vmul.f32 0.008, %v3384_v8  ;;  %v6417_v58 = vmin.f32 %v3155_v43, %v3385_v27  ;;  %v3398_v57 = vadd.f32 %v3385_v27, %v3159_v63  ;;  %4106 = vst.msk [vmem:[%s5356_s8 + $0x160] sm:$0xff] %vm464_vm14, %v3385_v27  ;;  %v3414_v43 = vld [vmem:[%s5356_s8 + $0x20] sm:$0xff] }
 0x2b0   : > { %v3387_v37 = vmul.f32 0.008, %v3383_v31  ;;  %v3425_v31 = vld [vmem:[%s5356_s8 + $0x78] sm:$0xff]  ;;  %v3427_v8 = vld [vmem:[%s5356_s8 + $0x88] sm:$0xff] }
 0x2b1   : > { %v6422_v20 = vmin.f32 %v3156_v33, %v3386_v42  ;;  %v3399_v0 = vadd.f32 %v3386_v42, %v3160_v4  ;;  %v3401_v56 = vadd.f32 %v3388_v39, %v3162_v13  ;;  %4107 = vst.msk [vmem:[%s5356_s8 + $0x168] sm:$0xff] %vm464_vm14, %v3386_v42  ;;  %v3402_v25 = vmul.f32 0.083333336, %v3398_v57  ;;  %v3426_v4 = vld [vmem:[%s5356_s8 + $0x80] sm:$0xff]  ;;  %v3428_v42 = vld [vmem:[%s5356_s8 + $0x90] sm:$0xff]  ;;  %v3431_v57 = vld [vmem:[%s5356_s8 + $0xa8] sm:$0xff] }
 0x2b2   : > { %v3400_v18 = vadd.f32 %v3387_v37, %v3161_v3  ;;  %v6426_v30 = vmin.f32 %v3157_v62, %v3387_v37  ;;  %4108 = vst.msk [vmem:[%s5356_s8 + $0x170] sm:$0xff] %vm464_vm14, %v3387_v37  ;;  %v3458_v49 = vsub.f32 %v3410_v54, %v6417_v58  ;;  %v6436_v51 = vmin.f32 %v3158_v48, %v3388_v39  ;;  %v3429_v48 = vld [vmem:[%s5356_s8 + $0x98] sm:$0xff] }
 0x2b3   : > { %v3403_v12 = vmul.f32 0.083333336, %v3399_v0  ;;  %v3405_v29 = vmul.f32 0.083333336, %v3401_v56  ;;  %v3406_v41 = vsub.f32 %v3402_v25, %v6417_v58  ;;  %4109 = vst.msk [vmem:[%s5356_s8 + $0x178] sm:$0xff] %vm464_vm14, %v3388_v39  ;;  %v3459_v23 = vsub.f32 %v3411_v26, %v6422_v20  ;;  %v3430_v39 = vld [vmem:[%s5356_s8 + $0xa0] sm:$0xff] }
 0x2b4   : > { %v3404_v47 = vmul.f32 0.083333336, %v3400_v18  ;;  %3506 = vst.msk [vmem:[%s5356_s8] sm:$0xff] %vm464_vm14, %v3458_v49  ;;  %v3460_v17 = vsub.f32 %v3412_v2, %v6426_v30  ;;  %v3461_v5 = vsub.f32 %v3413_v16, %v6436_v51  ;;  %v3462_v24 = vsub.f32 %v3414_v43, %v6417_v58  ;;  %v3432_v0 = vld [vmem:[%s5356_s8 + $0xb0] sm:$0xff]  ;;  %v3433_v56 = vld [vmem:[%s5356_s8 + $0xb8] sm:$0xff]  ;;  %v3434_v49 = vld [vmem:[%s5356_s8 + $0xc0] sm:$0xff] }
 0x2b5   : > { %v3407_v50 = vsub.f32 %v3403_v12, %v6422_v20  ;;  %v6446_v35 = vsub.f32 %v3405_v29, %v6436_v51  ;;  %3554 = vst.msk [vmem:[%s6434_s24] sm:$0xff] %vm464_vm14, %v3406_v41  ;;  %v3558_v63 = vsel %vm464_vm14, %v3406_v41, 0.0  ;;  %v3463_v40 = vsub.f32 %v3415_v61, %v6422_v20  ;;  %v3436_v26 = vld [vmem:[%s5356_s8 + $0xd0] sm:$0xff]  ;;  %v3437_v2 = vld [vmem:[%s5356_s8 + $0xd8] sm:$0xff]  ;;  %v3439_v16 = vld [vmem:[%s5356_s8 + $0xe8] sm:$0xff] }
 0x2b6   : > { %v3408_v21 = vsub.f32 %v3404_v47, %v6426_v30  ;;  %3507 = vst.msk [vmem:[%s5356_s8 + $0x8] sm:$0xff] %vm464_vm14, %v3459_v23  ;;  %v3464_v38 = vsub.f32 %v3416_v28, %v6426_v30  ;;  %v3465_v19 = vsub.f32 %v3417_v60, %v6436_v51  ;;  %v3466_v14 = vsub.f32 %v3418_v11, %v6417_v58  ;;  %v3435_v47 = vld [vmem:[%s5356_s8 + $0xc8] sm:$0xff]  ;;  %v3440_v43 = vld [vmem:[%s5356_s8 + $0xf0] sm:$0xff]  ;;  %v3446_v28 = vld [vmem:[%s5356_s8 + $0x120] sm:$0xff] }
 0x2b7   : > { %3555 = vst.msk [vmem:[%s6434_s24 + $0x8] sm:$0xff] %vm464_vm14, %v3407_v50  ;;  %v3559_v45 = vsel %vm464_vm14, %v3407_v50, 0.0  ;;  %v3563_v44 = vsel %vm464_vm14, %v6446_v35, 0.0  ;;  %v3467_v34 = vsub.f32 %v3419_v59, %v6422_v20  ;;  %v3468_v52 = vsub.f32 %v3420_v6, %v6426_v30  ;;  %v3447_v60 = vld [vmem:[%s5356_s8 + $0x128] sm:$0xff]  ;;  %v3448_v11 = vld [vmem:[%s5356_s8 + $0x130] sm:$0xff] }
 0x2b8   : > { %v3561_v22 = vsel %vm464_vm14, %v3408_v21, 0.0  ;;  %3556 = vst.msk [vmem:[%s6434_s24 + $0x10] sm:$0xff] %vm464_vm14, %v3408_v21  ;;  %v3560_v10 = vadd.f32 %v3559_v45, %v3558_v63  ;;  %v3469_v15 = vsub.f32 %v3421_v7, %v6436_v51  ;;  %v3470_v1 = vsub.f32 %v3422_v55, %v6417_v58  ;;  %v3438_v21 = vld [vmem:[%s5356_s8 + $0xe0] sm:$0xff]  ;;  %v3451_v6 = vld [vmem:[%s5356_s8 + $0x148] sm:$0xff] }
 0x2b9   : > { %3508 = vst.msk [vmem:[%s5356_s8 + $0x10] sm:$0xff] %vm464_vm14, %v3460_v17  ;;  %v3471_v32 = vsub.f32 %v3423_v9, %v6422_v20  ;;  %v3472_v33 = vsub.f32 %v3424_v36, %v6426_v30  ;;  %v3473_v13 = vsub.f32 %v3425_v31, %v6436_v51  ;;  %v3474_v27 = vsub.f32 %v3426_v4, %v6417_v58  ;;  %v3442_v63 = vld [vmem:[%s5356_s8 + $0x100] sm:$0xff]  ;;  %v3453_v36 = vld [vmem:[%s5356_s8 + $0x158] sm:$0xff] }
 0x2ba   : > { %v3562_v46 = vadd.f32 %v3561_v22, %v3560_v10  ;;  %3509 = vst.msk [vmem:[%s5356_s8 + $0x18] sm:$0xff] %vm464_vm14, %v3461_v5  ;;  %v3475_v37 = vsub.f32 %v3427_v8, %v6422_v20  ;;  %v3476_v3 = vsub.f32 %v3428_v42, %v6426_v30  ;;  %v3477_v62 = vsub.f32 %v3429_v48, %v6436_v51  ;;  %v3441_v22 = vld [vmem:[%s5356_s8 + $0xf8] sm:$0xff]  ;;  %v3443_v10 = vld [vmem:[%s5356_s8 + $0x108] sm:$0xff]  ;;  %v3450_v7 = vld [vmem:[%s5356_s8 + $0x140] sm:$0xff] }
 0x2bb   : > { %3510 = vst.msk [vmem:[%s5356_s8 + $0x20] sm:$0xff] %vm464_vm14, %v3462_v24  ;;  %v3478_v54 = vsub.f32 %v3430_v39, %v6417_v58  ;;  %v3479_v18 = vsub.f32 %v3431_v57, %v6422_v20  ;;  %v3480_v25 = vsub.f32 %v3432_v0, %v6426_v30  ;;  %v3481_v12 = vsub.f32 %v3433_v56, %v6436_v51  ;;  %v3445_v24 = vld [vmem:[%s5356_s8 + $0x118] sm:$0xff]  ;;  %v3454_v9 = vld [vmem:[%s5356_s8 + $0x160] sm:$0xff] }
 0x2bc   : > { %v3564_v53 = vadd.f32 %v3563_v44, %v3562_v46  ;;  %3511 = vst.msk [vmem:[%s5356_s8 + $0x28] sm:$0xff] %vm464_vm14, %v3463_v40  ;;  %v3482_v29 = vsub.f32 %v3434_v49, %v6417_v58  ;;  %v3483_v41 = vsub.f32 %v3435_v47, %v6422_v20  ;;  %v3484_v50 = vsub.f32 %v3436_v26, %v6426_v30  ;;  %v3444_v40 = vld [vmem:[%s5356_s8 + $0x110] sm:$0xff] }
 0x2bd   : > { %3512 = vst.msk [vmem:[%s5356_s8 + $0x30] sm:$0xff] %vm464_vm14, %v3464_v38  ;;  %v3485_v23 = vsub.f32 %v3437_v2, %v6436_v51  ;;  %v3486_v17 = vsub.f32 %v3438_v21, %v6417_v58  ;;  %v3487_v45 = vsub.f32 %v3439_v16, %v6422_v20  ;;  %v3488_v5 = vsub.f32 %v3440_v43, %v6426_v30  ;;  %v3728_v57 = vld [vmem:[%s5356_s8 + $0x8] sm:$0xff] (%p4309_p5) }
 0x2be   : > { %3565 = vadd.xlane.f32.xlu0 %v3564_v53  ;;  %3513 = vst.msk [vmem:[%s5356_s8 + $0x38] sm:$0xff] %vm464_vm14, %v3465_v19  ;;  %v3489_v61 = vsub.f32 %v3441_v22, %v6436_v51  ;;  %v3490_v44 = vsub.f32 %v3442_v63, %v6417_v58  ;;  %v3491_v46 = vsub.f32 %v3443_v10, %v6422_v20  ;;  %v3449_v19 = vld [vmem:[%s5356_s8 + $0x138] sm:$0xff] }
 0x2bf   : > { %3514 = vst.msk [vmem:[%s5356_s8 + $0x40] sm:$0xff] %vm464_vm14, %v3466_v14  ;;  %v3492_v38 = vsub.f32 %v3444_v40, %v6426_v30  ;;  %v3493_v53 = vsub.f32 %v3445_v24, %v6436_v51  ;;  %v3494_v59 = vsub.f32 %v3446_v28, %v6417_v58  ;;  %v3495_v14 = vsub.f32 %v3447_v60, %v6422_v20 }
 0x2c0   : > { %3515 = vst.msk [vmem:[%s5356_s8 + $0x48] sm:$0xff] %vm464_vm14, %v3467_v34  ;;  %v3496_v34 = vsub.f32 %v3448_v11, %v6426_v30  ;;  %v3498_v55 = vsub.f32 %v3450_v7, %v6417_v58  ;;  %v3501_v4 = vsub.f32 %v3453_v36, %v6436_v51  ;;  %v3502_v8 = vsub.f32 %v3454_v9, %v6417_v58 }
 0x2c1   : > { %3516 = vst.msk [vmem:[%s5356_s8 + $0x50] sm:$0xff] %vm464_vm14, %v3468_v52  ;;  %v3497_v52 = vsub.f32 %v3449_v19, %v6436_v51  ;;  %v3732_v0 = vld [vmem:[%s5356_s8 + $0x18] sm:$0xff] (%p4309_p5) }
 0x2c2   : > { %3517 = vst.msk [vmem:[%s5356_s8 + $0x58] sm:$0xff] %vm464_vm14, %v3469_v15  ;;  %v3452_v15 = vld [vmem:[%s5356_s8 + $0x150] sm:$0xff] }
 0x2c3   : > { %3518 = vst.msk [vmem:[%s5356_s8 + $0x60] sm:$0xff] %vm464_vm14, %v3470_v1  ;;  %v3499_v1 = vsub.f32 %v3451_v6, %v6422_v20  ;;  %v3500_v31 = vsub.f32 %v3452_v15, %v6426_v30  ;;  %v3736_v56 = vld [vmem:[%s5356_s8 + $0x28] sm:$0xff] (%p4309_p5) }
 0x2c4   : > { %3519 = vst.msk [vmem:[%s5356_s8 + $0x68] sm:$0xff] %vm464_vm14, %v3471_v32  ;;  %v3455_v32 = vld [vmem:[%s5356_s8 + $0x168] sm:$0xff] }
 0x2c5   : > { %3520 = vst.msk [vmem:[%s5356_s8 + $0x70] sm:$0xff] %vm464_vm14, %v3472_v33  ;;  %v3456_v33 = vld [vmem:[%s5356_s8 + $0x170] sm:$0xff]  ;;  %v3740_v49 = vld [vmem:[%s5356_s8 + $0x38] sm:$0xff] (%p4309_p5) }
 0x2c6   : > { %3521 = vst.msk [vmem:[%s5356_s8 + $0x78] sm:$0xff] %vm464_vm14, %v3473_v13  ;;  %v3457_v13 = vld [vmem:[%s5356_s8 + $0x178] sm:$0xff]  ;;  %v3504_v42 = vsub.f32 %v3456_v33, %v6426_v30 }
 0x2c7   : > { %3522 = vst.msk [vmem:[%s5356_s8 + $0x80] sm:$0xff] %vm464_vm14, %v3474_v27  ;;  %v3503_v27 = vsub.f32 %v3455_v32, %v6422_v20  ;;  %v3744_v47 = vld [vmem:[%s5356_s8 + $0x48] sm:$0xff] (%p4309_p5) }
 0x2c8   : > { %3523 = vst.msk [vmem:[%s5356_s8 + $0x88] sm:$0xff] %vm464_vm14, %v3475_v37  ;;  %v3505_v37 = vsub.f32 %v3457_v13, %v6436_v51 }
 0x2c9   : > { %3524 = vst.msk [vmem:[%s5356_s8 + $0x90] sm:$0xff] %vm464_vm14, %v3476_v3  ;;  %v3748_v26 = vld [vmem:[%s5356_s8 + $0x58] sm:$0xff] (%p4309_p5) }
 0x2ca   : > { %3525 = vst.msk [vmem:[%s5356_s8 + $0x98] sm:$0xff] %vm464_vm14, %v3477_v62 }
 0x2cb   : > { %3526 = vst.msk [vmem:[%s5356_s8 + $0xa0] sm:$0xff] %vm464_vm14, %v3478_v54  ;;  %v3730_v54 = vld [vmem:[%s5356_s8 + $0x10] sm:$0xff] (%p4309_p5)  ;;  %v3752_v2 = vld [vmem:[%s5356_s8 + $0x68] sm:$0xff] (%p4309_p5) }
 0x2cc   : > { %3527 = vst.msk [vmem:[%s5356_s8 + $0xa8] sm:$0xff] %vm464_vm14, %v3479_v18  ;;  %v3734_v18 = vld [vmem:[%s5356_s8 + $0x20] sm:$0xff] (%p4309_p5) }
 0x2cd   : > { %3528 = vst.msk [vmem:[%s5356_s8 + $0xb0] sm:$0xff] %vm464_vm14, %v3480_v25  ;;  %v3738_v25 = vld [vmem:[%s5356_s8 + $0x30] sm:$0xff] (%p4309_p5)  ;;  %v3756_v21 = vld [vmem:[%s5356_s8 + $0x78] sm:$0xff] (%p4309_p5) }
 0x2ce   : > { %3529 = vst.msk [vmem:[%s5356_s8 + $0xb8] sm:$0xff] %vm464_vm14, %v3481_v12  ;;  %v3742_v12 = vld [vmem:[%s5356_s8 + $0x40] sm:$0xff] (%p4309_p5) }
 0x2cf   : > { %3530 = vst.msk [vmem:[%s5356_s8 + $0xc0] sm:$0xff] %vm464_vm14, %v3482_v29  ;;  %v3746_v29 = vld [vmem:[%s5356_s8 + $0x50] sm:$0xff] (%p4309_p5)  ;;  %v3760_v16 = vld [vmem:[%s5356_s8 + $0x88] sm:$0xff] (%p4309_p5) }
 0x2d0   : > { %3531 = vst.msk [vmem:[%s5356_s8 + $0xc8] sm:$0xff] %vm464_vm14, %v3483_v41  ;;  %v3750_v41 = vld [vmem:[%s5356_s8 + $0x60] sm:$0xff] (%p4309_p5) }
 0x2d1   : > { %3532 = vst.msk [vmem:[%s5356_s8 + $0xd0] sm:$0xff] %vm464_vm14, %v3484_v50  ;;  %v3754_v50 = vld [vmem:[%s5356_s8 + $0x70] sm:$0xff] (%p4309_p5)  ;;  %v3764_v43 = vld [vmem:[%s5356_s8 + $0x98] sm:$0xff] (%p4309_p5) }
 0x2d2   : > { %3533 = vst.msk [vmem:[%s5356_s8 + $0xd8] sm:$0xff] %vm464_vm14, %v3485_v23  ;;  %v3758_v23 = vld [vmem:[%s5356_s8 + $0x80] sm:$0xff] (%p4309_p5) }
 0x2d3   : > { %3534 = vst.msk [vmem:[%s5356_s8 + $0xe0] sm:$0xff] %vm464_vm14, %v3486_v17  ;;  %v3762_v17 = vld [vmem:[%s5356_s8 + $0x90] sm:$0xff] (%p4309_p5)  ;;  %v3766_v63 = vld [vmem:[%s5356_s8 + $0xa0] sm:$0xff] (%p4309_p5) }
 0x2d4   : > { %3535 = vst.msk [vmem:[%s5356_s8 + $0xe8] sm:$0xff] %vm464_vm14, %v3487_v45  ;;  %v3768_v45 = vld [vmem:[%s5356_s8 + $0xa8] sm:$0xff] (%p4309_p5)  ;;  %v3770_v22 = vld [vmem:[%s5356_s8 + $0xb0] sm:$0xff] (%p4309_p5) }
 0x2d5   : > { %3536 = vst.msk [vmem:[%s5356_s8 + $0xf0] sm:$0xff] %vm464_vm14, %v3488_v5  ;;  %v3772_v5 = vld [vmem:[%s5356_s8 + $0xb8] sm:$0xff] (%p4309_p5) }
 0x2d6   : > { %3537 = vst.msk [vmem:[%s5356_s8 + $0xf8] sm:$0xff] %vm464_vm14, %v3489_v61  ;;  %v3774_v61 = vld [vmem:[%s5356_s8 + $0xc0] sm:$0xff] (%p4309_p5) }
 0x2d7   : > { %3538 = vst.msk [vmem:[%s5356_s8 + $0x100] sm:$0xff] %vm464_vm14, %v3490_v44  ;;  %v3776_v10 = vld [vmem:[%s5356_s8 + $0xc8] sm:$0xff] (%p4309_p5) }
 0x2d8   : > { %3539 = vst.msk [vmem:[%s5356_s8 + $0x108] sm:$0xff] %vm464_vm14, %v3491_v46  ;;  %v3778_v24 = vld [vmem:[%s5356_s8 + $0xd0] sm:$0xff] (%p4309_p5) }
 0x2d9   : > { %3540 = vst.msk [vmem:[%s5356_s8 + $0x110] sm:$0xff] %vm464_vm14, %v3492_v38  ;;  %v3780_v44 = vld [vmem:[%s5356_s8 + $0xd8] sm:$0xff] (%p4309_p5) }
 0x2da   : > { %3541 = vst.msk [vmem:[%s5356_s8 + $0x118] sm:$0xff] %vm464_vm14, %v3493_v53  ;;  %v3782_v40 = vld [vmem:[%s5356_s8 + $0xe0] sm:$0xff] (%p4309_p5) }
 0x2db   : > { %3542 = vst.msk [vmem:[%s5356_s8 + $0x120] sm:$0xff] %vm464_vm14, %v3494_v59  ;;  %v3784_v28 = vld [vmem:[%s5356_s8 + $0xe8] sm:$0xff] (%p4309_p5) }
 0x2dc   : > { %3543 = vst.msk [vmem:[%s5356_s8 + $0x128] sm:$0xff] %vm464_vm14, %v3495_v14  ;;  %v3786_v46 = vld [vmem:[%s5356_s8 + $0xf0] sm:$0xff] (%p4309_p5) }
 0x2dd   : > { %3544 = vst.msk [vmem:[%s5356_s8 + $0x130] sm:$0xff] %vm464_vm14, %v3496_v34  ;;  %v3788_v60 = vld [vmem:[%s5356_s8 + $0xf8] sm:$0xff] (%p4309_p5) }
 0x2de   : > { %3545 = vst.msk [vmem:[%s5356_s8 + $0x138] sm:$0xff] %vm464_vm14, %v3497_v52  ;;  %v3790_v38 = vld [vmem:[%s5356_s8 + $0x100] sm:$0xff] (%p4309_p5) }
 0x2df   : > { %3546 = vst.msk [vmem:[%s5356_s8 + $0x140] sm:$0xff] %vm464_vm14, %v3498_v55  ;;  %v3792_v11 = vld [vmem:[%s5356_s8 + $0x108] sm:$0xff] (%p4309_p5) }
 0x2e0   : > { %3547 = vst.msk [vmem:[%s5356_s8 + $0x148] sm:$0xff] %vm464_vm14, %v3499_v1  ;;  %v3794_v53 = vld [vmem:[%s5356_s8 + $0x110] sm:$0xff] (%p4309_p5) }
 0x2e1   : > { %3548 = vst.msk [vmem:[%s5356_s8 + $0x150] sm:$0xff] %vm464_vm14, %v3500_v31  ;;  %v3796_v19 = vld [vmem:[%s5356_s8 + $0x118] sm:$0xff] (%p4309_p5) }
 0x2e2   : > { %3549 = vst.msk [vmem:[%s5356_s8 + $0x158] sm:$0xff] %vm464_vm14, %v3501_v4  ;;  %v3798_v59 = vld [vmem:[%s5356_s8 + $0x120] sm:$0xff] (%p4309_p5) }
 0x2e3   : > { %3550 = vst.msk [vmem:[%s5356_s8 + $0x160] sm:$0xff] %vm464_vm14, %v3502_v8  ;;  %v3800_v14 = vld [vmem:[%s5356_s8 + $0x128] sm:$0xff] (%p4309_p5) }
 0x2e4   : > { %3551 = vst.msk [vmem:[%s5356_s8 + $0x168] sm:$0xff] %vm464_vm14, %v3503_v27  ;;  %v3802_v6 = vld [vmem:[%s5356_s8 + $0x130] sm:$0xff] (%p4309_p5) }
 0x2e5   : > { %3552 = vst.msk [vmem:[%s5356_s8 + $0x170] sm:$0xff] %vm464_vm14, %v3504_v42  ;;  %v3804_v34 = vld [vmem:[%s5356_s8 + $0x138] sm:$0xff] (%p4309_p5) }
 0x2e6   : > { %3553 = vst.msk [vmem:[%s5356_s8 + $0x178] sm:$0xff] %vm464_vm14, %v3505_v37  ;;  %v3806_v7 = vld [vmem:[%s5356_s8 + $0x140] sm:$0xff] (%p4309_p5) }
 0x2e7   : > { %3557 = vst.msk [vmem:[%s6434_s24 + $0x18] sm:$0xff] %vm464_vm14, %v6446_v35  ;;  %v3726_v35 = vld [vmem:[%s5356_s8] sm:$0xff] (%p4309_p5)  ;;  %v3808_v52 = vld [vmem:[%s5356_s8 + $0x148] sm:$0xff] (%p4309_p5) }
 0x2e8   : > { %3727 = vst [vmem:[%s6664_s26] sm:$0xff] (%p4309_p5), %v3726_v35  ;;  %v3810_v55 = vld [vmem:[%s5356_s8 + $0x150] sm:$0xff] (%p4309_p5) }
 0x2e9   : > { %3729 = vst [vmem:[%s6664_s26 + $0x8] sm:$0xff] (%p4309_p5), %v3728_v57  ;;  %v3812_v15 = vld [vmem:[%s5356_s8 + $0x158] sm:$0xff] (%p4309_p5) }
 0x2ea   : > { %3731 = vst [vmem:[%s6664_s26 + $0x10] sm:$0xff] (%p4309_p5), %v3730_v54  ;;  %v3814_v9 = vld [vmem:[%s5356_s8 + $0x160] sm:$0xff] (%p4309_p5) }
 0x2eb   : > { %3733 = vst [vmem:[%s6664_s26 + $0x18] sm:$0xff] (%p4309_p5), %v3732_v0  ;;  %v3816_v1 = vld [vmem:[%s5356_s8 + $0x168] sm:$0xff] (%p4309_p5) }
 0x2ec   : > { %3735 = vst [vmem:[%s6664_s26 + $0x40] sm:$0xff] (%p4309_p5), %v3734_v18  ;;  %v3818_v36 = vld [vmem:[%s5356_s8 + $0x170] sm:$0xff] (%p4309_p5) }
 0x2ed   : > { %3737 = vst [vmem:[%s6664_s26 + $0x48] sm:$0xff] (%p4309_p5), %v3736_v56  ;;  %v3820_v32 = vld [vmem:[%s5356_s8 + $0x178] sm:$0xff] (%p4309_p5) }
 0x2ee   : > { %3739 = vst [vmem:[%s6664_s26 + $0x50] sm:$0xff] (%p4309_p5), %v3738_v25 }
 0x2ef   : > { %3741 = vst [vmem:[%s6664_s26 + $0x58] sm:$0xff] (%p4309_p5), %v3740_v49 }
 0x2f0   : > { %3743 = vst [vmem:[%s6664_s26 + $0x80] sm:$0xff] (%p4309_p5), %v3742_v12 }
 0x2f1   : > { %3745 = vst [vmem:[%s6664_s26 + $0x88] sm:$0xff] (%p4309_p5), %v3744_v47 }
 0x2f2   : > { %3747 = vst [vmem:[%s6664_s26 + $0x90] sm:$0xff] (%p4309_p5), %v3746_v29 }
 0x2f3   : > { %3749 = vst [vmem:[%s6664_s26 + $0x98] sm:$0xff] (%p4309_p5), %v3748_v26 }
 0x2f4   : > { %3751 = vst [vmem:[%s6664_s26 + $0xc0] sm:$0xff] (%p4309_p5), %v3750_v41 }
 0x2f5   : > { %3753 = vst [vmem:[%s6664_s26 + $0xc8] sm:$0xff] (%p4309_p5), %v3752_v2 }
 0x2f6   : > { %3755 = vst [vmem:[%s6664_s26 + $0xd0] sm:$0xff] (%p4309_p5), %v3754_v50 }
 0x2f7   : > { %3757 = vst [vmem:[%s6664_s26 + $0xd8] sm:$0xff] (%p4309_p5), %v3756_v21 }
 0x2f8   : > { %3759 = vst [vmem:[%s6664_s26 + $0x100] sm:$0xff] (%p4309_p5), %v3758_v23 }
 0x2f9   : > { %3761 = vst [vmem:[%s6664_s26 + $0x108] sm:$0xff] (%p4309_p5), %v3760_v16 }
 0x2fa   : > { %3763 = vst [vmem:[%s6664_s26 + $0x110] sm:$0xff] (%p4309_p5), %v3762_v17 }
 0x2fb   : > { %3765 = vst [vmem:[%s6664_s26 + $0x118] sm:$0xff] (%p4309_p5), %v3764_v43 }
 0x2fc   : > { %3767 = vst [vmem:[%s6664_s26 + $0x140] sm:$0xff] (%p4309_p5), %v3766_v63 }
 0x2fd   : > { %3769 = vst [vmem:[%s6664_s26 + $0x148] sm:$0xff] (%p4309_p5), %v3768_v45 }
 0x2fe   : > { %3771 = vst [vmem:[%s6664_s26 + $0x150] sm:$0xff] (%p4309_p5), %v3770_v22 }
 0x2ff   : > { %3773 = vst [vmem:[%s6664_s26 + $0x158] sm:$0xff] (%p4309_p5), %v3772_v5 }
 0x300   : > { %3775 = vst [vmem:[%s6664_s26 + $0x180] sm:$0xff] (%p4309_p5), %v3774_v61 }
 0x301   : > { %3777 = vst [vmem:[%s6664_s26 + $0x188] sm:$0xff] (%p4309_p5), %v3776_v10 }
 0x302   : > { %3779 = vst [vmem:[%s6664_s26 + $0x190] sm:$0xff] (%p4309_p5), %v3778_v24 }
 0x303   : > { %3781 = vst [vmem:[%s6664_s26 + $0x198] sm:$0xff] (%p4309_p5), %v3780_v44 }
 0x304   : > { %3783 = vst [vmem:[%s6664_s26 + $0x1c0] sm:$0xff] (%p4309_p5), %v3782_v40 }
 0x305   : > { %3785 = vst [vmem:[%s6664_s26 + $0x1c8] sm:$0xff] (%p4309_p5), %v3784_v28 }
 0x306   : > { %3787 = vst [vmem:[%s6664_s26 + $0x1d0] sm:$0xff] (%p4309_p5), %v3786_v46 }
 0x307   : > { %3789 = vst [vmem:[%s6664_s26 + $0x1d8] sm:$0xff] (%p4309_p5), %v3788_v60 }
 0x308   : > { %3791 = vst [vmem:[%s6664_s26 + $0x200] sm:$0xff] (%p4309_p5), %v3790_v38 }
 0x309   : > { %3793 = vst [vmem:[%s6664_s26 + $0x208] sm:$0xff] (%p4309_p5), %v3792_v11 }
 0x30a   : > { %3795 = vst [vmem:[%s6664_s26 + $0x210] sm:$0xff] (%p4309_p5), %v3794_v53 }
 0x30b   : > { %3797 = vst [vmem:[%s6664_s26 + $0x218] sm:$0xff] (%p4309_p5), %v3796_v19 }
 0x30c   : > { %3799 = vst [vmem:[%s6664_s26 + $0x240] sm:$0xff] (%p4309_p5), %v3798_v59 }
 0x30d   : > { %3801 = vst [vmem:[%s6664_s26 + $0x248] sm:$0xff] (%p4309_p5), %v3800_v14 }
 0x30e   : > { %3803 = vst [vmem:[%s6664_s26 + $0x250] sm:$0xff] (%p4309_p5), %v3802_v6 }
 0x30f   : > { %3805 = vst [vmem:[%s6664_s26 + $0x258] sm:$0xff] (%p4309_p5), %v3804_v34 }
 0x310   : > { %3807 = vst [vmem:[%s6664_s26 + $0x280] sm:$0xff] (%p4309_p5), %v3806_v7 }
 0x311   : > { %3809 = vst [vmem:[%s6664_s26 + $0x288] sm:$0xff] (%p4309_p5), %v3808_v52 }
 0x312   : > { %3811 = vst [vmem:[%s6664_s26 + $0x290] sm:$0xff] (%p4309_p5), %v3810_v55 }
 0x313   : > { %3813 = vst [vmem:[%s6664_s26 + $0x298] sm:$0xff] (%p4309_p5), %v3812_v15 }
 0x314   : > { %3815 = vst [vmem:[%s6664_s26 + $0x2c0] sm:$0xff] (%p4309_p5), %v3814_v9 }
 0x315   : > { %3817 = vst [vmem:[%s6664_s26 + $0x2c8] sm:$0xff] (%p4309_p5), %v3816_v1 }
 0x316   : > { %3819 = vst [vmem:[%s6664_s26 + $0x2d0] sm:$0xff] (%p4309_p5), %v3818_v36 }
 0x317   : > { %3821 = vst [vmem:[%s6664_s26 + $0x2d8] sm:$0xff] (%p4309_p5), %v3820_v32 }
 0x331   : > { %v3566_v58 = vpop.xlane.xlu0 %3565 }
 0x332   : > { %v3567_v20 = vrot.slane %v3566_v58, 4 }
 0x334   : > { %v3568_v30 = vadd.f32 %v3567_v20, %v3566_v58 }
 0x336   : > { %v3569_v48 = vrot.slane %v3568_v30, 2 }
 0x338   : > { %v3570_v3 = vadd.f32 %v3569_v48, %v3568_v30 }
 0x33a   : > { %v3571_v51 = vrot.slane %v3570_v3, 1 }
 0x33c   : > { %v3572_v39 = vadd.f32 %v3571_v51, %v3570_v3 }
 0x33e   : > { %4117 = vpush %v3572_v39 }
 0x36d   : > { %3598 = sbr.rel (!%p4309_p5) target bundleno = 882 (0x372), region = 32 }
 0x36f   : > { %s4118_s15 = spop %4117 }
 0x370   : > { %v3574_v62 = vstv %s4118_s15 }
 0x371   : > { %3575 = vst [vmem:[%s262_s7] sm:$0x1] %v3574_v62 }
 0x372 PF: > { %s15_s21 = sadd.s32 1, %s4233_s21   ;;  %s7011_s15 = smov %s4213_s16 }
 0x373   : > { %p12_p12 = scmp.ge.s32.totalorder %s15_s21, 6   ;;  %s7012_s16 = smov %s4320_s30 }
 0x374   : > { %s7013_s17 = smov %s4225_s19  ;;  %s7014_s18 = smov %s4229_s20 }
 0x375   : > { %s7015_s19 = smov %s7018_s22  ;;  %s7016_s20 = smov %s7022_s23 }
 0x376   :  { %14 = sbr.rel (!%p12_p12) target bundleno = 4 (0x4), region = 133 }

</bundles_post_ra>
